<compile_context>
chip_gen: v6e
topology: v6e:2x2x1
jax: 0.10.0
libtpu: 0.0.40
codegen_flags: <defaults>
</compile_context>

<pallas_src>
import jax
import jax.numpy as jnp
from jax.experimental import pallas as pl
from jax.experimental.pallas import tpu as pltpu


# ----------------------------------------------------------------------------
# Kernel
# ----------------------------------------------------------------------------
def chess_cnn_kernel(x_ref,
                     w1_ref, b1_ref, w2_ref, b2_ref, w3_ref, b3_ref,
                     w4_ref, b4_ref,
                     fw1_ref, fb1_ref, fw2_ref, fb2_ref, fw3_ref, fb3_ref,
                     out_ref):
    f32, bf16 = jnp.float32, jnp.bfloat16

    def dense(a, w_ref, b_ref, relu=True, out_dtype=bf16):
        # bf16 MXU operands, f32 accumulation + f32 elementwise epilogue; the
        # returned slab is bf16 (the next matmul's operand dtype) unless asked
        # otherwise -> halves VMEM store/load traffic for the big slabs.
        z = jnp.dot(a, w_ref[...], preferred_element_type=f32) + b_ref[...]
        if relu:
            z = jnp.maximum(z, 0.0)
        return z.astype(out_dtype)

    x = x_ref[...].astype(bf16)                      # (TB, 384)  in-kernel cast
    a1 = dense(x, w1_ref, b1_ref)                    # conv1 + ReLU      (TB, 800)
    a2 = dense(a1, w2_ref, b2_ref)                   # conv2 + ReLU      (TB, 512)
    a3 = dense(a2, w3_ref, b3_ref)                   # pool1+conv3+ReLU  (TB, 256)

    # conv4 without bias -> (TB, 256).  Columns are pixel-interleaved as
    # [p0 | p2 | p1 | p3] (64 channels each) so the first MaxPool2d maximum is
    # a full-vreg aligned VPU op; only the last maximum needs a 64-lane shift.
    # max_p(y_p + b) = max_p(y_p) + b (per-channel bias) and ReLU is monotone,
    # so bias + ReLU after the max is exact.
    z4 = jnp.dot(a3, w4_ref[...], preferred_element_type=f32)
    r = jnp.maximum(z4[:, 0:128], z4[:, 128:256])    # [max(p0,p1) | max(p2,p3)]
    m = jnp.maximum(r[:, 0:64], r[:, 64:128])        # (TB, 64)
    m = jnp.maximum(m + b4_ref[...], 0.0).astype(bf16)

    h1 = dense(m, fw1_ref, fb1_ref)                  # fc1 + ReLU   (TB, 128)
    # TODO(synk): F.dropout(p=0.5) is stochastic; implemented as identity
    # (inference/eval semantics).
    h2 = dense(h1, fw2_ref, fb2_ref, out_dtype=f32)  # fc2 + ReLU   (TB, 64)

    # fc3 (64 -> 1): VPU multiply + lane reduction instead of an N=1 MXU
    # matmul (which would use <1% of the MXU's N width every grid step).
    logit = jnp.sum(h2 * fw3_ref[...], axis=-1, keepdims=True) + fb3_ref[...]

    # Lane-dense output: broadcast the per-row result across the 128-lane
    # output block so stores are unmasked full-vreg vst and the writeback DMA
    # is dense; the wrapper keeps column 0 only.
    out_ref[...] = jnp.broadcast_to(jax.nn.sigmoid(logit),
                                    out_ref.shape).astype(out_ref.dtype)


# ----------------------------------------------------------------------------
# Wrapper-side weight preparation (done once; no per-sample data involved)
# ----------------------------------------------------------------------------
def _conv_nchw(x, w, pad):
    return jax.lax.conv_general_dilated(
        x, w, window_strides=(1, 1), padding=[(pad, pad), (pad, pad)],
        dimension_numbers=("NCHW", "OIHW", "NCHW"))


def _unroll(fn, in_dim):
    # Matrix of a linear map: apply it to the identity basis.
    return fn(jnp.eye(in_dim, dtype=jnp.float32))    # (in_dim, out_dim)


def prepare_params(params, dtype=jnp.bfloat16):
    """Build the unrolled (dense) weight matrices consumed by the kernel.

    The composition is done in f32; only the final matmul operands are cast to
    `dtype` (bf16).  Biases and the fc3 row stay f32 (f32 epilogues).
    """
    w1, b1 = params["conv1"]
    w2, b2 = params["conv2"]
    w3, b3 = params["conv3"]
    w4, b4 = params["conv4"]

    def f1(v):                   # (N, 384) -> (N, 800): conv1 (k=4, pad 0)
        y = _conv_nchw(v.reshape(-1, 6, 8, 8), w1, 0)         # (N, 32, 5, 5)
        return y.reshape(-1, 800)

    def f2(v):                   # (N, 800) -> (N, 512): conv2 at the 4x4 pixels
        y = _conv_nchw(v.reshape(-1, 32, 5, 5), w2, 1)        # (N, 32, 5, 5)
        return y[:, :, :4, :4].reshape(-1, 512)               # pool1 floor mode

    def f3(v):                   # (N, 512) -> (N, 256): AvgPool(2,2) + conv3
        x = v.reshape(-1, 32, 4, 4)
        p = jax.lax.reduce_window(x, 0.0, jax.lax.add,
                                  (1, 1, 2, 2), (1, 1, 2, 2), "VALID") * 0.25
        y = _conv_nchw(p, w3, 1)                              # (N, 64, 2, 2)
        return y.reshape(-1, 256)

    def f4(v):                   # (N, 256) -> (N, 256): conv4, pixel-interleaved
        y = _conv_nchw(v.reshape(-1, 64, 2, 2), w4, 1)        # (N, 64, 2, 2)
        y = jnp.transpose(y, (0, 2, 3, 1)).reshape(-1, 4, 64)  # pixels p0..p3
        # [p0 | p2 | p1 | p3]: first MaxPool maximum is 128-lane aligned.
        return y[:, jnp.array([0, 2, 1, 3]), :].reshape(-1, 256)

    W1 = _unroll(f1, 384)
    W2 = _unroll(f2, 800)
    W3 = _unroll(f3, 512)
    W4 = _unroll(f4, 256)

    fw1, fb1 = params["fc1"]
    fw2, fb2 = params["fc2"]
    fw3, fb3 = params["fc3"]

    return dict(
        w1=W1.astype(dtype), b1=jnp.repeat(b1, 25).reshape(1, -1),
        w2=W2.astype(dtype), b2=jnp.repeat(b2, 16).reshape(1, -1),
        w3=W3.astype(dtype), b3=jnp.repeat(b3, 4).reshape(1, -1),
        w4=W4.astype(dtype), b4=b4.reshape(1, -1),
        fw1=jnp.transpose(fw1).astype(dtype), fb1=fb1.reshape(1, -1),
        fw2=jnp.transpose(fw2).astype(dtype), fb2=fb2.reshape(1, -1),
        fw3=fw3.astype(jnp.float32).reshape(1, -1),   # (1, 64) f32 row (VPU fc3)
        fb3=fb3.reshape(1, 1),
    )


_PARAM_ORDER = ("w1", "b1", "w2", "b2", "w3", "b3", "w4", "b4",
                "fw1", "fb1", "fw2", "fb2", "fw3", "fb3")


def _round_up(n, m):
    return ((n + m - 1) // m) * m


def _choose_tb(batch, block_b):
    """Batch tile: multiple of 16 (bf16 sublane packing), derived from the
    batch so the tail tile isn't mostly zero padding, and >= 2 grid steps
    whenever the batch allows it so the ("parallel",) axis can span both
    TensorCores on v7x (no-op on single-TC v5e/v6e)."""
    batch = max(int(batch), 1)
    block_b = max(16, _round_up(int(block_b), 16))
    if batch < 32:                          # too small to split usefully
        return min(block_b, _round_up(batch, 16))
    steps = max(2, -(-batch // block_b))    # ceil-div, but at least 2 steps
    return min(block_b, _round_up(-(-batch // steps), 16))


# ----------------------------------------------------------------------------
# Pallas forward
# ----------------------------------------------------------------------------
def chess_cnn_forward(x_nchw, prepared, *, block_b=1024):
    """x_nchw: (B, 6, 8, 8) float32 -> (B, 1) float32 sigmoid scores.

    `block_b` (max batch tile) is the primary tuning knob: larger tiles
    amortize the ~0.35 us per-grid-step pipeline overhead over more MXU work.
    VMEM use at tb=1024 is ~15 MiB (weights ~2 MiB single-buffered + slabs),
    comfortably inside the 32 MiB scoped budget on v5e/v6e/v7x.
    """
    B = x_nchw.shape[0]
    # Lane-dense f32 input slab (NCHW flatten is a free reshape); the bf16
    # cast happens inside the kernel, so no extra wrapper-side HBM pass.
    x_flat = x_nchw.reshape(B, 384)

    tb = _choose_tb(B, block_b)
    padded_b = _round_up(B, tb)
    if padded_b != B:
        x_flat = jnp.pad(x_flat, ((0, padded_b - B), (0, 0)))

    ws = [prepared[name] for name in _PARAM_ORDER]

    def run(single_buffer_weights):
        if single_buffer_weights:
            # Constant-index weights never re-fetch across grid steps; a
            # single VMEM buffer suffices (saves ~2 MiB vs. double buffering).
            const_specs = [
                pl.BlockSpec(w.shape, lambda i: (0, 0),
                             pipeline_mode=pl.Buffered(buffer_count=1))
                for w in ws]
        else:
            const_specs = [pl.BlockSpec(w.shape, lambda i: (0, 0)) for w in ws]
        return pl.pallas_call(
            chess_cnn_kernel,
            # Lane-dense output slab (128 lanes/row): unmasked stores + dense
            # writeback DMA; wrapper slices column 0.
            out_shape=jax.ShapeDtypeStruct((padded_b, 128), jnp.float32),
            grid=(padded_b // tb,),
            in_specs=[pl.BlockSpec((tb, 384), lambda i: (i, 0))] + const_specs,
            out_specs=pl.BlockSpec((tb, 128), lambda i: (i, 0)),
            compiler_params=pltpu.CompilerParams(
                dimension_semantics=("parallel",),
                vmem_limit_bytes=32 * 1024 * 1024),
        )(x_flat, *ws)

    try:
        out = run(True)
    except Exception:
        # Installed jax rejects pl.Buffered(buffer_count=1): fall back to the
        # default double-buffered weight specs (identical numerics).
        out = run(False)
    return out[:B, :1]


# ----------------------------------------------------------------------------
# Pure-JAX reference (matches PyTorch forward, dropout = identity)
# ----------------------------------------------------------------------------
def reference_forward(x, params):
    def conv(x, w, b, pad):
        y = _conv_nchw(x, w, pad)
        return jax.nn.relu(y + b.reshape(1, -1, 1, 1))

    x = conv(x, *params["conv1"], 0)
    x = conv(x, *params["conv2"], 1)
    x = jax.lax.reduce_window(x, 0.0, jax.lax.add,
                              (1, 1, 2, 2), (1, 1, 2, 2), "VALID") / 4.0
    x = conv(x, *params["conv3"], 1)
    x = conv(x, *params["conv4"], 1)
    x = jax.lax.reduce_window(x, -jnp.inf, jax.lax.max,
                              (1, 1, 2, 2), (1, 1, 2, 2), "VALID")
    x = x.reshape(x.shape[0], -1)
    w, b = params["fc1"]; x = jax.nn.relu(x @ w.T + b)
    w, b = params["fc2"]; x = jax.nn.relu(x @ w.T + b)
    w, b = params["fc3"]; x = jax.nn.sigmoid(x @ w.T + b)
    return x


def init_params(key):
    ks = jax.random.split(key, 14)

    def rnd(k, shape, scale=0.1):
        return jax.random.normal(k, shape, jnp.float32) * scale

    return {
        "conv1": (rnd(ks[0], (32, 6, 4, 4)),   rnd(ks[1], (32,))),
        "conv2": (rnd(ks[2], (32, 32, 3, 3)),  rnd(ks[3], (32,))),
        "conv3": (rnd(ks[4], (64, 32, 3, 3)),  rnd(ks[5], (64,))),
        "conv4": (rnd(ks[6], (64, 64, 3, 3)),  rnd(ks[7], (64,))),
        "fc1":   (rnd(ks[8], (128, 64)),       rnd(ks[9], (128,))),
        "fc2":   (rnd(ks[10], (64, 128)),      rnd(ks[11], (64,))),
        "fc3":   (rnd(ks[12], (1, 64)),        rnd(ks[13], (1,))),
    }


if __name__ == "__main__":
    key = jax.random.PRNGKey(0)
    k_param, k_x, k_x2 = jax.random.split(key, 3)
    params = init_params(k_param)
    prepared = prepare_params(params)

    # Matmul operands are bf16 (accumulation / epilogues f32), so tolerance is
    # relaxed vs. the f32 reference; sigmoid outputs live in [0, 1].
    TOL = 2e-2

    # Chess board encoding: batch=2, 6 piece planes, 8x8 board (NCHW).
    x = jax.random.normal(k_x, (2, 6, 8, 8), jnp.float32)
    out = jax.block_until_ready(chess_cnn_forward(x, prepared))
    ref = reference_forward(x, params)
    assert out.shape == (2, 1)
    max_diff = float(jnp.max(jnp.abs(out - ref)))
    assert max_diff < TOL, f"mismatch vs reference: {max_diff}"

    # Larger batch exercising the >=2-step parallel grid and tail padding.
    x2 = jax.random.normal(k_x2, (300, 6, 8, 8), jnp.float32)
    out2 = jax.block_until_ready(chess_cnn_forward(x2, prepared))
    ref2 = reference_forward(x2, params)
    assert out2.shape == (300, 1)
    max_diff2 = float(jnp.max(jnp.abs(out2 - ref2)))
    assert max_diff2 < TOL, f"batched mismatch vs reference: {max_diff2}"

    print("KERNEL_OK")
</pallas_src>

<mosaic_0001>
module attributes {stable_mosaic.version = 11 : i64} {
  func.func @chess_cnn_kernel(%arg0: i32, %arg1: memref<16x384xf32, #tpu.memory_space<vmem>>, %arg2: memref<384x800xbf16, #tpu.memory_space<vmem>>, %arg3: memref<1x800xf32, #tpu.memory_space<vmem>>, %arg4: memref<800x512xbf16, #tpu.memory_space<vmem>>, %arg5: memref<1x512xf32, #tpu.memory_space<vmem>>, %arg6: memref<512x256xbf16, #tpu.memory_space<vmem>>, %arg7: memref<1x256xf32, #tpu.memory_space<vmem>>, %arg8: memref<256x256xbf16, #tpu.memory_space<vmem>>, %arg9: memref<1x64xf32, #tpu.memory_space<vmem>>, %arg10: memref<64x128xbf16, #tpu.memory_space<vmem>>, %arg11: memref<1x128xf32, #tpu.memory_space<vmem>>, %arg12: memref<128x64xbf16, #tpu.memory_space<vmem>>, %arg13: memref<1x64xf32, #tpu.memory_space<vmem>>, %arg14: memref<1x64xf32, #tpu.memory_space<vmem>>, %arg15: memref<1x1xf32, #tpu.memory_space<vmem>>, %arg16: memref<16x128xf32, #tpu.memory_space<vmem>>) attributes {dimension_semantics = [#tpu.dimension_semantics<parallel>], iteration_bounds = array<i64: 1>, scalar_prefetch = 0 : i64, scratch_operands = 0 : i64, tpu.core_type = #tpu.core_type<tc>, window_params = [{transform_indices = @transform_0, window_bounds = array<i64: 16, 384>}, {pipeline_mode = #tpu.pipeline_mode<synchronous>, transform_indices = @transform_1, window_bounds = array<i64: 384, 800>}, {pipeline_mode = #tpu.pipeline_mode<synchronous>, transform_indices = @transform_2, window_bounds = array<i64: 1, 800>}, {pipeline_mode = #tpu.pipeline_mode<synchronous>, transform_indices = @transform_3, window_bounds = array<i64: 800, 512>}, {pipeline_mode = #tpu.pipeline_mode<synchronous>, transform_indices = @transform_4, window_bounds = array<i64: 1, 512>}, {pipeline_mode = #tpu.pipeline_mode<synchronous>, transform_indices = @transform_5, window_bounds = array<i64: 512, 256>}, {pipeline_mode = #tpu.pipeline_mode<synchronous>, transform_indices = @transform_6, window_bounds = array<i64: 1, 256>}, {pipeline_mode = #tpu.pipeline_mode<synchronous>, transform_indices = @transform_7, window_bounds = array<i64: 256, 256>}, {pipeline_mode = #tpu.pipeline_mode<synchronous>, transform_indices = @transform_8, window_bounds = array<i64: 1, 64>}, {pipeline_mode = #tpu.pipeline_mode<synchronous>, transform_indices = @transform_9, window_bounds = array<i64: 64, 128>}, {pipeline_mode = #tpu.pipeline_mode<synchronous>, transform_indices = @transform_10, window_bounds = array<i64: 1, 128>}, {pipeline_mode = #tpu.pipeline_mode<synchronous>, transform_indices = @transform_11, window_bounds = array<i64: 128, 64>}, {pipeline_mode = #tpu.pipeline_mode<synchronous>, transform_indices = @transform_12, window_bounds = array<i64: 1, 64>}, {pipeline_mode = #tpu.pipeline_mode<synchronous>, transform_indices = @transform_13, window_bounds = array<i64: 1, 64>}, {pipeline_mode = #tpu.pipeline_mode<synchronous>, transform_indices = @transform_14, window_bounds = array<i64: 1, 1>}, {transform_indices = @transform_15, window_bounds = array<i64: 16, 128>}]} {
    %c0 = arith.constant 0 : index
    %c0_0 = arith.constant 0 : index
    %0 = vector.load %arg1[%c0, %c0_0] : memref<16x384xf32, #tpu.memory_space<vmem>>, vector<16x384xf32>
    %1 = arith.truncf %0 : vector<16x384xf32> to vector<16x384xbf16>
    %c0_1 = arith.constant 0 : index
    %c0_2 = arith.constant 0 : index
    %2 = vector.load %arg2[%c0_1, %c0_2] : memref<384x800xbf16, #tpu.memory_space<vmem>>, vector<384x800xbf16>
    %cst = arith.constant dense<0.000000e+00> : vector<16x800xf32>
    %3 = tpu.matmul %1, %2, %cst {dimension_numbers = #tpu.dot_dimension_numbers<[1], [0], [0], [1], [0, 0, 1, 1], [], []>} : vector<16x384xbf16>, vector<384x800xbf16>, vector<16x800xf32> -> vector<16x800xf32>
    %c0_3 = arith.constant 0 : index
    %c0_4 = arith.constant 0 : index
    %4 = vector.load %arg3[%c0_3, %c0_4] : memref<1x800xf32, #tpu.memory_space<vmem>>, vector<1x800xf32>
    %5 = vector.broadcast %4 : vector<1x800xf32> to vector<16x800xf32>
    %6 = arith.addf %3, %5 : vector<16x800xf32>
    %cst_5 = arith.constant 0.000000e+00 : f32
    %7 = vector.broadcast %cst_5 : f32 to vector<16x800xf32>
    %8 = arith.maximumf %6, %7 : vector<16x800xf32>
    %9 = arith.truncf %8 : vector<16x800xf32> to vector<16x800xbf16>
    %c0_6 = arith.constant 0 : index
    %c0_7 = arith.constant 0 : index
    %10 = vector.load %arg4[%c0_6, %c0_7] : memref<800x512xbf16, #tpu.memory_space<vmem>>, vector<800x512xbf16>
    %cst_8 = arith.constant dense<0.000000e+00> : vector<16x512xf32>
    %11 = tpu.matmul %9, %10, %cst_8 {dimension_numbers = #tpu.dot_dimension_numbers<[1], [0], [0], [1], [0, 0, 1, 1], [], []>} : vector<16x800xbf16>, vector<800x512xbf16>, vector<16x512xf32> -> vector<16x512xf32>
    %c0_9 = arith.constant 0 : index
    %c0_10 = arith.constant 0 : index
    %12 = vector.load %arg5[%c0_9, %c0_10] : memref<1x512xf32, #tpu.memory_space<vmem>>, vector<1x512xf32>
    %13 = vector.broadcast %12 : vector<1x512xf32> to vector<16x512xf32>
    %14 = arith.addf %11, %13 : vector<16x512xf32>
    %cst_11 = arith.constant 0.000000e+00 : f32
    %15 = vector.broadcast %cst_11 : f32 to vector<16x512xf32>
    %16 = arith.maximumf %14, %15 : vector<16x512xf32>
    %17 = arith.truncf %16 : vector<16x512xf32> to vector<16x512xbf16>
    %c0_12 = arith.constant 0 : index
    %c0_13 = arith.constant 0 : index
    %18 = vector.load %arg6[%c0_12, %c0_13] : memref<512x256xbf16, #tpu.memory_space<vmem>>, vector<512x256xbf16>
    %cst_14 = arith.constant dense<0.000000e+00> : vector<16x256xf32>
    %19 = tpu.matmul %17, %18, %cst_14 {dimension_numbers = #tpu.dot_dimension_numbers<[1], [0], [0], [1], [0, 0, 1, 1], [], []>} : vector<16x512xbf16>, vector<512x256xbf16>, vector<16x256xf32> -> vector<16x256xf32>
    %c0_15 = arith.constant 0 : index
    %c0_16 = arith.constant 0 : index
    %20 = vector.load %arg7[%c0_15, %c0_16] : memref<1x256xf32, #tpu.memory_space<vmem>>, vector<1x256xf32>
    %21 = vector.broadcast %20 : vector<1x256xf32> to vector<16x256xf32>
    %22 = arith.addf %19, %21 : vector<16x256xf32>
    %cst_17 = arith.constant 0.000000e+00 : f32
    %23 = vector.broadcast %cst_17 : f32 to vector<16x256xf32>
    %24 = arith.maximumf %22, %23 : vector<16x256xf32>
    %25 = arith.truncf %24 : vector<16x256xf32> to vector<16x256xbf16>
    %c0_18 = arith.constant 0 : index
    %c0_19 = arith.constant 0 : index
    %26 = vector.load %arg8[%c0_18, %c0_19] : memref<256x256xbf16, #tpu.memory_space<vmem>>, vector<256x256xbf16>
    %cst_20 = arith.constant dense<0.000000e+00> : vector<16x256xf32>
    %27 = tpu.matmul %25, %26, %cst_20 {dimension_numbers = #tpu.dot_dimension_numbers<[1], [0], [0], [1], [0, 0, 1, 1], [], []>} : vector<16x256xbf16>, vector<256x256xbf16>, vector<16x256xf32> -> vector<16x256xf32>
    %28 = vector.extract_strided_slice %27 {offsets = [0, 0], sizes = [16, 128], strides = [1, 1]} : vector<16x256xf32> to vector<16x128xf32>
    %29 = vector.extract_strided_slice %27 {offsets = [0, 128], sizes = [16, 128], strides = [1, 1]} : vector<16x256xf32> to vector<16x128xf32>
    %30 = arith.maximumf %28, %29 : vector<16x128xf32>
    %31 = vector.extract_strided_slice %30 {offsets = [0, 0], sizes = [16, 64], strides = [1, 1]} : vector<16x128xf32> to vector<16x64xf32>
    %32 = vector.extract_strided_slice %30 {offsets = [0, 64], sizes = [16, 64], strides = [1, 1]} : vector<16x128xf32> to vector<16x64xf32>
    %33 = arith.maximumf %31, %32 : vector<16x64xf32>
    %c0_21 = arith.constant 0 : index
    %c0_22 = arith.constant 0 : index
    %34 = vector.load %arg9[%c0_21, %c0_22] : memref<1x64xf32, #tpu.memory_space<vmem>>, vector<1x64xf32>
    %35 = vector.broadcast %34 : vector<1x64xf32> to vector<16x64xf32>
    %36 = arith.addf %33, %35 : vector<16x64xf32>
    %cst_23 = arith.constant 0.000000e+00 : f32
    %37 = vector.broadcast %cst_23 : f32 to vector<16x64xf32>
    %38 = arith.maximumf %36, %37 : vector<16x64xf32>
    %39 = arith.truncf %38 : vector<16x64xf32> to vector<16x64xbf16>
    %c0_24 = arith.constant 0 : index
    %c0_25 = arith.constant 0 : index
    %40 = vector.load %arg10[%c0_24, %c0_25] : memref<64x128xbf16, #tpu.memory_space<vmem>>, vector<64x128xbf16>
    %cst_26 = arith.constant dense<0.000000e+00> : vector<16x128xf32>
    %41 = tpu.matmul %39, %40, %cst_26 {dimension_numbers = #tpu.dot_dimension_numbers<[1], [0], [0], [1], [0, 0, 1, 1], [], []>} : vector<16x64xbf16>, vector<64x128xbf16>, vector<16x128xf32> -> vector<16x128xf32>
    %c0_27 = arith.constant 0 : index
    %c0_28 = arith.constant 0 : index
    %42 = vector.load %arg11[%c0_27, %c0_28] : memref<1x128xf32, #tpu.memory_space<vmem>>, vector<1x128xf32>
    %43 = vector.broadcast %42 : vector<1x128xf32> to vector<16x128xf32>
    %44 = arith.addf %41, %43 : vector<16x128xf32>
    %cst_29 = arith.constant 0.000000e+00 : f32
    %45 = vector.broadcast %cst_29 : f32 to vector<16x128xf32>
    %46 = arith.maximumf %44, %45 : vector<16x128xf32>
    %47 = arith.truncf %46 : vector<16x128xf32> to vector<16x128xbf16>
    %c0_30 = arith.constant 0 : index
    %c0_31 = arith.constant 0 : index
    %48 = vector.load %arg12[%c0_30, %c0_31] : memref<128x64xbf16, #tpu.memory_space<vmem>>, vector<128x64xbf16>
    %cst_32 = arith.constant dense<0.000000e+00> : vector<16x64xf32>
    %49 = tpu.matmul %47, %48, %cst_32 {dimension_numbers = #tpu.dot_dimension_numbers<[1], [0], [0], [1], [0, 0, 1, 1], [], []>} : vector<16x128xbf16>, vector<128x64xbf16>, vector<16x64xf32> -> vector<16x64xf32>
    %c0_33 = arith.constant 0 : index
    %c0_34 = arith.constant 0 : index
    %50 = vector.load %arg13[%c0_33, %c0_34] : memref<1x64xf32, #tpu.memory_space<vmem>>, vector<1x64xf32>
    %51 = vector.broadcast %50 : vector<1x64xf32> to vector<16x64xf32>
    %52 = arith.addf %49, %51 : vector<16x64xf32>
    %cst_35 = arith.constant 0.000000e+00 : f32
    %53 = vector.broadcast %cst_35 : f32 to vector<16x64xf32>
    %54 = arith.maximumf %52, %53 : vector<16x64xf32>
    %c0_36 = arith.constant 0 : index
    %c0_37 = arith.constant 0 : index
    %55 = vector.load %arg14[%c0_36, %c0_37] : memref<1x64xf32, #tpu.memory_space<vmem>>, vector<1x64xf32>
    %56 = vector.broadcast %55 : vector<1x64xf32> to vector<16x64xf32>
    %57 = arith.mulf %54, %56 : vector<16x64xf32>
    %cst_38 = arith.constant dense<0.000000e+00> : vector<16xf32>
    %58 = vector.multi_reduction <add>, %57, %cst_38 [1] : vector<16x64xf32> to vector<16xf32>
    %59 = vector.shape_cast %58 : vector<16xf32> to vector<16x1xf32>
    %c0_39 = arith.constant 0 : index
    %c0_40 = arith.constant 0 : index
    %60 = vector.load %arg15[%c0_39, %c0_40] : memref<1x1xf32, #tpu.memory_space<vmem>>, vector<1x1xf32>
    %61 = vector.broadcast %60 : vector<1x1xf32> to vector<16x1xf32>
    %62 = arith.addf %59, %61 : vector<16x1xf32>
    %63 = arith.negf %62 : vector<16x1xf32>
    %64 = math.exp %63 : vector<16x1xf32>
    %cst_41 = arith.constant 1.000000e+00 : f32
    %65 = vector.broadcast %cst_41 : f32 to vector<16x1xf32>
    %66 = arith.addf %65, %64 : vector<16x1xf32>
    %67 = arith.divf %65, %66 : vector<16x1xf32>
    %68 = vector.shape_cast %67 : vector<16x1xf32> to vector<16x1xf32>
    %69 = vector.broadcast %68 : vector<16x1xf32> to vector<16x128xf32>
    %c0_42 = arith.constant 0 : index
    %c0_43 = arith.constant 0 : index
    %70 = vector.load %arg16[%c0_42, %c0_43] : memref<16x128xf32, #tpu.memory_space<vmem>>, vector<16x128xf32>
    tpu.vector_store %arg16[%c0_42, %c0_43], %69 {strides = array<i32>} : memref<16x128xf32, #tpu.memory_space<vmem>>, vector<16x128xf32>,
    return
  }
  func.func @transform_0(%arg0: i32) -> (i32, i32) {
    %c0_i32 = arith.constant 0 : i32
    %c0_i32_0 = arith.constant 0 : i32
    return %arg0, %c0_i32 : i32, i32
  }
  func.func @transform_1(%arg0: i32) -> (i32, i32) {
    %c0_i32 = arith.constant 0 : i32
    %c0_i32_0 = arith.constant 0 : i32
    %c0_i32_1 = arith.constant 0 : i32
    return %c0_i32, %c0_i32_0 : i32, i32
  }
  func.func @transform_2(%arg0: i32) -> (i32, i32) {
    %c0_i32 = arith.constant 0 : i32
    %c0_i32_0 = arith.constant 0 : i32
    %c0_i32_1 = arith.constant 0 : i32
    return %c0_i32, %c0_i32_0 : i32, i32
  }
  func.func @transform_3(%arg0: i32) -> (i32, i32) {
    %c0_i32 = arith.constant 0 : i32
    %c0_i32_0 = arith.constant 0 : i32
    %c0_i32_1 = arith.constant 0 : i32
    return %c0_i32, %c0_i32_0 : i32, i32
  }
  func.func @transform_4(%arg0: i32) -> (i32, i32) {
    %c0_i32 = arith.constant 0 : i32
    %c0_i32_0 = arith.constant 0 : i32
    %c0_i32_1 = arith.constant 0 : i32
    return %c0_i32, %c0_i32_0 : i32, i32
  }
  func.func @transform_5(%arg0: i32) -> (i32, i32) {
    %c0_i32 = arith.constant 0 : i32
    %c0_i32_0 = arith.constant 0 : i32
    %c0_i32_1 = arith.constant 0 : i32
    return %c0_i32, %c0_i32_0 : i32, i32
  }
  func.func @transform_6(%arg0: i32) -> (i32, i32) {
    %c0_i32 = arith.constant 0 : i32
    %c0_i32_0 = arith.constant 0 : i32
    %c0_i32_1 = arith.constant 0 : i32
    return %c0_i32, %c0_i32_0 : i32, i32
  }
  func.func @transform_7(%arg0: i32) -> (i32, i32) {
    %c0_i32 = arith.constant 0 : i32
    %c0_i32_0 = arith.constant 0 : i32
    %c0_i32_1 = arith.constant 0 : i32
    return %c0_i32, %c0_i32_0 : i32, i32
  }
  func.func @transform_8(%arg0: i32) -> (i32, i32) {
    %c0_i32 = arith.constant 0 : i32
    %c0_i32_0 = arith.constant 0 : i32
    %c0_i32_1 = arith.constant 0 : i32
    return %c0_i32, %c0_i32_0 : i32, i32
  }
  func.func @transform_9(%arg0: i32) -> (i32, i32) {
    %c0_i32 = arith.constant 0 : i32
    %c0_i32_0 = arith.constant 0 : i32
    %c0_i32_1 = arith.constant 0 : i32
    return %c0_i32, %c0_i32_0 : i32, i32
  }
  func.func @transform_10(%arg0: i32) -> (i32, i32) {
    %c0_i32 = arith.constant 0 : i32
    %c0_i32_0 = arith.constant 0 : i32
    %c0_i32_1 = arith.constant 0 : i32
    return %c0_i32, %c0_i32_0 : i32, i32
  }
  func.func @transform_11(%arg0: i32) -> (i32, i32) {
    %c0_i32 = arith.constant 0 : i32
    %c0_i32_0 = arith.constant 0 : i32
    %c0_i32_1 = arith.constant 0 : i32
    return %c0_i32, %c0_i32_0 : i32, i32
  }
  func.func @transform_12(%arg0: i32) -> (i32, i32) {
    %c0_i32 = arith.constant 0 : i32
    %c0_i32_0 = arith.constant 0 : i32
    %c0_i32_1 = arith.constant 0 : i32
    return %c0_i32, %c0_i32_0 : i32, i32
  }
  func.func @transform_13(%arg0: i32) -> (i32, i32) {
    %c0_i32 = arith.constant 0 : i32
    %c0_i32_0 = arith.constant 0 : i32
    %c0_i32_1 = arith.constant 0 : i32
    return %c0_i32, %c0_i32_0 : i32, i32
  }
  func.func @transform_14(%arg0: i32) -> (i32, i32) {
    %c0_i32 = arith.constant 0 : i32
    %c0_i32_0 = arith.constant 0 : i32
    %c0_i32_1 = arith.constant 0 : i32
    return %c0_i32, %c0_i32_0 : i32, i32
  }
  func.func @transform_15(%arg0: i32) -> (i32, i32) {
    %c0_i32 = arith.constant 0 : i32
    %c0_i32_0 = arith.constant 0 : i32
    return %arg0, %c0_i32 : i32, i32
  }
}

module attributes {stable_mosaic.version = 11 : i64} {
  func.func @chess_cnn_kernel(%arg0: i32, %arg1: memref<16x384xf32, #tpu.memory_space<vmem>>, %arg2: memref<384x800xbf16, #tpu.memory_space<vmem>>, %arg3: memref<1x800xf32, #tpu.memory_space<vmem>>, %arg4: memref<800x512xbf16, #tpu.memory_space<vmem>>, %arg5: memref<1x512xf32, #tpu.memory_space<vmem>>, %arg6: memref<512x256xbf16, #tpu.memory_space<vmem>>, %arg7: memref<1x256xf32, #tpu.memory_space<vmem>>, %arg8: memref<256x256xbf16, #tpu.memory_space<vmem>>, %arg9: memref<1x64xf32, #tpu.memory_space<vmem>>, %arg10: memref<64x128xbf16, #tpu.memory_space<vmem>>, %arg11: memref<1x128xf32, #tpu.memory_space<vmem>>, %arg12: memref<128x64xbf16, #tpu.memory_space<vmem>>, %arg13: memref<1x64xf32, #tpu.memory_space<vmem>>, %arg14: memref<1x64xf32, #tpu.memory_space<vmem>>, %arg15: memref<1x1xf32, #tpu.memory_space<vmem>>, %arg16: memref<16x128xf32, #tpu.memory_space<vmem>>) attributes {dimension_semantics = [#tpu.dimension_semantics<parallel>], iteration_bounds = array<i64: 1>, scalar_prefetch = 0 : i64, scratch_operands = 0 : i64, tpu.core_type = #tpu.core_type<tc>, window_params = [{transform_indices = @transform_0, window_bounds = array<i64: 16, 384>}, {pipeline_mode = #tpu.pipeline_mode<synchronous>, transform_indices = @transform_1, window_bounds = array<i64: 384, 800>}, {pipeline_mode = #tpu.pipeline_mode<synchronous>, transform_indices = @transform_2, window_bounds = array<i64: 1, 800>}, {pipeline_mode = #tpu.pipeline_mode<synchronous>, transform_indices = @transform_3, window_bounds = array<i64: 800, 512>}, {pipeline_mode = #tpu.pipeline_mode<synchronous>, transform_indices = @transform_4, window_bounds = array<i64: 1, 512>}, {pipeline_mode = #tpu.pipeline_mode<synchronous>, transform_indices = @transform_5, window_bounds = array<i64: 512, 256>}, {pipeline_mode = #tpu.pipeline_mode<synchronous>, transform_indices = @transform_6, window_bounds = array<i64: 1, 256>}, {pipeline_mode = #tpu.pipeline_mode<synchronous>, transform_indices = @transform_7, window_bounds = array<i64: 256, 256>}, {pipeline_mode = #tpu.pipeline_mode<synchronous>, transform_indices = @transform_8, window_bounds = array<i64: 1, 64>}, {pipeline_mode = #tpu.pipeline_mode<synchronous>, transform_indices = @transform_9, window_bounds = array<i64: 64, 128>}, {pipeline_mode = #tpu.pipeline_mode<synchronous>, transform_indices = @transform_10, window_bounds = array<i64: 1, 128>}, {pipeline_mode = #tpu.pipeline_mode<synchronous>, transform_indices = @transform_11, window_bounds = array<i64: 128, 64>}, {pipeline_mode = #tpu.pipeline_mode<synchronous>, transform_indices = @transform_12, window_bounds = array<i64: 1, 64>}, {pipeline_mode = #tpu.pipeline_mode<synchronous>, transform_indices = @transform_13, window_bounds = array<i64: 1, 64>}, {pipeline_mode = #tpu.pipeline_mode<synchronous>, transform_indices = @transform_14, window_bounds = array<i64: 1, 1>}, {transform_indices = @transform_15, window_bounds = array<i64: 16, 128>}]} {
    %c0 = arith.constant 0 : index
    %c0_0 = arith.constant 0 : index
    %0 = vector.load %arg1[%c0, %c0_0] : memref<16x384xf32, #tpu.memory_space<vmem>>, vector<16x384xf32>
    %1 = arith.truncf %0 : vector<16x384xf32> to vector<16x384xbf16>
    %c0_1 = arith.constant 0 : index
    %c0_2 = arith.constant 0 : index
    %2 = vector.load %arg2[%c0_1, %c0_2] : memref<384x800xbf16, #tpu.memory_space<vmem>>, vector<384x800xbf16>
    %cst = arith.constant dense<0.000000e+00> : vector<16x800xf32>
    %3 = tpu.matmul %1, %2, %cst {dimension_numbers = #tpu.dot_dimension_numbers<[1], [0], [0], [1], [0, 0, 1, 1], [], []>} : vector<16x384xbf16>, vector<384x800xbf16>, vector<16x800xf32> -> vector<16x800xf32>
    %c0_3 = arith.constant 0 : index
    %c0_4 = arith.constant 0 : index
    %4 = vector.load %arg3[%c0_3, %c0_4] : memref<1x800xf32, #tpu.memory_space<vmem>>, vector<1x800xf32>
    %5 = vector.broadcast %4 : vector<1x800xf32> to vector<16x800xf32>
    %6 = arith.addf %3, %5 : vector<16x800xf32>
    %cst_5 = arith.constant 0.000000e+00 : f32
    %7 = vector.broadcast %cst_5 : f32 to vector<16x800xf32>
    %8 = arith.maximumf %6, %7 : vector<16x800xf32>
    %9 = arith.truncf %8 : vector<16x800xf32> to vector<16x800xbf16>
    %c0_6 = arith.constant 0 : index
    %c0_7 = arith.constant 0 : index
    %10 = vector.load %arg4[%c0_6, %c0_7] : memref<800x512xbf16, #tpu.memory_space<vmem>>, vector<800x512xbf16>
    %cst_8 = arith.constant dense<0.000000e+00> : vector<16x512xf32>
    %11 = tpu.matmul %9, %10, %cst_8 {dimension_numbers = #tpu.dot_dimension_numbers<[1], [0], [0], [1], [0, 0, 1, 1], [], []>} : vector<16x800xbf16>, vector<800x512xbf16>, vector<16x512xf32> -> vector<16x512xf32>
    %c0_9 = arith.constant 0 : index
    %c0_10 = arith.constant 0 : index
    %12 = vector.load %arg5[%c0_9, %c0_10] : memref<1x512xf32, #tpu.memory_space<vmem>>, vector<1x512xf32>
    %13 = vector.broadcast %12 : vector<1x512xf32> to vector<16x512xf32>
    %14 = arith.addf %11, %13 : vector<16x512xf32>
    %cst_11 = arith.constant 0.000000e+00 : f32
    %15 = vector.broadcast %cst_11 : f32 to vector<16x512xf32>
    %16 = arith.maximumf %14, %15 : vector<16x512xf32>
    %17 = arith.truncf %16 : vector<16x512xf32> to vector<16x512xbf16>
    %c0_12 = arith.constant 0 : index
    %c0_13 = arith.constant 0 : index
    %18 = vector.load %arg6[%c0_12, %c0_13] : memref<512x256xbf16, #tpu.memory_space<vmem>>, vector<512x256xbf16>
    %cst_14 = arith.constant dense<0.000000e+00> : vector<16x256xf32>
    %19 = tpu.matmul %17, %18, %cst_14 {dimension_numbers = #tpu.dot_dimension_numbers<[1], [0], [0], [1], [0, 0, 1, 1], [], []>} : vector<16x512xbf16>, vector<512x256xbf16>, vector<16x256xf32> -> vector<16x256xf32>
    %c0_15 = arith.constant 0 : index
    %c0_16 = arith.constant 0 : index
    %20 = vector.load %arg7[%c0_15, %c0_16] : memref<1x256xf32, #tpu.memory_space<vmem>>, vector<1x256xf32>
    %21 = vector.broadcast %20 : vector<1x256xf32> to vector<16x256xf32>
    %22 = arith.addf %19, %21 : vector<16x256xf32>
    %cst_17 = arith.constant 0.000000e+00 : f32
    %23 = vector.broadcast %cst_17 : f32 to vector<16x256xf32>
    %24 = arith.maximumf %22, %23 : vector<16x256xf32>
    %25 = arith.truncf %24 : vector<16x256xf32> to vector<16x256xbf16>
    %c0_18 = arith.constant 0 : index
    %c0_19 = arith.constant 0 : index
    %26 = vector.load %arg8[%c0_18, %c0_19] : memref<256x256xbf16, #tpu.memory_space<vmem>>, vector<256x256xbf16>
    %cst_20 = arith.constant dense<0.000000e+00> : vector<16x256xf32>
    %27 = tpu.matmul %25, %26, %cst_20 {dimension_numbers = #tpu.dot_dimension_numbers<[1], [0], [0], [1], [0, 0, 1, 1], [], []>} : vector<16x256xbf16>, vector<256x256xbf16>, vector<16x256xf32> -> vector<16x256xf32>
    %28 = vector.extract_strided_slice %27 {offsets = [0, 0], sizes = [16, 128], strides = [1, 1]} : vector<16x256xf32> to vector<16x128xf32>
    %29 = vector.extract_strided_slice %27 {offsets = [0, 128], sizes = [16, 128], strides = [1, 1]} : vector<16x256xf32> to vector<16x128xf32>
    %30 = arith.maximumf %28, %29 : vector<16x128xf32>
    %31 = vector.extract_strided_slice %30 {offsets = [0, 0], sizes = [16, 64], strides = [1, 1]} : vector<16x128xf32> to vector<16x64xf32>
    %32 = vector.extract_strided_slice %30 {offsets = [0, 64], sizes = [16, 64], strides = [1, 1]} : vector<16x128xf32> to vector<16x64xf32>
    %33 = arith.maximumf %31, %32 : vector<16x64xf32>
    %c0_21 = arith.constant 0 : index
    %c0_22 = arith.constant 0 : index
    %34 = vector.load %arg9[%c0_21, %c0_22] : memref<1x64xf32, #tpu.memory_space<vmem>>, vector<1x64xf32>
    %35 = vector.broadcast %34 : vector<1x64xf32> to vector<16x64xf32>
    %36 = arith.addf %33, %35 : vector<16x64xf32>
    %cst_23 = arith.constant 0.000000e+00 : f32
    %37 = vector.broadcast %cst_23 : f32 to vector<16x64xf32>
    %38 = arith.maximumf %36, %37 : vector<16x64xf32>
    %39 = arith.truncf %38 : vector<16x64xf32> to vector<16x64xbf16>
    %c0_24 = arith.constant 0 : index
    %c0_25 = arith.constant 0 : index
    %40 = vector.load %arg10[%c0_24, %c0_25] : memref<64x128xbf16, #tpu.memory_space<vmem>>, vector<64x128xbf16>
    %cst_26 = arith.constant dense<0.000000e+00> : vector<16x128xf32>
    %41 = tpu.matmul %39, %40, %cst_26 {dimension_numbers = #tpu.dot_dimension_numbers<[1], [0], [0], [1], [0, 0, 1, 1], [], []>} : vector<16x64xbf16>, vector<64x128xbf16>, vector<16x128xf32> -> vector<16x128xf32>
    %c0_27 = arith.constant 0 : index
    %c0_28 = arith.constant 0 : index
    %42 = vector.load %arg11[%c0_27, %c0_28] : memref<1x128xf32, #tpu.memory_space<vmem>>, vector<1x128xf32>
    %43 = vector.broadcast %42 : vector<1x128xf32> to vector<16x128xf32>
    %44 = arith.addf %41, %43 : vector<16x128xf32>
    %cst_29 = arith.constant 0.000000e+00 : f32
    %45 = vector.broadcast %cst_29 : f32 to vector<16x128xf32>
    %46 = arith.maximumf %44, %45 : vector<16x128xf32>
    %47 = arith.truncf %46 : vector<16x128xf32> to vector<16x128xbf16>
    %c0_30 = arith.constant 0 : index
    %c0_31 = arith.constant 0 : index
    %48 = vector.load %arg12[%c0_30, %c0_31] : memref<128x64xbf16, #tpu.memory_space<vmem>>, vector<128x64xbf16>
    %cst_32 = arith.constant dense<0.000000e+00> : vector<16x64xf32>
    %49 = tpu.matmul %47, %48, %cst_32 {dimension_numbers = #tpu.dot_dimension_numbers<[1], [0], [0], [1], [0, 0, 1, 1], [], []>} : vector<16x128xbf16>, vector<128x64xbf16>, vector<16x64xf32> -> vector<16x64xf32>
    %c0_33 = arith.constant 0 : index
    %c0_34 = arith.constant 0 : index
    %50 = vector.load %arg13[%c0_33, %c0_34] : memref<1x64xf32, #tpu.memory_space<vmem>>, vector<1x64xf32>
    %51 = vector.broadcast %50 : vector<1x64xf32> to vector<16x64xf32>
    %52 = arith.addf %49, %51 : vector<16x64xf32>
    %cst_35 = arith.constant 0.000000e+00 : f32
    %53 = vector.broadcast %cst_35 : f32 to vector<16x64xf32>
    %54 = arith.maximumf %52, %53 : vector<16x64xf32>
    %c0_36 = arith.constant 0 : index
    %c0_37 = arith.constant 0 : index
    %55 = vector.load %arg14[%c0_36, %c0_37] : memref<1x64xf32, #tpu.memory_space<vmem>>, vector<1x64xf32>
    %56 = vector.broadcast %55 : vector<1x64xf32> to vector<16x64xf32>
    %57 = arith.mulf %54, %56 : vector<16x64xf32>
    %cst_38 = arith.constant dense<0.000000e+00> : vector<16xf32>
    %58 = vector.multi_reduction <add>, %57, %cst_38 [1] : vector<16x64xf32> to vector<16xf32>
    %59 = vector.shape_cast %58 : vector<16xf32> to vector<16x1xf32>
    %c0_39 = arith.constant 0 : index
    %c0_40 = arith.constant 0 : index
    %60 = vector.load %arg15[%c0_39, %c0_40] : memref<1x1xf32, #tpu.memory_space<vmem>>, vector<1x1xf32>
    %61 = vector.broadcast %60 : vector<1x1xf32> to vector<16x1xf32>
    %62 = arith.addf %59, %61 : vector<16x1xf32>
    %63 = arith.negf %62 : vector<16x1xf32>
    %64 = math.exp %63 : vector<16x1xf32>
    %cst_41 = arith.constant 1.000000e+00 : f32
    %65 = vector.broadcast %cst_41 : f32 to vector<16x1xf32>
    %66 = arith.addf %65, %64 : vector<16x1xf32>
    %67 = arith.divf %65, %66 : vector<16x1xf32>
    %68 = vector.shape_cast %67 : vector<16x1xf32> to vector<16x1xf32>
    %69 = vector.broadcast %68 : vector<16x1xf32> to vector<16x128xf32>
    %c0_42 = arith.constant 0 : index
    %c0_43 = arith.constant 0 : index
    %70 = vector.load %arg16[%c0_42, %c0_43] : memref<16x128xf32, #tpu.memory_space<vmem>>, vector<16x128xf32>
    tpu.vector_store %arg16[%c0_42, %c0_43], %69 {strides = array<i32>} : memref<16x128xf32, #tpu.memory_space<vmem>>, vector<16x128xf32>,
    return
  }
  func.func @transform_0(%arg0: i32) -> (i32, i32) {
    %c0_i32 = arith.constant 0 : i32
    %c0_i32_0 = arith.constant 0 : i32
    return %arg0, %c0_i32 : i32, i32
  }
  func.func @transform_1(%arg0: i32) -> (i32, i32) {
    %c0_i32 = arith.constant 0 : i32
    %c0_i32_0 = arith.constant 0 : i32
    %c0_i32_1 = arith.constant 0 : i32
    return %c0_i32, %c0_i32_0 : i32, i32
  }
  func.func @transform_2(%arg0: i32) -> (i32, i32) {
    %c0_i32 = arith.constant 0 : i32
    %c0_i32_0 = arith.constant 0 : i32
    %c0_i32_1 = arith.constant 0 : i32
    return %c0_i32, %c0_i32_0 : i32, i32
  }
  func.func @transform_3(%arg0: i32) -> (i32, i32) {
    %c0_i32 = arith.constant 0 : i32
    %c0_i32_0 = arith.constant 0 : i32
    %c0_i32_1 = arith.constant 0 : i32
    return %c0_i32, %c0_i32_0 : i32, i32
  }
  func.func @transform_4(%arg0: i32) -> (i32, i32) {
    %c0_i32 = arith.constant 0 : i32
    %c0_i32_0 = arith.constant 0 : i32
    %c0_i32_1 = arith.constant 0 : i32
    return %c0_i32, %c0_i32_0 : i32, i32
  }
  func.func @transform_5(%arg0: i32) -> (i32, i32) {
    %c0_i32 = arith.constant 0 : i32
    %c0_i32_0 = arith.constant 0 : i32
    %c0_i32_1 = arith.constant 0 : i32
    return %c0_i32, %c0_i32_0 : i32, i32
  }
  func.func @transform_6(%arg0: i32) -> (i32, i32) {
    %c0_i32 = arith.constant 0 : i32
    %c0_i32_0 = arith.constant 0 : i32
    %c0_i32_1 = arith.constant 0 : i32
    return %c0_i32, %c0_i32_0 : i32, i32
  }
  func.func @transform_7(%arg0: i32) -> (i32, i32) {
    %c0_i32 = arith.constant 0 : i32
    %c0_i32_0 = arith.constant 0 : i32
    %c0_i32_1 = arith.constant 0 : i32
    return %c0_i32, %c0_i32_0 : i32, i32
  }
  func.func @transform_8(%arg0: i32) -> (i32, i32) {
    %c0_i32 = arith.constant 0 : i32
    %c0_i32_0 = arith.constant 0 : i32
    %c0_i32_1 = arith.constant 0 : i32
    return %c0_i32, %c0_i32_0 : i32, i32
  }
  func.func @transform_9(%arg0: i32) -> (i32, i32) {
    %c0_i32 = arith.constant 0 : i32
    %c0_i32_0 = arith.constant 0 : i32
    %c0_i32_1 = arith.constant 0 : i32
    return %c0_i32, %c0_i32_0 : i32, i32
  }
  func.func @transform_10(%arg0: i32) -> (i32, i32) {
    %c0_i32 = arith.constant 0 : i32
    %c0_i32_0 = arith.constant 0 : i32
    %c0_i32_1 = arith.constant 0 : i32
    return %c0_i32, %c0_i32_0 : i32, i32
  }
  func.func @transform_11(%arg0: i32) -> (i32, i32) {
    %c0_i32 = arith.constant 0 : i32
    %c0_i32_0 = arith.constant 0 : i32
    %c0_i32_1 = arith.constant 0 : i32
    return %c0_i32, %c0_i32_0 : i32, i32
  }
  func.func @transform_12(%arg0: i32) -> (i32, i32) {
    %c0_i32 = arith.constant 0 : i32
    %c0_i32_0 = arith.constant 0 : i32
    %c0_i32_1 = arith.constant 0 : i32
    return %c0_i32, %c0_i32_0 : i32, i32
  }
  func.func @transform_13(%arg0: i32) -> (i32, i32) {
    %c0_i32 = arith.constant 0 : i32
    %c0_i32_0 = arith.constant 0 : i32
    %c0_i32_1 = arith.constant 0 : i32
    return %c0_i32, %c0_i32_0 : i32, i32
  }
  func.func @transform_14(%arg0: i32) -> (i32, i32) {
    %c0_i32 = arith.constant 0 : i32
    %c0_i32_0 = arith.constant 0 : i32
    %c0_i32_1 = arith.constant 0 : i32
    return %c0_i32, %c0_i32_0 : i32, i32
  }
  func.func @transform_15(%arg0: i32) -> (i32, i32) {
    %c0_i32 = arith.constant 0 : i32
    %c0_i32_0 = arith.constant 0 : i32
    return %arg0, %c0_i32 : i32, i32
  }
}

</mosaic_0001>

<bundles_post_ra>
// kernel: tpu_custom_call.1
= control target key start
LH: loop header
LB: loop body
LE: loop exit
PB: predicated region body
PF: predicated region fallthrough
CT: control target
= control target key end

     0   :  { %s7105_s0 = inlined_call_operand.vmem [shape: f32[16,384], index: 0, kind: input, shape index: {}]   ;;  %s7106_s1 = inlined_call_operand.vmem [shape: bf16[384,800], index: 1, kind: input, shape index: {}]   ;;  %s7107_s2 = inlined_call_operand.vmem [shape: f32[1,800], index: 2, kind: input, shape index: {}]   ;;  %s7108_s3 = inlined_call_operand.vmem [shape: bf16[800,512], index: 3, kind: input, shape index: {}]   ;;  %s7109_s4 = inlined_call_operand.vmem [shape: f32[1,512], index: 4, kind: input, shape index: {}]   ;;  %s7110_s5 = inlined_call_operand.vmem [shape: bf16[512,256], index: 5, kind: input, shape index: {}]   ;;  %s7111_s6 = inlined_call_operand.vmem [shape: f32[1,256], index: 6, kind: input, shape index: {}]   ;;  %s7112_s7 = inlined_call_operand.vmem [shape: bf16[256,256], index: 7, kind: input, shape index: {}]   ;;  %s7113_s8 = inlined_call_operand.vmem [shape: f32[1,64], index: 8, kind: input, shape index: {}]   ;;  %s7114_s9 = inlined_call_operand.vmem [shape: bf16[64,128], index: 9, kind: input, shape index: {}]   ;;  %s7115_s10 = inlined_call_operand.vmem [shape: f32[1,128], index: 10, kind: input, shape index: {}]   ;;  %s7116_s11 = inlined_call_operand.vmem [shape: bf16[128,64], index: 11, kind: input, shape index: {}]   ;;  %s7117_s12 = inlined_call_operand.vmem [shape: f32[1,64], index: 12, kind: input, shape index: {}]   ;;  %s7118_s13 = inlined_call_operand.vmem [shape: f32[1,64], index: 13, kind: input, shape index: {}]   ;;  %s7119_s14 = inlined_call_operand.<no memory space> [shape: f32[1,1], index: 14, kind: input, shape index: {}]   ;;  %s7120_s15 = inlined_call_operand.hbm [shape: f32[16,128], index: 15, kind: output, shape index: {}]  }
   0x1   :  { %v20_v0 = vstv %s7119_s14 }
   0x2   :  { %21 = vst [vmem:[#allocation2] sm:$0x1] %v20_v0 }
   0x3   :  { %v4703_v1 = vld [vmem:[%s7106_s1 + $0x18c] ss:$28 sps:$4 sm:$0xff]   ;;  %v5429_v3 = vmov 0   ;;  %v4709_v6 = vld [vmem:[%s7106_s1 + $0x154] ss:$28 sps:$4 sm:$0xff]   ;;  %v58_v52 = vld [vmem:[%s7105_s0 + $0x20] sm:$0xff] }
   0x4   :  { %v4705_v2 = vld [vmem:[%s7106_s1 + $0x50c] ss:$28 sps:$4 sm:$0xff]   ;;  %1231 = vmatprep.mubr.bf16.mxu1 %v5429_v3  ;;  %4701 = vset.pattern.permute.xlu0 %v5429_v3  ;;  %v4711_v7 = vld [vmem:[%s7106_s1 + $0x4d4] ss:$28 sps:$4 sm:$0xff]   ;;  %v4715_v10 = vld [vmem:[%s7106_s1 + $0x11c] ss:$28 sps:$4 sm:$0xff]  }
   0x5   :  { %1156 = vmatprep.subr.bf16.mxu0 %v4703_v1  ;;  %v4707_v4 = vld [vmem:[%s7106_s1 + $0x188] ss:$28 sps:$4 sm:$0xff]   ;;  %4702 = vset.pattern.permute.xlu1 %v5429_v3  ;;  %v4713_v8 = vld [vmem:[%s7106_s1 + $0x150] ss:$28 sps:$4 sm:$0xff]   ;;  %v4717_v11 = vld [vmem:[%s7106_s1 + $0x49c] ss:$28 sps:$4 sm:$0xff]  }
   0x6   :  { %v4708_v5 = vld [vmem:[%s7106_s1 + $0x508] ss:$28 sps:$4 sm:$0xff]   ;;  %1199 = vmatprep.subr.bf16.mxu1 %v4705_v2  ;;  %1157 = vmatpush1.bf16.msra.mxu0 %v4707_v4  ;;  %v4714_v9 = vld [vmem:[%s7106_s1 + $0x4d0] ss:$28 sps:$4 sm:$0xff]   ;;  %v4719_v12 = vld [vmem:[%s7106_s1 + $0x118] ss:$28 sps:$4 sm:$0xff]  }
   0x7   :  { %1200 = vmatpush1.bf16.msra.mxu1 %v4708_v5  ;;  %1158 = vmatprep.subr.bf16.mxu0 %v4709_v6  ;;  %v4720_v13 = vld [vmem:[%s7106_s1 + $0x498] ss:$28 sps:$4 sm:$0xff]   ;;  %v4721_v14 = vld [vmem:[%s7106_s1 + $0xe4] ss:$28 sps:$4 sm:$0xff]   ;;  %v4727_v18 = vld [vmem:[%s7106_s1 + $0xac] ss:$28 sps:$4 sm:$0xff]  }
   0x8   :  { %1201 = vmatprep.subr.bf16.mxu1 %v4711_v7  ;;  %v4723_v15 = vld [vmem:[%s7106_s1 + $0x464] ss:$28 sps:$4 sm:$0xff]   ;;  %v4729_v19 = vld [vmem:[%s7106_s1 + $0x42c] ss:$28 sps:$4 sm:$0xff]   ;;  %v4733_v22 = vld [vmem:[%s7106_s1 + $0x74] ss:$28 sps:$4 sm:$0xff]  }
   0x9   :  { %v4725_v16 = vld [vmem:[%s7106_s1 + $0xe0] ss:$28 sps:$4 sm:$0xff]   ;;  %v4731_v20 = vld [vmem:[%s7106_s1 + $0xa8] ss:$28 sps:$4 sm:$0xff]   ;;  %v4735_v23 = vld [vmem:[%s7106_s1 + $0x3f4] ss:$28 sps:$4 sm:$0xff]  }
   0xa   :  { %1159 = vmatpush1.bf16.msra.mxu0 %v4713_v8  ;;  %v4726_v17 = vld [vmem:[%s7106_s1 + $0x460] ss:$28 sps:$4 sm:$0xff]   ;;  %v4732_v21 = vld [vmem:[%s7106_s1 + $0x428] ss:$28 sps:$4 sm:$0xff]   ;;  %v4737_v24 = vld [vmem:[%s7106_s1 + $0x70] ss:$28 sps:$4 sm:$0xff]  }
   0xb   :  { %1202 = vmatpush1.bf16.msra.mxu1 %v4714_v9  ;;  %1160 = vmatprep.subr.bf16.mxu0 %v4715_v10  ;;  %v4738_v25 = vld [vmem:[%s7106_s1 + $0x3f0] ss:$28 sps:$4 sm:$0xff]   ;;  %v4739_v26 = vld [vmem:[%s7106_s1 + $0x3c] ss:$28 sps:$4 sm:$0xff]   ;;  %v4745_v30 = vld [vmem:[%s7106_s1 + $0x4] ss:$28 sps:$4 sm:$0xff]  }
   0xc   :  { %1203 = vmatprep.subr.bf16.mxu1 %v4717_v11  ;;  %v4741_v27 = vld [vmem:[%s7106_s1 + $0x3bc] ss:$28 sps:$4 sm:$0xff]   ;;  %v4747_v31 = vld [vmem:[%s7106_s1 + $0x384] ss:$28 sps:$4 sm:$0xff]   ;;  %v56_v34 = vld [vmem:[%s7105_s0 + $0x10] sm:$0xff]  ;;  %vm5431_vm0 = vmmov 0  }
   0xd   :  { %v4743_v28 = vld [vmem:[%s7106_s1 + $0x38] ss:$28 sps:$4 sm:$0xff]   ;;  %v4749_v32 = vld [vmem:[%s7106_s1] ss:$28 sps:$4 sm:$0xff]   ;;  %v59_v35 = vld [vmem:[%s7105_s0 + $0x28] sm:$0xff] }
   0xe   :  { %1161 = vmatpush1.bf16.msra.mxu0 %v4719_v12  ;;  %v4744_v29 = vld [vmem:[%s7106_s1 + $0x3b8] ss:$28 sps:$4 sm:$0xff]   ;;  %v4750_v33 = vld [vmem:[%s7106_s1 + $0x380] ss:$28 sps:$4 sm:$0xff]   ;;  %v4751_v36 = vld [vmem:[%s7106_s1 + $0x34c] ss:$28 sps:$4 sm:$0xff]   ;;  %v5633_v39 = vpack.c.bf16 %v59_v35, %v56_v34 }
   0xf   :  { %1204 = vmatpush1.bf16.msra.mxu1 %v4720_v13  ;;  %1162 = vmatprep.subr.bf16.mxu0 %v4721_v14  ;;  %v4755_v37 = vld [vmem:[%s7106_s1 + $0x194] ss:$28 sps:$4 sm:$0xff]   ;;  %v4756_v40 = vld [vmem:[%s7106_s1 + $0x348] ss:$28 sps:$4 sm:$0xff]   ;;  %v4761_v42 = vld [vmem:[%s7106_s1 + $0x15c] ss:$28 sps:$4 sm:$0xff]  }
  0x10   :  { %1205 = vmatprep.subr.bf16.mxu1 %v4723_v15  ;;  %v4753_v38 = vld [vmem:[%s7106_s1 + $0x190] ss:$28 sps:$4 sm:$0xff]   ;;  %v4759_v43 = vld [vmem:[%s7106_s1 + $0x158] ss:$28 sps:$4 sm:$0xff]   ;;  %v4767_v46 = vld [vmem:[%s7106_s1 + $0x124] ss:$28 sps:$4 sm:$0xff]  }
  0x11   :  { %v4757_v41 = vld [vmem:[%s7106_s1 + $0x314] ss:$28 sps:$4 sm:$0xff]   ;;  %v4763_v45 = vld [vmem:[%s7106_s1 + $0x2dc] ss:$28 sps:$4 sm:$0xff]   ;;  %v4769_v49 = vld [vmem:[%s7106_s1 + $0x2a4] ss:$28 sps:$4 sm:$0xff]  }
  0x12   :  { %1163 = vmatpush1.bf16.msra.mxu0 %v4725_v16  ;;  %v4762_v44 = vld [vmem:[%s7106_s1 + $0x310] ss:$28 sps:$4 sm:$0xff]   ;;  %v4765_v47 = vld [vmem:[%s7106_s1 + $0x120] ss:$28 sps:$4 sm:$0xff]   ;;  %v4768_v48 = vld [vmem:[%s7106_s1 + $0x2d8] ss:$28 sps:$4 sm:$0xff]  }
  0x13   :  { %1206 = vmatpush1.bf16.msra.mxu1 %v4726_v17  ;;  %1164 = vmatprep.subr.bf16.mxu0 %v4727_v18  ;;  %v4773_v50 = vld [vmem:[%s7106_s1 + $0xec] ss:$28 sps:$4 sm:$0xff]   ;;  %v4774_v54 = vld [vmem:[%s7106_s1 + $0x2a0] ss:$28 sps:$4 sm:$0xff]   ;;  %v4779_v57 = vld [vmem:[%s7106_s1 + $0xb4] ss:$28 sps:$4 sm:$0xff]  }
  0x14   :  { %1207 = vmatprep.subr.bf16.mxu1 %v4729_v19  ;;  %v55_v51 = vld [vmem:[%s7105_s0 + $0x8] sm:$0xff]  ;;  %v4781_v60 = vld [vmem:[%s7106_s1 + $0x234] ss:$28 sps:$4 sm:$0xff]   ;;  %v4785_v61 = vld [vmem:[%s7106_s1 + $0x7c] ss:$28 sps:$4 sm:$0xff]  }
  0x15   :  { %v4771_v53 = vld [vmem:[%s7106_s1 + $0xe8] ss:$28 sps:$4 sm:$0xff]   ;;  %v5681_v55 = vpack.c.bf16 %v58_v52, %v55_v51  ;;  %v4777_v58 = vld [vmem:[%s7106_s1 + $0xb0] ss:$28 sps:$4 sm:$0xff]   ;;  %v4783_v62 = vld [vmem:[%s7106_s1 + $0x78] ss:$28 sps:$4 sm:$0xff]  }
  0x16   :  { %1165 = vmatpush1.bf16.msra.mxu0 %v4731_v20  ;;  %v4775_v56 = vld [vmem:[%s7106_s1 + $0x26c] ss:$28 sps:$4 sm:$0xff]   ;;  %v4787_v0 = vld [vmem:[%s7106_s1 + $0x1fc] ss:$28 sps:$4 sm:$0xff]   ;;  %v4791_v1 = vld [vmem:[%s7106_s1 + $0x44] ss:$28 sps:$4 sm:$0xff]  }
  0x17   :  { %1208 = vmatpush1.bf16.msra.mxu1 %v4732_v21  ;;  %1166 = vmatprep.subr.bf16.mxu0 %v4733_v22  ;;  %v4780_v59 = vld [vmem:[%s7106_s1 + $0x268] ss:$28 sps:$4 sm:$0xff]   ;;  %v4786_v63 = vld [vmem:[%s7106_s1 + $0x230] ss:$28 sps:$4 sm:$0xff]   ;;  %v4789_v2 = vld [vmem:[%s7106_s1 + $0x40] ss:$28 sps:$4 sm:$0xff]  }
  0x18   :  { %1209 = vmatprep.subr.bf16.mxu1 %v4735_v23  ;;  %1188 = vmatprep.mubr.bf16.mxu0 %v5681_v55  ;;  %v4792_v4 = vld [vmem:[%s7106_s1 + $0x1f8] ss:$28 sps:$4 sm:$0xff]   ;;  %v4793_v5 = vld [vmem:[%s7106_s1 + $0x1c4] ss:$28 sps:$4 sm:$0xff]   ;;  %v4797_v6 = vld [vmem:[%s7106_s1 + $0xc] ss:$28 sps:$4 sm:$0xff]  }
  0x19   :  { %v4795_v7 = vld [vmem:[%s7106_s1 + $0x8] ss:$28 sps:$4 sm:$0xff]   ;;  %v4798_v8 = vld [vmem:[%s7106_s1 + $0x1c0] ss:$28 sps:$4 sm:$0xff]   ;;  %v4801_v11 = vld [vmem:[%s7106_s1 + $0x354] ss:$28 sps:$4 sm:$0xff]  }
  0x1a   :  { %1167 = vmatpush1.bf16.msra.mxu0 %v4737_v24  ;;  %v54_v9 = vld [vmem:[%s7105_s0] sm:$0xff]  ;;  %v57_v10 = vld [vmem:[%s7105_s0 + $0x18] sm:$0xff]  ;;  %v4804_v12 = vld [vmem:[%s7106_s1 + $0x514] ss:$28 sps:$4 sm:$0xff]  }
  0x1b   :  { %1210 = vmatpush1.bf16.msra.mxu1 %v4738_v25  ;;  %1168 = vmatprep.subr.bf16.mxu0 %v4739_v26  ;;  %v5745_v13 = vpack.c.bf16 %v57_v10, %v54_v9  ;;  %v4799_v14 = vld [vmem:[%s7106_s1 + $0x350] ss:$28 sps:$4 sm:$0xff]   ;;  %v4807_v16 = vld [vmem:[%s7106_s1 + $0x31c] ss:$28 sps:$4 sm:$0xff]   ;;  %v4813_v20 = vld [vmem:[%s7106_s1 + $0x2e4] ss:$28 sps:$4 sm:$0xff]  }
  0x1c   :  { %1211 = vmatprep.subr.bf16.mxu1 %v4741_v27  ;;  %v4802_v15 = vld [vmem:[%s7106_s1 + $0x510] ss:$28 sps:$4 sm:$0xff]   ;;  %v4810_v17 = vld [vmem:[%s7106_s1 + $0x4dc] ss:$28 sps:$4 sm:$0xff]   ;;  %v4816_v21 = vld [vmem:[%s7106_s1 + $0x4a4] ss:$28 sps:$4 sm:$0xff]  }
  0x1d   :  { %v4805_v18 = vld [vmem:[%s7106_s1 + $0x318] ss:$28 sps:$4 sm:$0xff]   ;;  %v4811_v22 = vld [vmem:[%s7106_s1 + $0x2e0] ss:$28 sps:$4 sm:$0xff]   ;;  %v4819_v24 = vld [vmem:[%s7106_s1 + $0x2ac] ss:$28 sps:$4 sm:$0xff]  }
  0x1e   :  { %1169 = vmatpush1.bf16.msra.mxu0 %v4743_v28  ;;  %v4808_v19 = vld [vmem:[%s7106_s1 + $0x4d8] ss:$28 sps:$4 sm:$0xff]   ;;  %v4814_v23 = vld [vmem:[%s7106_s1 + $0x4a0] ss:$28 sps:$4 sm:$0xff]   ;;  %v4822_v25 = vld [vmem:[%s7106_s1 + $0x46c] ss:$28 sps:$4 sm:$0xff]  }
  0x1f   :  { %1212 = vmatpush1.bf16.msra.mxu1 %v4744_v29  ;;  %1170 = vmatprep.subr.bf16.mxu0 %v4745_v30  ;;  %v4817_v26 = vld [vmem:[%s7106_s1 + $0x2a8] ss:$28 sps:$4 sm:$0xff]   ;;  %v4825_v28 = vld [vmem:[%s7106_s1 + $0x274] ss:$28 sps:$4 sm:$0xff]   ;;  %v4850_v51 = vld [vmem:[%s7106_s1 + $0x160] ss:$28 sps:$4 sm:$0xff]  }
  0x20   :  { %1213 = vmatprep.subr.bf16.mxu1 %v4747_v31  ;;  %v4820_v27 = vld [vmem:[%s7106_s1 + $0x468] ss:$28 sps:$4 sm:$0xff]   ;;  %v4828_v29 = vld [vmem:[%s7106_s1 + $0x434] ss:$28 sps:$4 sm:$0xff]   ;;  %v4871_v52 = vld [vmem:[%s7106_s1 + $0x4e0] ss:$28 sps:$4 sm:$0xff]  }
  0x21   :  { %v4823_v30 = vld [vmem:[%s7106_s1 + $0x270] ss:$28 sps:$4 sm:$0xff]   ;;  %v4829_v34 = vld [vmem:[%s7106_s1 + $0x238] ss:$28 sps:$4 sm:$0xff]   ;;  %v4868_v9 = vld [vmem:[%s7106_s1 + $0x48] ss:$28 sps:$4 sm:$0xff]  }
  0x22   :  { %1171 = vmatpush1.bf16.msra.mxu0 %v4749_v32  ;;  %v4826_v31 = vld [vmem:[%s7106_s1 + $0x430] ss:$28 sps:$4 sm:$0xff]   ;;  %v4831_v32 = vld [vmem:[%s7106_s1 + $0x23c] ss:$28 sps:$4 sm:$0xff]  }
  0x23   :  { %1214 = vmatpush1.bf16.msra.mxu1 %v4750_v33  ;;  %1172 = vmatprep.subr.bf16.mxu0 %v4751_v36  ;;  %v4834_v33 = vld [vmem:[%s7106_s1 + $0x3fc] ss:$28 sps:$4 sm:$0xff]   ;;  %v4837_v36 = vld [vmem:[%s7106_s1 + $0x204] ss:$28 sps:$4 sm:$0xff]   ;;  %v4876_v10 = vld [vmem:[%s7106_s1 + $0x14] ss:$28 sps:$4 sm:$0xff]  }
  0x24   :  { %1242 = vmatprep.subr.bf16.mxu1 %v4755_v37  ;;  %v4832_v35 = vld [vmem:[%s7106_s1 + $0x3f8] ss:$28 sps:$4 sm:$0xff]   ;;  %v4840_v37 = vld [vmem:[%s7106_s1 + $0x3c4] ss:$28 sps:$4 sm:$0xff]  }
  0x26   :  { %1232 = vmatmul.mubr.bf16.vlgmr.msra.gmra.mxu1 %v5633_v39  ;;  %1173 = vmatpush2.bf16.msra.mxu0 %v4756_v40  ;;  %v4838_v40 = vld [vmem:[%s7106_s1 + $0x3c0] ss:$28 sps:$4 sm:$0xff]  }
  0x27   :  { %1243 = vmatpush1.bf16.msra.mxu1 %v4753_v38  ;;  %1174 = vmatprep.subr.bf16.mxu0 %v4757_v41  ;;  %v4835_v38 = vld [vmem:[%s7106_s1 + $0x200] ss:$28 sps:$4 sm:$0xff]   ;;  %v4843_v41 = vld [vmem:[%s7106_s1 + $0x1cc] ss:$28 sps:$4 sm:$0xff]  }
  0x28   :  { %1244 = vmatprep.subr.bf16.mxu1 %v4761_v42  ;;  %1274 = vmatprep.mubr.bf16.mxu1 %v5681_v55  ;;  %v4846_v42 = vld [vmem:[%s7106_s1 + $0x38c] ss:$28 sps:$4 sm:$0xff]  }
  0x2a   :  { %1175 = vmatpush2.bf16.msra.mxu0 %v4762_v44  ;;  %v4844_v44 = vld [vmem:[%s7106_s1 + $0x388] ss:$28 sps:$4 sm:$0xff]  }
  0x2b   :  { %1245 = vmatpush1.bf16.msra.mxu1 %v4759_v43  ;;  %1176 = vmatprep.subr.bf16.mxu0 %v4763_v45  ;;  %v4841_v43 = vld [vmem:[%s7106_s1 + $0x1c8] ss:$28 sps:$4 sm:$0xff]   ;;  %v4849_v45 = vld [vmem:[%s7106_s1 + $0x19c] ss:$28 sps:$4 sm:$0xff]  }
  0x2c   :  { %1246 = vmatprep.subr.bf16.mxu1 %v4767_v46  ;;  %v4867_v46 = vld [vmem:[%s7106_s1 + $0x51c] ss:$28 sps:$4 sm:$0xff]  }
  0x2e   :  { %1177 = vmatpush2.bf16.msra.mxu0 %v4768_v48  ;;  %v4852_v48 = vld [vmem:[%s7106_s1 + $0x164] ss:$28 sps:$4 sm:$0xff]  }
  0x2f   :  { %1247 = vmatpush1.bf16.msra.mxu1 %v4765_v47  ;;  %1178 = vmatprep.subr.bf16.mxu0 %v4769_v49  ;;  %v4847_v47 = vld [vmem:[%s7106_s1 + $0x198] ss:$28 sps:$4 sm:$0xff]  }
  0x30   :  { %1248 = vmatprep.subr.bf16.mxu1 %v4773_v50  ;;  %v4865_v49 = vld [vmem:[%s7106_s1 + $0x518] ss:$28 sps:$4 sm:$0xff]   ;;  %v4873_v50 = vld [vmem:[%s7106_s1 + $0x4e4] ss:$28 sps:$4 sm:$0xff]  }
  0x32   :  { %1179 = vmatpush2.bf16.msra.mxu0 %v4774_v54  ;;  %v4879_v54 = vld [vmem:[%s7106_s1 + $0x4ac] ss:$28 sps:$4 sm:$0xff]  }
  0x33   :  { %1249 = vmatpush1.bf16.msra.mxu1 %v4771_v53  ;;  %1180 = vmatprep.subr.bf16.mxu0 %v4775_v56  ;;  %v4855_v53 = vld [vmem:[%s7106_s1 + $0x12c] ss:$28 sps:$4 sm:$0xff]  }
  0x34   :  { %1250 = vmatprep.subr.bf16.mxu1 %v4779_v57  ;;  %v4853_v56 = vld [vmem:[%s7106_s1 + $0x128] ss:$28 sps:$4 sm:$0xff]   ;;  %v4858_v57 = vld [vmem:[%s7106_s1 + $0xf4] ss:$28 sps:$4 sm:$0xff]  }
  0x36   :  { %1181 = vmatpush2.bf16.msra.mxu0 %v4780_v59  ;;  %v4885_v59 = vld [vmem:[%s7106_s1 + $0x474] ss:$28 sps:$4 sm:$0xff]  }
  0x37   :  { %1251 = vmatpush1.bf16.msra.mxu1 %v4777_v58  ;;  %1182 = vmatprep.subr.bf16.mxu0 %v4781_v60  ;;  %v4877_v58 = vld [vmem:[%s7106_s1 + $0x4a8] ss:$28 sps:$4 sm:$0xff]   ;;  %v4856_v60 = vld [vmem:[%s7106_s1 + $0xf0] ss:$28 sps:$4 sm:$0xff]  }
  0x38   :  { %1252 = vmatprep.subr.bf16.mxu1 %v4785_v61  ;;  %v4861_v61 = vld [vmem:[%s7106_s1 + $0xbc] ss:$28 sps:$4 sm:$0xff]  }
  0x3a   :  { %1183 = vmatpush2.bf16.msra.mxu0 %v4786_v63  ;;  %v4891_v63 = vld [vmem:[%s7106_s1 + $0x43c] ss:$28 sps:$4 sm:$0xff]  }
  0x3b   :  { %1253 = vmatpush1.bf16.msra.mxu1 %v4783_v62  ;;  %1184 = vmatprep.subr.bf16.mxu0 %v4787_v0  ;;  %v4883_v62 = vld [vmem:[%s7106_s1 + $0x470] ss:$28 sps:$4 sm:$0xff]   ;;  %v4859_v0 = vld [vmem:[%s7106_s1 + $0xb8] ss:$28 sps:$4 sm:$0xff]  }
  0x3c   :  { %1254 = vmatprep.subr.bf16.mxu1 %v4791_v1  ;;  %v4864_v1 = vld [vmem:[%s7106_s1 + $0x84] ss:$28 sps:$4 sm:$0xff]  }
  0x3e   :  { %1185 = vmatpush2.bf16.msra.mxu0 %v4792_v4  ;;  %v4897_v4 = vld [vmem:[%s7106_s1 + $0x404] ss:$28 sps:$4 sm:$0xff]  }
  0x3f   :  { %1255 = vmatpush1.bf16.msra.mxu1 %v4789_v2  ;;  %1186 = vmatprep.subr.bf16.mxu0 %v4793_v5  ;;  %v4889_v2 = vld [vmem:[%s7106_s1 + $0x438] ss:$28 sps:$4 sm:$0xff]   ;;  %v4862_v5 = vld [vmem:[%s7106_s1 + $0x80] ss:$28 sps:$4 sm:$0xff]  }
  0x40   :  { %1256 = vmatprep.subr.bf16.mxu1 %v4797_v6  ;;  %v4870_v6 = vld [vmem:[%s7106_s1 + $0x4c] ss:$28 sps:$4 sm:$0xff]  }
  0x42   :  { %1187 = vmatpush2.bf16.msra.mxu0 %v4798_v8  ;;  %v4903_v8 = vld [vmem:[%s7106_s1 + $0x3cc] ss:$28 sps:$4 sm:$0xff]  }
  0x43   :  { %1257 = vmatpush1.bf16.msra.mxu1 %v4795_v7  ;;  %1285 = vmatprep.subr.bf16.mxu0 %v4804_v12  ;;  %v4895_v7 = vld [vmem:[%s7106_s1 + $0x400] ss:$28 sps:$4 sm:$0xff]   ;;  %v4909_v12 = vld [vmem:[%s7106_s1 + $0x394] ss:$28 sps:$4 sm:$0xff]  }
  0x44   :  { %1258 = vmatprep.subr.bf16.mxu1 %v4801_v11  ;;  %v4901_v11 = vld [vmem:[%s7106_s1 + $0x3c8] ss:$28 sps:$4 sm:$0xff]  }
  0x45   :  { %1189 = vmatmul.mubr.bf16.vlgmr.msra.gmra.mxu0 %v5745_v13 }
  0x46   :  { %1286 = vmatpush1.bf16.msra.mxu0 %v4802_v15  ;;  %1317 = vmatprep.mubr.bf16.mxu0 %v5429_v3  ;;  %v4907_v15 = vld [vmem:[%s7106_s1 + $0x390] ss:$28 sps:$4 sm:$0xff]  }
  0x47   :  { %1259 = vmatpush2.bf16.msra.mxu1 %v4799_v14  ;;  %1287 = vmatprep.subr.bf16.mxu0 %v4810_v17  ;;  %v4874_v14 = vld [vmem:[%s7106_s1 + $0x10] ss:$28 sps:$4 sm:$0xff]   ;;  %v4913_v17 = vld [vmem:[%s7106_s1 + $0x360] ss:$28 sps:$4 sm:$0xff]  }
  0x48   :  { %1260 = vmatprep.subr.bf16.mxu1 %v4807_v16  ;;  %v4882_v16 = vld [vmem:[%s7106_s1 + $0x35c] ss:$28 sps:$4 sm:$0xff]  }
  0x4a   :  { %1288 = vmatpush1.bf16.msra.mxu0 %v4808_v19  ;;  %v4914_v19 = vld [vmem:[%s7106_s1 + $0x1a0] ss:$28 sps:$4 sm:$0xff]  }
  0x4b   :  { %1261 = vmatpush2.bf16.msra.mxu1 %v4805_v18  ;;  %1289 = vmatprep.subr.bf16.mxu0 %v4816_v21  ;;  %v4880_v18 = vld [vmem:[%s7106_s1 + $0x358] ss:$28 sps:$4 sm:$0xff]   ;;  %v4918_v21 = vld [vmem:[%s7106_s1 + $0x328] ss:$28 sps:$4 sm:$0xff]  }
  0x4c   :  { %1262 = vmatprep.subr.bf16.mxu1 %v4813_v20  ;;  %v4888_v20 = vld [vmem:[%s7106_s1 + $0x324] ss:$28 sps:$4 sm:$0xff]  }
  0x4e   :  { %1290 = vmatpush1.bf16.msra.mxu0 %v4814_v23  ;;  %v4919_v23 = vld [vmem:[%s7106_s1 + $0x168] ss:$28 sps:$4 sm:$0xff]  }
  0x4f   :  { %1263 = vmatpush2.bf16.msra.mxu1 %v4811_v22  ;;  %1291 = vmatprep.subr.bf16.mxu0 %v4822_v25  ;;  %v4886_v22 = vld [vmem:[%s7106_s1 + $0x320] ss:$28 sps:$4 sm:$0xff]   ;;  %v4923_v25 = vld [vmem:[%s7106_s1 + $0x2f0] ss:$28 sps:$4 sm:$0xff]  }
  0x50   :  { %1264 = vmatprep.subr.bf16.mxu1 %v4819_v24  ;;  %v4894_v24 = vld [vmem:[%s7106_s1 + $0x2ec] ss:$28 sps:$4 sm:$0xff]  }
  0x52   :  { %1292 = vmatpush1.bf16.msra.mxu0 %v4820_v27  ;;  %v4924_v27 = vld [vmem:[%s7106_s1 + $0x130] ss:$28 sps:$4 sm:$0xff]  }
  0x53   :  { %1265 = vmatpush2.bf16.msra.mxu1 %v4817_v26  ;;  %1293 = vmatprep.subr.bf16.mxu0 %v4828_v29  ;;  %v4892_v26 = vld [vmem:[%s7106_s1 + $0x2e8] ss:$28 sps:$4 sm:$0xff]   ;;  %v4898_v29 = vld [vmem:[%s7106_s1 + $0x2b0] ss:$28 sps:$4 sm:$0xff]  }
  0x54   :  { %1266 = vmatprep.subr.bf16.mxu1 %v4825_v28  ;;  %v4900_v28 = vld [vmem:[%s7106_s1 + $0x2b4] ss:$28 sps:$4 sm:$0xff]  }
  0x56   :  { %1294 = vmatpush1.bf16.msra.mxu0 %v4826_v31  ;;  %v4906_v31 = vld [vmem:[%s7106_s1 + $0x27c] ss:$28 sps:$4 sm:$0xff]  }
  0x57   :  { %1267 = vmatpush2.bf16.msra.mxu1 %v4823_v30  ;;  %1295 = vmatprep.subr.bf16.mxu0 %v4834_v33  ;;  %v4926_v30 = vld [vmem:[%s7106_s1 + $0xf8] ss:$28 sps:$4 sm:$0xff]  }
  0x58   :  { %1268 = vmatprep.subr.bf16.mxu1 %v4831_v32  ;;  %v4928_v32 = vld [vmem:[%s7106_s1 + $0x280] ss:$28 sps:$4 sm:$0xff]   ;;  %v4904_v33 = vld [vmem:[%s7106_s1 + $0x278] ss:$28 sps:$4 sm:$0xff]  }
  0x5a   :  { %1296 = vmatpush1.bf16.msra.mxu0 %v4832_v35  ;;  %v4929_v35 = vld [vmem:[%s7106_s1 + $0xc0] ss:$28 sps:$4 sm:$0xff]  }
  0x5b   :  { %1269 = vmatpush2.bf16.msra.mxu1 %v4829_v34  ;;  %1297 = vmatprep.subr.bf16.mxu0 %v4840_v37  ;;  %v4912_v34 = vld [vmem:[%s7106_s1 + $0x244] ss:$28 sps:$4 sm:$0xff]  }
  0x5c   :  { %1270 = vmatprep.subr.bf16.mxu1 %v4837_v36  ;;  %v4931_v36 = vld [vmem:[%s7106_s1 + $0x248] ss:$28 sps:$4 sm:$0xff]   ;;  %v4910_v37 = vld [vmem:[%s7106_s1 + $0x240] ss:$28 sps:$4 sm:$0xff]  }
  0x5e   :  { %1298 = vmatpush1.bf16.msra.mxu0 %v4838_v40  ;;  %v4932_v40 = vld [vmem:[%s7106_s1 + $0x88] ss:$28 sps:$4 sm:$0xff]  }
  0x5f   :  { %1271 = vmatpush2.bf16.msra.mxu1 %v4835_v38  ;;  %1299 = vmatprep.subr.bf16.mxu0 %v4846_v42  ;;  %v4917_v38 = vld [vmem:[%s7106_s1 + $0x20c] ss:$28 sps:$4 sm:$0xff]  }
  0x60   :  { %1272 = vmatprep.subr.bf16.mxu1 %v4843_v41  ;;  %v4934_v41 = vld [vmem:[%s7106_s1 + $0x210] ss:$28 sps:$4 sm:$0xff]   ;;  %v4915_v42 = vld [vmem:[%s7106_s1 + $0x208] ss:$28 sps:$4 sm:$0xff]  }
  0x62   :  { %1300 = vmatpush1.bf16.msra.mxu0 %v4844_v44  ;;  %v4935_v44 = vld [vmem:[%s7106_s1 + $0x50] ss:$28 sps:$4 sm:$0xff]  }
  0x63   :  { %1273 = vmatpush2.bf16.msra.mxu1 %v4841_v43  ;;  %1328 = vmatprep.subr.bf16.mxu0 %v4849_v45  ;;  %v4922_v43 = vld [vmem:[%s7106_s1 + $0x1d4] ss:$28 sps:$4 sm:$0xff]  }
  0x64   :  { %1371 = vmatprep.subr.bf16.mxu1 %v4867_v46  ;;  %v4937_v45 = vld [vmem:[%s7106_s1 + $0x1d8] ss:$28 sps:$4 sm:$0xff]   ;;  %v4920_v46 = vld [vmem:[%s7106_s1 + $0x1d0] ss:$28 sps:$4 sm:$0xff]  }
  0x65   :  { %1318 = vmatmul.mubr.bf16.vlgmr.msra.gmra.mxu0 %v5633_v39 }
  0x66   :  { %1275 = vmatmul.mubr.bf16.vlgmr.msra.gmra.mxu1 %v5745_v13  ;;  %1329 = vmatpush1.bf16.msra.mxu0 %v4847_v47  ;;  %v4938_v47 = vld [vmem:[%s7106_s1 + $0x18] ss:$28 sps:$4 sm:$0xff]  }
  0x67   :  { %1372 = vmatpush1.bf16.msra.mxu1 %v4865_v49  ;;  %1330 = vmatprep.subr.bf16.mxu0 %v4852_v48  ;;  %v4945_v48 = vld [vmem:[%s7108_s3 + $0xe4] ss:$16 sps:$4 sm:$0xff]   ;;  %v4927_v49 = vld [vmem:[%s7106_s1 + $0x520] ss:$28 sps:$4 sm:$0xff]  }
  0x68   :  { %1373 = vmatprep.subr.bf16.mxu1 %v4873_v50  ;;  %1403 = vmatprep.mubr.bf16.mxu1 %v5429_v3  ;;  %v4943_v50 = vld [vmem:[%s7108_s3 + $0xe0] ss:$16 sps:$4 sm:$0xff]  }
  0x69   :  { %1360 = vmatprep.mubr.bf16.mxu0 %v5681_v55 }
  0x6a   :  { %1331 = vmatpush1.bf16.msra.mxu0 %v4850_v51  ;;  %v4948_v51 = vld [vmem:[%s7108_s3 + $0xc4] ss:$16 sps:$4 sm:$0xff]  }
  0x6b   :  { %1374 = vmatpush1.bf16.msra.mxu1 %v4871_v52  ;;  %1332 = vmatprep.subr.bf16.mxu0 %v4855_v53  ;;  %v5430_v52 = vmov 0.0   ;;  %v4930_v53 = vld [vmem:[%s7106_s1 + $0x4e8] ss:$28 sps:$4 sm:$0xff]  }
  0x6c   :  { %1375 = vmatprep.subr.bf16.mxu1 %v4879_v54  ;;  %v4946_v54 = vld [vmem:[%s7108_s3 + $0xc0] ss:$16 sps:$4 sm:$0xff]  }
  0x6e   :  { %1333 = vmatpush1.bf16.msra.mxu0 %v4853_v56  ;;  %v4951_v56 = vld [vmem:[%s7108_s3 + $0xa4] ss:$16 sps:$4 sm:$0xff]  }
  0x6f   :  { %1376 = vmatpush1.bf16.msra.mxu1 %v4877_v58  ;;  %1334 = vmatprep.subr.bf16.mxu0 %v4858_v57  ;;  %v4949_v57 = vld [vmem:[%s7108_s3 + $0xa0] ss:$16 sps:$4 sm:$0xff]   ;;  %v4954_v58 = vld [vmem:[%s7108_s3 + $0x84] ss:$16 sps:$4 sm:$0xff]  }
  0x70   :  { %1377 = vmatprep.subr.bf16.mxu1 %v4885_v59  ;;  %v4936_v59 = vld [vmem:[%s7106_s1 + $0x478] ss:$28 sps:$4 sm:$0xff]  }
  0x72   :  { %1335 = vmatpush1.bf16.msra.mxu0 %v4856_v60  ;;  %v4952_v60 = vld [vmem:[%s7108_s3 + $0x80] ss:$16 sps:$4 sm:$0xff]  }
  0x73   :  { %1378 = vmatpush1.bf16.msra.mxu1 %v4883_v62  ;;  %1336 = vmatprep.subr.bf16.mxu0 %v4861_v61  ;;  %v4957_v61 = vld [vmem:[%s7108_s3 + $0x64] ss:$16 sps:$4 sm:$0xff]   ;;  %v4939_v62 = vld [vmem:[%s7106_s1 + $0x440] ss:$28 sps:$4 sm:$0xff]  }
  0x74   :  { %1379 = vmatprep.subr.bf16.mxu1 %v4891_v63  ;;  %v4955_v63 = vld [vmem:[%s7108_s3 + $0x60] ss:$16 sps:$4 sm:$0xff]  }
  0x76   :  { %1337 = vmatpush1.bf16.msra.mxu0 %v4859_v0  ;;  %v4960_v0 = vld [vmem:[%s7108_s3 + $0x44] ss:$16 sps:$4 sm:$0xff]  }
  0x77   :  { %1380 = vmatpush1.bf16.msra.mxu1 %v4889_v2  ;;  %1338 = vmatprep.subr.bf16.mxu0 %v4864_v1  ;;  %v4940_v1 = vld [vmem:[%s7106_s1 + $0x408] ss:$28 sps:$4 sm:$0xff]   ;;  %v4958_v2 = vld [vmem:[%s7108_s3 + $0x40] ss:$16 sps:$4 sm:$0xff]  }
  0x78   :  { %1381 = vmatprep.subr.bf16.mxu1 %v4897_v4  ;;  %v4963_v4 = vld [vmem:[%s7108_s3 + $0x24] ss:$16 sps:$4 sm:$0xff]  }
  0x7a   :  { %1339 = vmatpush1.bf16.msra.mxu0 %v4862_v5  ;;  %v4941_v5 = vld [vmem:[%s7106_s1 + $0x3d0] ss:$28 sps:$4 sm:$0xff]  }
  0x7b   :  { %1382 = vmatpush1.bf16.msra.mxu1 %v4895_v7  ;;  %1340 = vmatprep.subr.bf16.mxu0 %v4870_v6  ;;  %v4961_v6 = vld [vmem:[%s7108_s3 + $0x20] ss:$16 sps:$4 sm:$0xff]   ;;  %v4966_v7 = vld [vmem:[%s7108_s3 + $0x4] ss:$16 sps:$4 sm:$0xff]  }
  0x7c   :  { %1383 = vmatprep.subr.bf16.mxu1 %v4903_v8  ;;  %v4942_v8 = vld [vmem:[%s7106_s1 + $0x398] ss:$28 sps:$4 sm:$0xff]  }
  0x7e   :  { %1341 = vmatpush1.bf16.msra.mxu0 %v4868_v9  ;;  %v4964_v9 = vld [vmem:[%s7108_s3] ss:$16 sps:$4 sm:$0xff]  }
  0x7f   :  { %1384 = vmatpush1.bf16.msra.mxu1 %v4901_v11  ;;  %1342 = vmatprep.subr.bf16.mxu0 %v4876_v10  ;;  %v4969_v10 = vld [vmem:[%s7108_s3 + $0x2e4] ss:$16 sps:$4 sm:$0xff]  }
  0x80   :  { %1385 = vmatprep.subr.bf16.mxu1 %v4909_v12  ;;  %v4972_v11 = vld [vmem:[%s7108_s3 + $0x1e4] ss:$16 sps:$4 sm:$0xff]   ;;  %v4967_v12 = vld [vmem:[%s7108_s3 + $0x2e0] ss:$16 sps:$4 sm:$0xff]  }
  0x82   :  { %1343 = vmatpush1.bf16.msra.mxu0 %v4874_v14  ;;  %v4970_v14 = vld [vmem:[%s7108_s3 + $0x1e0] ss:$16 sps:$4 sm:$0xff]  }
  0x83   :  { %1386 = vmatpush1.bf16.msra.mxu1 %v4907_v15  ;;  %1344 = vmatprep.subr.bf16.mxu0 %v4882_v16  ;;  %v4975_v15 = vld [vmem:[%s7108_s3 + $0x2c4] ss:$16 sps:$4 sm:$0xff]  }
  0x84   :  { %4597 = vmatprep.subr.bf16.mxu1 %v4913_v17  ;;  %v4978_v16 = vld [vmem:[%s7108_s3 + $0x1c4] ss:$16 sps:$4 sm:$0xff]   ;;  %v4973_v17 = vld [vmem:[%s7108_s3 + $0x2c0] ss:$16 sps:$4 sm:$0xff]  }
  0x86   :  { %1404 = vmatmul.mubr.bf16.vlgmr.msra.gmra.mxu1 %v5633_v39  ;;  %1345 = vmatpush2.bf16.msra.mxu0 %v4880_v18  ;;  %v4976_v18 = vld [vmem:[%s7108_s3 + $0x1c0] ss:$16 sps:$4 sm:$0xff]  }
  0x87   :  { %4598 = vmatpush3.bf16.msra.mxu1 %v4914_v19  ;;  %1346 = vmatprep.subr.bf16.mxu0 %v4888_v20  ;;  %v4981_v19 = vld [vmem:[%s7108_s3 + $0x2a4] ss:$16 sps:$4 sm:$0xff]  }
  0x88   :  { %4599 = vmatprep.subr.bf16.mxu1 %v4918_v21  ;;  %1446 = vmatprep.mubr.bf16.mxu1 %v5681_v55  ;;  %v4925_v55 = vld [vmem:[%s7106_s1 + $0x2b8] ss:$28 sps:$4 sm:$0xff]   ;;  %v4982_v21 = vld [vmem:[%s7108_s3 + $0x1a0] ss:$16 sps:$4 sm:$0xff]  }
  0x89   :  { %v4984_v20 = vld [vmem:[%s7108_s3 + $0x1a4] ss:$16 sps:$4 sm:$0xff]  }
  0x8a   :  { %1347 = vmatpush2.bf16.msra.mxu0 %v4886_v22  ;;  %v4987_v22 = vld [vmem:[%s7108_s3 + $0x284] ss:$16 sps:$4 sm:$0xff]  }
  0x8b   :  { %4600 = vmatpush3.bf16.msra.mxu1 %v4919_v23  ;;  %1348 = vmatprep.subr.bf16.mxu0 %v4894_v24  ;;  %v4990_v23 = vld [vmem:[%s7108_s3 + $0x184] ss:$16 sps:$4 sm:$0xff]   ;;  %v4985_v24 = vld [vmem:[%s7108_s3 + $0x280] ss:$16 sps:$4 sm:$0xff]  }
  0x8c   :  { %4601 = vmatprep.subr.bf16.mxu1 %v4923_v25  ;;  %v4988_v25 = vld [vmem:[%s7108_s3 + $0x180] ss:$16 sps:$4 sm:$0xff]  }
  0x8e   :  { %1349 = vmatpush2.bf16.msra.mxu0 %v4892_v26  ;;  %v4993_v26 = vld [vmem:[%s7108_s3 + $0x264] ss:$16 sps:$4 sm:$0xff]  }
  0x8f   :  { %4602 = vmatpush3.bf16.msra.mxu1 %v4924_v27  ;;  %1350 = vmatprep.subr.bf16.mxu0 %v4900_v28  ;;  %v4996_v27 = vld [vmem:[%s7108_s3 + $0x164] ss:$16 sps:$4 sm:$0xff]   ;;  %v4991_v28 = vld [vmem:[%s7108_s3 + $0x260] ss:$16 sps:$4 sm:$0xff]  }
  0x90   :  { %4603 = vmatprep.subr.bf16.mxu1 %v4925_v55  ;;  %v4994_v55 = vld [vmem:[%s7108_s3 + $0x160] ss:$16 sps:$4 sm:$0xff]  }
  0x92   :  { %1351 = vmatpush2.bf16.msra.mxu0 %v4898_v29  ;;  %v4999_v29 = vld [vmem:[%s7108_s3 + $0x244] ss:$16 sps:$4 sm:$0xff]  }
  0x93   :  { %4604 = vmatpush3.bf16.msra.mxu1 %v4926_v30  ;;  %1352 = vmatprep.subr.bf16.mxu0 %v4906_v31  ;;  %v5002_v30 = vld [vmem:[%s7108_s3 + $0x144] ss:$16 sps:$4 sm:$0xff]   ;;  %v4997_v31 = vld [vmem:[%s7108_s3 + $0x240] ss:$16 sps:$4 sm:$0xff]  }
  0x94   :  { %4605 = vmatprep.subr.bf16.mxu1 %v4928_v32  ;;  %v5000_v32 = vld [vmem:[%s7108_s3 + $0x140] ss:$16 sps:$4 sm:$0xff]  }
  0x96   :  { %1353 = vmatpush2.bf16.msra.mxu0 %v4904_v33  ;;  %v5005_v33 = vld [vmem:[%s7108_s3 + $0x224] ss:$16 sps:$4 sm:$0xff]  }
  0x97   :  { %4606 = vmatpush3.bf16.msra.mxu1 %v4929_v35  ;;  %1354 = vmatprep.subr.bf16.mxu0 %v4912_v34  ;;  %v5008_v34 = vld [vmem:[%s7108_s3 + $0x124] ss:$16 sps:$4 sm:$0xff]   ;;  %v5003_v35 = vld [vmem:[%s7108_s3 + $0x220] ss:$16 sps:$4 sm:$0xff]  }
  0x98   :  { %4607 = vmatprep.subr.bf16.mxu1 %v4931_v36  ;;  %v5006_v36 = vld [vmem:[%s7108_s3 + $0x120] ss:$16 sps:$4 sm:$0xff]  }
  0x9a   :  { %1355 = vmatpush2.bf16.msra.mxu0 %v4910_v37  ;;  %v5011_v37 = vld [vmem:[%s7108_s3 + $0x204] ss:$16 sps:$4 sm:$0xff]  }
  0x9b   :  { %4608 = vmatpush3.bf16.msra.mxu1 %v4932_v40  ;;  %1356 = vmatprep.subr.bf16.mxu0 %v4917_v38  ;;  %v5014_v38 = vld [vmem:[%s7108_s3 + $0x104] ss:$16 sps:$4 sm:$0xff]   ;;  %v5009_v40 = vld [vmem:[%s7108_s3 + $0x200] ss:$16 sps:$4 sm:$0xff]  }
  0x9c   :  { %4609 = vmatprep.subr.bf16.mxu1 %v4934_v41  ;;  %v5012_v41 = vld [vmem:[%s7108_s3 + $0x100] ss:$16 sps:$4 sm:$0xff]  }
  0x9e   :  { %1357 = vmatpush2.bf16.msra.mxu0 %v4915_v42  ;;  %v5017_v42 = vld [vmem:[%s7108_s3 + $0x3e4] ss:$16 sps:$4 sm:$0xff]  }
  0x9f   :  { %4610 = vmatpush3.bf16.msra.mxu1 %v4935_v44  ;;  %1358 = vmatprep.subr.bf16.mxu0 %v4922_v43  ;;  %v5044_v43 = vld [vmem:[%s7108_s3 + $0x4e4] ss:$16 sps:$4 sm:$0xff]   ;;  %v5015_v44 = vld [vmem:[%s7108_s3 + $0x3e0] ss:$16 sps:$4 sm:$0xff]  }
  0xa0   :  { %4611 = vmatprep.subr.bf16.mxu1 %v4937_v45  ;;  %v5020_v45 = vld [vmem:[%s7108_s3 + $0x3c4] ss:$16 sps:$4 sm:$0xff]  }
  0xa2   :  { %1359 = vmatpush2.bf16.msra.mxu0 %v4920_v46  ;;  %v5018_v46 = vld [vmem:[%s7108_s3 + $0x3c0] ss:$16 sps:$4 sm:$0xff]  }
  0xa3   :  { %4612 = vmatpush3.bf16.msra.mxu1 %v4938_v47  ;;  %4642 = vmatprep.subr.bf16.mxu0 %v5430_v52  ;;  %v5023_v47 = vld [vmem:[%s7108_s3 + $0x3a4] ss:$16 sps:$4 sm:$0xff]  }
  0xa4   :  { %2743 = vmatprep.subr.bf16.mxu1 %v4945_v48  ;;  %v5021_v48 = vld [vmem:[%s7108_s3 + $0x3a0] ss:$16 sps:$4 sm:$0xff]  }
  0xa5   :  { %1361 = vmatmul.mubr.bf16.vlgmr.msra.gmra.mxu0 %v5745_v13 }
  0xa6   :  { %1447 = vmatmul.mubr.bf16.vlgmr.msra.gmra.mxu1 %v5745_v13  ;;  %4643 = vmatpush3.bf16.msra.mxu0 %v4927_v49  ;;  %v4933_v13 = vld [vmem:[%s7106_s1 + $0x4b0] ss:$28 sps:$4 sm:$0xff]   ;;  %v5026_v49 = vld [vmem:[%s7108_s3 + $0x384] ss:$16 sps:$4 sm:$0xff]  }
  0xa7   :  { %4658 = vmatprep.mubr.msk.bf16.mxu0 %vm5431_vm0, %v5430_v52  ;;  %4644 = vmatprep.subr.bf16.mxu0 %v5430_v52 }
  0xa8   :  { %2744 = vmatpush1.bf16.msra.mxu1 %v4943_v50  ;;  %v5024_v50 = vld [vmem:[%s7108_s3 + $0x380] ss:$16 sps:$4 sm:$0xff]  }
  0xa9   :  { %2745 = vmatprep.subr.bf16.mxu1 %v4948_v51  ;;  %v5029_v51 = vld [vmem:[%s7108_s3 + $0x364] ss:$16 sps:$4 sm:$0xff]  }
  0xaa   :  { %4645 = vmatpush3.bf16.msra.mxu0 %v4930_v53  ;;  %v5027_v53 = vld [vmem:[%s7108_s3 + $0x360] ss:$16 sps:$4 sm:$0xff]  }
  0xab   :  { %4646 = vmatprep.subr.bf16.mxu0 %v5430_v52 }
  0xac   :  { %2746 = vmatpush1.bf16.msra.mxu1 %v4946_v54  ;;  %v5032_v54 = vld [vmem:[%s7108_s3 + $0x344] ss:$16 sps:$4 sm:$0xff]  }
  0xad   :  { %2747 = vmatprep.subr.bf16.mxu1 %v4951_v56  ;;  %v5030_v56 = vld [vmem:[%s7108_s3 + $0x340] ss:$16 sps:$4 sm:$0xff]  }
  0xae   :  { %4647 = vmatpush3.bf16.msra.mxu0 %v4933_v13  ;;  %v5035_v13 = vld [vmem:[%s7108_s3 + $0x324] ss:$16 sps:$4 sm:$0xff]  }
  0xaf   :  { %4648 = vmatprep.subr.bf16.mxu0 %v5430_v52 }
  0xb0   :  { %2748 = vmatpush1.bf16.msra.mxu1 %v4949_v57  ;;  %v257_v57 = vlaneseq }
  0xb1   :  { %2749 = vmatprep.subr.bf16.mxu1 %v4954_v58  ;;  %v5033_v58 = vld [vmem:[%s7108_s3 + $0x320] ss:$16 sps:$4 sm:$0xff]  }
  0xb2   :  { %4649 = vmatpush3.bf16.msra.mxu0 %v4936_v59  ;;  %v5038_v59 = vld [vmem:[%s7108_s3 + $0x304] ss:$16 sps:$4 sm:$0xff]  }
  0xb3   :  { %4650 = vmatprep.subr.bf16.mxu0 %v5430_v52 }
  0xb4   :  { %2750 = vmatpush1.bf16.msra.mxu1 %v4952_v60  ;;  %v6266_v60 = vshrl.u32 %v257_v57, 7 }
  0xb5   :  { %2751 = vmatprep.subr.bf16.mxu1 %v4957_v61  ;;  %v5036_v61 = vld [vmem:[%s7108_s3 + $0x300] ss:$16 sps:$4 sm:$0xff]  }
  0xb6   :  { %4651 = vmatpush3.bf16.msra.mxu0 %v4939_v62  ;;  %v5041_v62 = vld [vmem:[%s7108_s3 + $0xec] ss:$16 sps:$4 sm:$0xff]  }
  0xb7   :  { %4652 = vmatprep.subr.bf16.mxu0 %v5430_v52 }
  0xb8   :  { %2752 = vmatpush1.bf16.msra.mxu1 %v4955_v63  ;;  %v6275_v63 = vsub.s32 1, %v6266_v60 }
  0xb9   :  { %2753 = vmatprep.subr.bf16.mxu1 %v4960_v0 }
  0xba   :  { %4653 = vmatpush3.bf16.msra.mxu0 %v4940_v1  ;;  %v6278_v1 = vsub.s32 0, %v6266_v60 }
  0xbb   :  { %4654 = vmatprep.subr.bf16.mxu0 %v5430_v52 }
  0xbc   :  { %2754 = vmatpush1.bf16.msra.mxu1 %v4958_v2  ;;  %v6283_v2 = vld [vmem:[%s7107_s2] sm:$0x7f] }
  0xbd   :  { %2755 = vmatprep.subr.bf16.mxu1 %v4963_v4  ;;  %v264_v4 = vrot.slane %v6283_v2, %v6275_v63 }
  0xbe   :  { %4655 = vmatpush3.bf16.msra.mxu0 %v4941_v5 }
  0xbf   :  { %4656 = vmatprep.subr.bf16.mxu0 %v5430_v52 }
  0xc0   :  { %2756 = vmatpush1.bf16.msra.mxu1 %v4961_v6  ;;  %v260_v6 = vrot.slane %v6283_v2, %v6278_v1 }
  0xc1   :  { %2757 = vmatprep.subr.bf16.mxu1 %v4966_v7 }
  0xc2   :  { %4657 = vmatpush3.bf16.msra.mxu0 %v4942_v8 }
  0xc3   :  { %2786 = vmatprep.subr.bf16.mxu0 %v4969_v10 }
  0xc4   :  { %2758 = vmatpush1.bf16.msra.mxu1 %v4964_v9 }
  0xc5   :  { %2759 = vmatprep.subr.bf16.mxu1 %v4972_v11  ;;  %4659 = vmatmul.mubr.bf16.vlgmr.msra.gmra.mxu0 %v5633_v39  ;;  %v4979_v39 = vld [vmem:[%s7108_s3 + $0x2a0] ss:$16 sps:$4 sm:$0xff]  }
  0xc6   :  { %2787 = vmatpush1.bf16.msra.mxu0 %v4967_v12 }
  0xc7   :  { %2788 = vmatprep.subr.bf16.mxu0 %v4975_v15 }
  0xc8   :  { %2760 = vmatpush2.bf16.msra.mxu1 %v4970_v14 }
  0xc9   :  { %2761 = vmatprep.subr.bf16.mxu1 %v4978_v16 }
  0xca   :  { %2789 = vmatpush1.bf16.msra.mxu0 %v4973_v17 }
  0xcb   :  { %2790 = vmatprep.subr.bf16.mxu0 %v4981_v19 }
  0xcc   :  { %2762 = vmatpush2.bf16.msra.mxu1 %v4976_v18 }
  0xcd   :  { %2763 = vmatprep.subr.bf16.mxu1 %v4984_v20 }
  0xce   :  { %2791 = vmatpush1.bf16.msra.mxu0 %v4979_v39 }
  0xcf   :  { %2792 = vmatprep.subr.bf16.mxu0 %v4987_v22 }
  0xd0   :  { %2764 = vmatpush2.bf16.msra.mxu1 %v4982_v21 }
  0xd1   :  { %2765 = vmatprep.subr.bf16.mxu1 %v4990_v23 }
  0xd2   :  { %2793 = vmatpush1.bf16.msra.mxu0 %v4985_v24 }
  0xd3   :  { %2794 = vmatprep.subr.bf16.mxu0 %v4993_v26  ;;  %v5042_v26 = vld [vmem:[%s7108_s3 + $0x4e0] ss:$16 sps:$4 sm:$0xff]  }
  0xd4   :  { %2766 = vmatpush2.bf16.msra.mxu1 %v4988_v25 }
  0xd5   :  { %2767 = vmatprep.subr.bf16.mxu1 %v4996_v27 }
  0xd6   :  { %2795 = vmatpush1.bf16.msra.mxu0 %v4991_v28  ;;  %v5050_v28 = vld [vmem:[%s7108_s3 + $0x4c4] ss:$16 sps:$4 sm:$0xff]  }
  0xd7   :  { %2796 = vmatprep.subr.bf16.mxu0 %v4999_v29  ;;  %v5056_v29 = vld [vmem:[%s7108_s3 + $0x4a4] ss:$16 sps:$4 sm:$0xff]  }
  0xd8   :  { %2768 = vmatpush2.bf16.msra.mxu1 %v4994_v55  ;;  %v5048_v55 = vld [vmem:[%s7108_s3 + $0x4c0] ss:$16 sps:$4 sm:$0xff]  }
  0xd9   :  { %2769 = vmatprep.subr.bf16.mxu1 %v5002_v30  ;;  %v5054_v30 = vld [vmem:[%s7108_s3 + $0x4a0] ss:$16 sps:$4 sm:$0xff]  }
  0xda   :  { %2797 = vmatpush1.bf16.msra.mxu0 %v4997_v31  ;;  %v5062_v31 = vld [vmem:[%s7108_s3 + $0x484] ss:$16 sps:$4 sm:$0xff]  }
  0xdb   :  { %2798 = vmatprep.subr.bf16.mxu0 %v5005_v33 }
  0xdc   :  { %2770 = vmatpush2.bf16.msra.mxu1 %v5000_v32 }
  0xdd   :  { %2771 = vmatprep.subr.bf16.mxu1 %v5008_v34 }
  0xde   :  { %2799 = vmatpush1.bf16.msra.mxu0 %v5003_v35 }
  0xdf   :  { %2800 = vmatprep.subr.bf16.mxu0 %v5011_v37 }
  0xe0   :  { %2772 = vmatpush2.bf16.msra.mxu1 %v5006_v36 }
  0xe1   :  { %2773 = vmatprep.subr.bf16.mxu1 %v5014_v38 }
  0xe2   :  { %2801 = vmatpush1.bf16.msra.mxu0 %v5009_v40 }
  0xe3   :  { %2802 = vmatprep.subr.bf16.mxu0 %v5017_v42 }
  0xe4   :  { %2774 = vmatpush2.bf16.msra.mxu1 %v5012_v41 }
  0xe5   :  { %2829 = vmatprep.subr.bf16.mxu1 %v5044_v43 }
  0xe6   :  { %2803 = vmatpush2.bf16.msra.mxu0 %v5015_v44  ;;  %v1233_v0 = vpop.f32.mrf.mxu1 }
  0xe7   :  { %2804 = vmatprep.subr.bf16.mxu0 %v5020_v45 }
  0xe8   :  { %v1235_v5 = vpop.f32.mrf.mxu1 }
  0xea   :  { %2805 = vmatpush2.bf16.msra.mxu0 %v5018_v46  ;;  %v1237_v10 = vpop.f32.mrf.mxu1 }
  0xeb   :  { %2806 = vmatprep.subr.bf16.mxu0 %v5023_v47 }
  0xec   :  { %v1239_v19 = vpop.f32.mrf.mxu1 }
  0xee   :  { %2807 = vmatpush2.bf16.msra.mxu0 %v5021_v48 }
  0xef   :  { %2808 = vmatprep.subr.bf16.mxu0 %v5026_v49 }
  0xf2   :  { %2809 = vmatpush2.bf16.msra.mxu0 %v5024_v50 }
  0xf3   :  { %2810 = vmatprep.subr.bf16.mxu0 %v5029_v51 }
  0xf6   :  { %2811 = vmatpush2.bf16.msra.mxu0 %v5027_v53 }
  0xf7   :  { %2812 = vmatprep.subr.bf16.mxu0 %v5032_v54 }
  0xfa   :  { %2813 = vmatpush2.bf16.msra.mxu0 %v5030_v56 }
  0xfb   :  { %2814 = vmatprep.subr.bf16.mxu0 %v5035_v13 }
  0xfe   :  { %2815 = vmatpush2.bf16.msra.mxu0 %v5033_v58 }
  0xff   :  { %2816 = vmatprep.subr.bf16.mxu0 %v5038_v59 }
 0x102   :  { %2817 = vmatpush2.bf16.msra.mxu0 %v5036_v61 }
 0x103   :  { %2915 = vmatprep.subr.bf16.mxu0 %v5041_v62 }
 0x105   :  { %v1190_v7 = vpop.f32.mrf.mxu0 }
 0x106   :  { %v1191_v11 = vadd.f32 %v1190_v7, %v260_v6 }
 0x107   :  { %v1192_v8 = vpop.f32.mrf.mxu0 }
 0x108   :  { %v1193_v9 = vadd.f32 %v1192_v8, %v264_v4  ;;  %v1234_v20 = vadd.f32 %v1233_v0, %v1191_v11 }
 0x109   :  { %v1194_v12 = vpop.f32.mrf.mxu0 }
 0x10a   :  { %v1195_v14 = vadd.f32 %v1194_v12, %v260_v6  ;;  %v1236_v16 = vadd.f32 %v1235_v5, %v1193_v9  ;;  %v1496_v24 = vmax.f32 %v1234_v20, 0.0 }
 0x10b   :  { %v1196_v15 = vpop.f32.mrf.mxu0 }
 0x10c   :  { %v1238_v17 = vadd.f32 %v1237_v10, %v1195_v14  ;;  %v1197_v18 = vadd.f32 %v1196_v15, %v264_v4  ;;  %v1497_v22 = vmax.f32 %v1236_v16, 0.0 }
 0x10e   :  { %v1240_v39 = vadd.f32 %v1239_v19, %v1197_v18  ;;  %v1503_v21 = vmax.f32 %v1238_v17, 0.0 }
 0x110   :  { %v1504_v23 = vmax.f32 %v1240_v39, 0.0  ;;  %v6294_v27 = vpack.c.bf16 %v1503_v21, %v1496_v24 }
 0x112   :  { %v6289_v25 = vpack.c.bf16 %v1504_v23, %v1497_v22 }
 0x114   :  { %2775 = vmatprep.mubr.bf16.mxu1 %v6289_v25 }
 0x115   :  { %2776 = vmatmul.mubr.bf16.vlgmr.msra.gmra.mxu1 %v6294_v27 }
 0x116   :  { %2830 = vmatpush1.bf16.msra.mxu1 %v5042_v26 }
 0x117   :  { %2831 = vmatprep.subr.bf16.mxu1 %v5050_v28 }
 0x11a   :  { %2832 = vmatpush1.bf16.msra.mxu1 %v5048_v55 }
 0x11b   :  { %2833 = vmatprep.subr.bf16.mxu1 %v5056_v29 }
 0x11c   :  { %22 = vsyncpa [#allocation4], 0  ;;  %v5060_v32 = vld [vmem:[%s7108_s3 + $0x480] ss:$16 sps:$4 sm:$0xff]   ;;  %v5068_v33 = vld [vmem:[%s7108_s3 + $0x464] ss:$16 sps:$4 sm:$0xff]  }
 0x11d   :  { %v271_v34 = vsub.s32 3, %v6266_v60  ;;  %v267_v35 = vsub.s32 2, %v6266_v60  ;;  %v5066_v36 = vld [vmem:[%s7108_s3 + $0x460] ss:$16 sps:$4 sm:$0xff]   ;;  %v5074_v37 = vld [vmem:[%s7108_s3 + $0x444] ss:$16 sps:$4 sm:$0xff]  }
 0x11e   :  { %2834 = vmatpush1.bf16.msra.mxu1 %v5054_v30  ;;  %v5072_v43 = vld [vmem:[%s7108_s3 + $0x440] ss:$16 sps:$4 sm:$0xff]   ;;  %v5080_v46 = vld [vmem:[%s7108_s3 + $0x424] ss:$16 sps:$4 sm:$0xff]   ;;  %v5039_v10 = vld [vmem:[%s7108_s3 + $0xe8] ss:$16 sps:$4 sm:$0xff]  }
 0x11f   :  { %2835 = vmatprep.subr.bf16.mxu1 %v5062_v31  ;;  %v272_v38 = vrot.slane %v6283_v2, %v271_v34  ;;  %v268_v40 = vrot.slane %v6283_v2, %v267_v35  ;;  %v5078_v53 = vld [vmem:[%s7108_s3 + $0x420] ss:$16 sps:$4 sm:$0xff]   ;;  %v5086_v56 = vld [vmem:[%s7108_s3 + $0x404] ss:$16 sps:$4 sm:$0xff]   ;;  %v5047_v12 = vld [vmem:[%s7108_s3 + $0xcc] ss:$16 sps:$4 sm:$0xff]  }
 0x120   :  { %v5084_v0 = vld [vmem:[%s7108_s3 + $0x400] ss:$16 sps:$4 sm:$0xff]   ;;  %v5092_v5 = vld [vmem:[%s7108_s3 + $0x5e4] ss:$16 sps:$4 sm:$0xff]   ;;  %v5045_v16 = vld [vmem:[%s7108_s3 + $0xc8] ss:$16 sps:$4 sm:$0xff]  }
 0x121   :  { %v5090_v14 = vld [vmem:[%s7108_s3 + $0x5e0] ss:$16 sps:$4 sm:$0xff]   ;;  %v5098_v15 = vld [vmem:[%s7108_s3 + $0x5c4] ss:$16 sps:$4 sm:$0xff]   ;;  %v5053_v17 = vld [vmem:[%s7108_s3 + $0xac] ss:$16 sps:$4 sm:$0xff]  }
 0x122   :  { %2836 = vmatpush1.bf16.msra.mxu1 %v5060_v32  ;;  %v5096_v18 = vld [vmem:[%s7108_s3 + $0x5c0] ss:$16 sps:$4 sm:$0xff]   ;;  %v5104_v19 = vld [vmem:[%s7108_s3 + $0x5a4] ss:$16 sps:$4 sm:$0xff]   ;;  %v5051_v20 = vld [vmem:[%s7108_s3 + $0xa8] ss:$16 sps:$4 sm:$0xff]  }
 0x123   :  { %2837 = vmatprep.subr.bf16.mxu1 %v5068_v33  ;;  %v5059_v39 = vld [vmem:[%s7108_s3 + $0x8c] ss:$16 sps:$4 sm:$0xff]   ;;  %v5102_v21 = vld [vmem:[%s7108_s3 + $0x5a0] ss:$16 sps:$4 sm:$0xff]   ;;  %v5110_v22 = vld [vmem:[%s7108_s3 + $0x584] ss:$16 sps:$4 sm:$0xff]  }
 0x124   :  { %v5057_v23 = vld [vmem:[%s7108_s3 + $0x88] ss:$16 sps:$4 sm:$0xff]   ;;  %v5065_v24 = vld [vmem:[%s7108_s3 + $0x6c] ss:$16 sps:$4 sm:$0xff]   ;;  %v5116_v26 = vld [vmem:[%s7108_s3 + $0x564] ss:$16 sps:$4 sm:$0xff]  }
 0x125   :  { %v1319_v42 = vpop.f32.mrf.mxu0  ;;  %v5063_v28 = vld [vmem:[%s7108_s3 + $0x68] ss:$16 sps:$4 sm:$0xff]   ;;  %v5071_v55 = vld [vmem:[%s7108_s3 + $0x4c] ss:$16 sps:$4 sm:$0xff]   ;;  %v5114_v29 = vld [vmem:[%s7108_s3 + $0x560] ss:$16 sps:$4 sm:$0xff]  }
 0x126   :  { %v1276_v41 = vpop.f32.mrf.mxu1  ;;  %2838 = vmatpush1.bf16.msra.mxu1 %v5066_v36  ;;  %v5122_v30 = vld [vmem:[%s7108_s3 + $0x544] ss:$16 sps:$4 sm:$0xff]   ;;  %v5069_v31 = vld [vmem:[%s7108_s3 + $0x48] ss:$16 sps:$4 sm:$0xff]   ;;  %v5077_v32 = vld [vmem:[%s7108_s3 + $0x2c] ss:$16 sps:$4 sm:$0xff]  }
 0x127   :  { %v1321_v45 = vpop.f32.mrf.mxu0  ;;  %2839 = vmatprep.subr.bf16.mxu1 %v5074_v37  ;;  %v1277_v48 = vadd.f32 %v1276_v41, %v268_v40  ;;  %v5120_v33 = vld [vmem:[%s7108_s3 + $0x540] ss:$16 sps:$4 sm:$0xff]   ;;  %v5128_v36 = vld [vmem:[%s7108_s3 + $0x524] ss:$16 sps:$4 sm:$0xff]   ;;  %v5075_v37 = vld [vmem:[%s7108_s3 + $0x28] ss:$16 sps:$4 sm:$0xff]  }
 0x128   :  { %v1278_v44 = vpop.f32.mrf.mxu1  ;;  %v5134_v41 = vld [vmem:[%s7108_s3 + $0x504] ss:$16 sps:$4 sm:$0xff]   ;;  %vm2739_vm1 = vcmask 261120   ;;  %s5432_s24 = smov 64   ;;  %vm3885_vm2 = vcmask 523264  }
 0x129   :  { %v1279_v47 = vadd.f32 %v1278_v44, %v272_v38  ;;  %v1323_v50 = vpop.f32.mrf.mxu0  ;;  %v1320_v59 = vadd.f32 %v1319_v42, %v1277_v48  ;;  %v5081_v42 = vld [vmem:[%s7108_s3 + $0x8] ss:$16 sps:$4 sm:$0xff]   ;;  %v5132_v44 = vld [vmem:[%s7108_s3 + $0x500] ss:$16 sps:$4 sm:$0xff]  }
 0x12a   :  { %v1280_v49 = vpop.f32.mrf.mxu1  ;;  %2840 = vmatpush1.bf16.msra.mxu1 %v5072_v43  ;;  %v5089_v43 = vld [vmem:[%s7108_s3 + $0x1ec] ss:$16 sps:$4 sm:$0xff]   ;;  %v5093_v48 = vld [vmem:[%s7108_s3 + $0x1c8] ss:$16 sps:$4 sm:$0xff]  }
 0x12b   :  { %v1281_v51 = vadd.f32 %v1280_v49, %v268_v40  ;;  %2841 = vmatprep.subr.bf16.mxu1 %v5080_v46  ;;  %v1322_v13 = vadd.f32 %v1321_v45, %v1279_v47  ;;  %v1325_v61 = vpop.f32.mrf.mxu0  ;;  %v1498_v8 = vmax.f32 %v1320_v59, 0.0  ;;  %v5126_v40 = vld [vmem:[%s7108_s3 + $0x520] ss:$16 sps:$4 sm:$0xff]   ;;  %v5152_v45 = vld [vmem:[%s7108_s3 + $0x624] ss:$16 sps:$4 sm:$0xff]  }
 0x12c   :  { %v1282_v54 = vpop.f32.mrf.mxu1  ;;  %v5087_v46 = vld [vmem:[%s7108_s3 + $0x1e8] ss:$16 sps:$4 sm:$0xff]   ;;  %v5095_v47 = vld [vmem:[%s7108_s3 + $0x1cc] ss:$16 sps:$4 sm:$0xff]  }
 0x12d   :  { %v1324_v57 = vadd.f32 %v1323_v50, %v1281_v51  ;;  %v1283_v58 = vadd.f32 %v1282_v54, %v272_v38  ;;  %v1499_v6 = vmax.f32 %v1322_v13, 0.0  ;;  %v5083_v38 = vld [vmem:[%s7108_s3 + $0xc] ss:$16 sps:$4 sm:$0xff]   ;;  %v5099_v50 = vld [vmem:[%s7108_s3 + $0x1a8] ss:$16 sps:$4 sm:$0xff]  }
 0x12e   :  { %2842 = vmatpush1.bf16.msra.mxu1 %v5078_v53  ;;  %v5101_v49 = vld [vmem:[%s7108_s3 + $0x1ac] ss:$16 sps:$4 sm:$0xff]   ;;  %v5105_v53 = vld [vmem:[%s7108_s3 + $0x188] ss:$16 sps:$4 sm:$0xff]  }
 0x12f   :  { %v1326_v62 = vadd.f32 %v1325_v61, %v1283_v58  ;;  %v1505_v4 = vmax.f32 %v1324_v57, 0.0  ;;  %2843 = vmatprep.subr.bf16.mxu1 %v5086_v56  ;;  %v5107_v51 = vld [vmem:[%s7108_s3 + $0x18c] ss:$16 sps:$4 sm:$0xff]   ;;  %v279_v56 = vsub.s32 5, %v6266_v60  ;;  %v275_v57 = vsub.s32 4, %v6266_v60 }
 0x130   :  { %v5113_v54 = vld [vmem:[%s7108_s3 + $0x16c] ss:$16 sps:$4 sm:$0xff]   ;;  %v5111_v58 = vld [vmem:[%s7108_s3 + $0x168] ss:$16 sps:$4 sm:$0xff]  }
 0x131   :  { %v1506_v7 = vmax.f32 %v1326_v62, 0.0  ;;  %v6356_v11 = vpack.c.bf16 %v1505_v4, %v1498_v8  ;;  %v5119_v59 = vld [vmem:[%s7108_s3 + $0x14c] ss:$16 sps:$4 sm:$0xff]   ;;  %v280_v61 = vrot.slane %v6283_v2, %v279_v56 }
 0x132   :  { %2844 = vmatpush1.bf16.msra.mxu1 %v5084_v0  ;;  %v276_v0 = vrot.slane %v6283_v2, %v275_v57  ;;  %v5155_v56 = vld [vmem:[%s7108_s3 + $0x44c] ss:$16 sps:$4 sm:$0xff]  }
 0x133   :  { %v6351_v9 = vpack.c.bf16 %v1506_v7, %v1499_v6  ;;  %2845 = vmatprep.subr.bf16.mxu1 %v5092_v5  ;;  %v5117_v5 = vld [vmem:[%s7108_s3 + $0x148] ss:$16 sps:$4 sm:$0xff]   ;;  %v5125_v7 = vld [vmem:[%s7108_s3 + $0x12c] ss:$16 sps:$4 sm:$0xff]  }
 0x135   :  { %2818 = vmatprep.mubr.bf16.mxu0 %v6351_v9 }
 0x136   :  { %2819 = vmatmul.mubr.bf16.vlgmr.msra.gmra.mxu0 %v6356_v11  ;;  %2846 = vmatpush2.bf16.msra.mxu1 %v5090_v14 }
 0x137   :  { %2916 = vmatpush1.bf16.msra.mxu0 %v5039_v10  ;;  %2947 = vmatprep.mubr.bf16.mxu0 %v6289_v25  ;;  %v5108_v25 = vld [vmem:[%s7108_s3 + $0x580] ss:$16 sps:$4 sm:$0xff]  }
 0x138   :  { %2917 = vmatprep.subr.bf16.mxu0 %v5047_v12  ;;  %2847 = vmatprep.subr.bf16.mxu1 %v5098_v15 }
 0x13a   :  { %2848 = vmatpush2.bf16.msra.mxu1 %v5096_v18  ;;  %v5131_v18 = vld [vmem:[%s7108_s3 + $0x10c] ss:$16 sps:$4 sm:$0xff]  }
 0x13b   :  { %2918 = vmatpush1.bf16.msra.mxu0 %v5045_v16  ;;  %2849 = vmatprep.subr.bf16.mxu1 %v5104_v19  ;;  %v5123_v16 = vld [vmem:[%s7108_s3 + $0x128] ss:$16 sps:$4 sm:$0xff]  }
 0x13c   :  { %2919 = vmatprep.subr.bf16.mxu0 %v5053_v17 }
 0x13e   :  { %2850 = vmatpush2.bf16.msra.mxu1 %v5102_v21 }
 0x13f   :  { %2920 = vmatpush1.bf16.msra.mxu0 %v5051_v20  ;;  %2851 = vmatprep.subr.bf16.mxu1 %v5110_v22 }
 0x140   :  { %2921 = vmatprep.subr.bf16.mxu0 %v5059_v39 }
 0x142   :  { %2852 = vmatpush2.bf16.msra.mxu1 %v5108_v25 }
 0x143   :  { %2922 = vmatpush1.bf16.msra.mxu0 %v5057_v23  ;;  %2853 = vmatprep.subr.bf16.mxu1 %v5116_v26  ;;  %v5137_v26 = vld [vmem:[%s7108_s3 + $0x4ec] ss:$16 sps:$4 sm:$0xff]  }
 0x144   :  { %2923 = vmatprep.subr.bf16.mxu0 %v5065_v24  ;;  %v5129_v24 = vld [vmem:[%s7108_s3 + $0x108] ss:$16 sps:$4 sm:$0xff]  }
 0x146   :  { %2854 = vmatpush2.bf16.msra.mxu1 %v5114_v29  ;;  %v1405_v13 = vpop.f32.mrf.mxu1 }
 0x147   :  { %2924 = vmatpush1.bf16.msra.mxu0 %v5063_v28  ;;  %2855 = vmatprep.subr.bf16.mxu1 %v5122_v30 }
 0x148   :  { %2925 = vmatprep.subr.bf16.mxu0 %v5071_v55  ;;  %v1407_v62 = vpop.f32.mrf.mxu1 }
 0x14a   :  { %2856 = vmatpush2.bf16.msra.mxu1 %v5120_v33  ;;  %v1409_v10 = vpop.f32.mrf.mxu1  ;;  %v5140_v33 = vld [vmem:[%s7108_s3 + $0x4cc] ss:$16 sps:$4 sm:$0xff]  }
 0x14b   :  { %2926 = vmatpush1.bf16.msra.mxu0 %v5069_v31  ;;  %2857 = vmatprep.subr.bf16.mxu1 %v5128_v36  ;;  %v5135_v31 = vld [vmem:[%s7108_s3 + $0x4e8] ss:$16 sps:$4 sm:$0xff]   ;;  %v5150_v36 = vld [vmem:[%s7108_s3 + $0x620] ss:$16 sps:$4 sm:$0xff]  }
 0x14c   :  { %2927 = vmatprep.subr.bf16.mxu0 %v5077_v32  ;;  %v1411_v21 = vpop.f32.mrf.mxu1 }
 0x14e   :  { %2858 = vmatpush2.bf16.msra.mxu1 %v5126_v40  ;;  %v5138_v40 = vld [vmem:[%s7108_s3 + $0x4c8] ss:$16 sps:$4 sm:$0xff]  }
 0x14f   :  { %2928 = vmatpush1.bf16.msra.mxu0 %v5075_v37  ;;  %2859 = vmatprep.subr.bf16.mxu1 %v5134_v41  ;;  %v5158_v37 = vld [vmem:[%s7108_s3 + $0x604] ss:$16 sps:$4 sm:$0xff]   ;;  %v5143_v41 = vld [vmem:[%s7108_s3 + $0x4ac] ss:$16 sps:$4 sm:$0xff]  }
 0x150   :  { %2929 = vmatprep.subr.bf16.mxu0 %v5083_v38 }
 0x152   :  { %2860 = vmatpush2.bf16.msra.mxu1 %v5132_v44  ;;  %v5141_v44 = vld [vmem:[%s7108_s3 + $0x4a8] ss:$16 sps:$4 sm:$0xff]  }
 0x153   :  { %2930 = vmatpush1.bf16.msra.mxu0 %v5081_v42  ;;  %2884 = vmatprep.subr.bf16.mxu1 %v5152_v45  ;;  %v5156_v42 = vld [vmem:[%s7108_s3 + $0x600] ss:$16 sps:$4 sm:$0xff]   ;;  %v5146_v45 = vld [vmem:[%s7108_s3 + $0x48c] ss:$16 sps:$4 sm:$0xff]  }
 0x154   :  { %2931 = vmatprep.subr.bf16.mxu0 %v5089_v43 }
 0x157   :  { %2932 = vmatpush2.bf16.msra.mxu0 %v5087_v46 }
 0x158   :  { %2933 = vmatprep.subr.bf16.mxu0 %v5095_v47  ;;  %v5144_v47 = vld [vmem:[%s7108_s3 + $0x488] ss:$16 sps:$4 sm:$0xff]  }
 0x15b   :  { %2934 = vmatpush2.bf16.msra.mxu0 %v5093_v48  ;;  %v283_v48 = vsub.s32 6, %v6266_v60 }
 0x15c   :  { %2935 = vmatprep.subr.bf16.mxu0 %v5101_v49  ;;  %v5149_v49 = vld [vmem:[%s7108_s3 + $0x46c] ss:$16 sps:$4 sm:$0xff]  }
 0x15f   :  { %2936 = vmatpush2.bf16.msra.mxu0 %v5099_v50 }
 0x160   :  { %2937 = vmatprep.subr.bf16.mxu0 %v5107_v51 }
 0x163   :  { %2938 = vmatpush2.bf16.msra.mxu0 %v5105_v53  ;;  %v5147_v53 = vld [vmem:[%s7108_s3 + $0x468] ss:$16 sps:$4 sm:$0xff]  }
 0x164   :  { %2939 = vmatprep.subr.bf16.mxu0 %v5113_v54  ;;  %v284_v54 = vrot.slane %v6283_v2, %v283_v48  ;;  %v5210_v48 = vld [vmem:[%s7108_s3 + $0x3e8] ss:$16 sps:$4 sm:$0xff]  }
 0x165   :  { %v1362_v4 = vpop.f32.mrf.mxu0 }
 0x166   :  { %v1363_v12 = vadd.f32 %v1362_v4, %v276_v0  ;;  %v4613_v38 = vpop.f32.mrf.mxu1 }
 0x167   :  { %2940 = vmatpush2.bf16.msra.mxu0 %v5111_v58  ;;  %v1364_v6 = vpop.f32.mrf.mxu0 }
 0x168   :  { %2941 = vmatprep.subr.bf16.mxu0 %v5119_v59  ;;  %v1365_v8 = vadd.f32 %v1364_v6, %v280_v61  ;;  %v1406_v22 = vadd.f32 %v1405_v13, %v1363_v12  ;;  %v4614_v43 = vpop.f32.mrf.mxu1  ;;  %v5153_v59 = vld [vmem:[%s7108_s3 + $0x448] ss:$16 sps:$4 sm:$0xff]  }
 0x169   :  { %v1366_v14 = vpop.f32.mrf.mxu0  ;;  %v4615_v51 = vadd.f32 %v4614_v43, %v4613_v38  ;;  %v5159_v6 = vld [vmem:[%s7108_s3 + $0x428] ss:$16 sps:$4 sm:$0xff]   ;;  %v5200_v38 = vld [vmem:[%s7108_s3 + $0x22c] ss:$16 sps:$4 sm:$0xff]  }
 0x16a   :  { %v1367_v15 = vadd.f32 %v1366_v14, %v276_v0  ;;  %v1408_v19 = vadd.f32 %v1407_v62, %v1365_v8  ;;  %v1500_v29 = vmax.f32 %v1406_v22, 0.0  ;;  %v4616_v46 = vpop.f32.mrf.mxu1  ;;  %v5161_v62 = vld [vmem:[%s7108_s3 + $0x42c] ss:$16 sps:$4 sm:$0xff]   ;;  %v5162_v14 = vld [vmem:[%s7108_s3 + $0x2e8] ss:$16 sps:$4 sm:$0xff]  }
 0x16b   :  { %2942 = vmatpush2.bf16.msra.mxu0 %v5117_v5  ;;  %v1368_v17 = vpop.f32.mrf.mxu0  ;;  %v1449_v58 = vadd.f32 %v4615_v51, %v284_v54  ;;  %v5167_v8 = vld [vmem:[%s7108_s3 + $0x40c] ss:$16 sps:$4 sm:$0xff]   ;;  %v5177_v22 = vld [vmem:[%s7108_s3 + $0x5c8] ss:$16 sps:$4 sm:$0xff]  }
 0x16c   :  { %2943 = vmatprep.subr.bf16.mxu0 %v5125_v7  ;;  %v1410_v20 = vadd.f32 %v1409_v10, %v1367_v15  ;;  %v1369_v39 = vadd.f32 %v1368_v17, %v280_v61  ;;  %v1501_v28 = vmax.f32 %v1408_v19, 0.0  ;;  %v4617_v50 = vpop.f32.mrf.mxu1  ;;  %v5170_v17 = vld [vmem:[%s7108_s3 + $0x2cc] ss:$16 sps:$4 sm:$0xff]   ;;  %v5168_v19 = vld [vmem:[%s7108_s3 + $0x2c8] ss:$16 sps:$4 sm:$0xff]  }
 0x16d   :  { %v4618_v13 = vadd.f32 %v4617_v50, %v4616_v46  ;;  %v5209_v43 = vld [vmem:[%s7108_s3 + $0x52c] ss:$16 sps:$4 sm:$0xff]   ;;  %v5216_v51 = vld [vmem:[%s7108_s3 + $0x3c8] ss:$16 sps:$4 sm:$0xff]  }
 0x16e   :  { %v1412_v23 = vadd.f32 %v1411_v21, %v1369_v39  ;;  %v1507_v25 = vmax.f32 %v1410_v20, 0.0  ;;  %v5171_v20 = vld [vmem:[%s7108_s3 + $0x5e8] ss:$16 sps:$4 sm:$0xff]   ;;  %v5176_v39 = vld [vmem:[%s7108_s3 + $0x2ac] ss:$16 sps:$4 sm:$0xff]  }
 0x16f   :  { %2944 = vmatpush2.bf16.msra.mxu0 %v5123_v16  ;;  %v1452_v0 = vadd.f32 %v4618_v13, %v284_v54  ;;  %v5165_v16 = vld [vmem:[%s7108_s3 + $0x408] ss:$16 sps:$4 sm:$0xff]   ;;  %v5179_v21 = vld [vmem:[%s7108_s3 + $0x5cc] ss:$16 sps:$4 sm:$0xff]  }
 0x170   :  { %2945 = vmatprep.subr.bf16.mxu0 %v5131_v18  ;;  %v1508_v55 = vmax.f32 %v1412_v23, 0.0  ;;  %v6509_v32 = vpack.c.bf16 %v1507_v25, %v1500_v29  ;;  %v5173_v18 = vld [vmem:[%s7108_s3 + $0x5ec] ss:$16 sps:$4 sm:$0xff]   ;;  %v5180_v25 = vld [vmem:[%s7108_s3 + $0x288] ss:$16 sps:$4 sm:$0xff]  }
 0x171   :  { %v5182_v23 = vld [vmem:[%s7108_s3 + $0x28c] ss:$16 sps:$4 sm:$0xff]   ;;  %v5186_v29 = vld [vmem:[%s7108_s3 + $0x268] ss:$16 sps:$4 sm:$0xff]  }
 0x172   :  { %v1515_v30 = vpack.c.bf16 %v1508_v55, %v1501_v28  ;;  %v5188_v28 = vld [vmem:[%s7108_s3 + $0x26c] ss:$16 sps:$4 sm:$0xff]   ;;  %v5219_v54 = vld [vmem:[%s7108_s3 + $0x3a8] ss:$16 sps:$4 sm:$0xff]  }
 0x173   :  { %2946 = vmatpush2.bf16.msra.mxu0 %v5129_v24  ;;  %v5185_v24 = vld [vmem:[%s7108_s3 + $0x5ac] ss:$16 sps:$4 sm:$0xff]   ;;  %v5222_v13 = vld [vmem:[%s7108_s3 + $0x388] ss:$16 sps:$4 sm:$0xff]  }
 0x174   :  { %3001 = vmatprep.subr.bf16.mxu0 %v5137_v26  ;;  %2861 = vmatprep.mubr.bf16.mxu1 %v1515_v30  ;;  %v5183_v26 = vld [vmem:[%s7108_s3 + $0x5a8] ss:$16 sps:$4 sm:$0xff]   ;;  %v5191_v55 = vld [vmem:[%s7108_s3 + $0x58c] ss:$16 sps:$4 sm:$0xff]  }
 0x175   :  { %2862 = vmatmul.mubr.bf16.vlgmr.msra.gmra.mxu1 %v6509_v32  ;;  %v5212_v46 = vld [vmem:[%s7108_s3 + $0x3ec] ss:$16 sps:$4 sm:$0xff]  }
 0x176   :  { %2948 = vmatmul.mubr.bf16.vlgmr.msra.gmra.mxu0 %v6294_v27  ;;  %2885 = vmatpush1.bf16.msra.mxu1 %v5150_v36  ;;  %v5164_v27 = vld [vmem:[%s7108_s3 + $0x2ec] ss:$16 sps:$4 sm:$0xff]   ;;  %v5192_v36 = vld [vmem:[%s7108_s3 + $0x248] ss:$16 sps:$4 sm:$0xff]  }
 0x177   :  { %3002 = vmatpush1.bf16.msra.mxu0 %v5135_v31  ;;  %3033 = vmatprep.mubr.bf16.mxu0 %v1515_v30  ;;  %v5189_v30 = vld [vmem:[%s7108_s3 + $0x588] ss:$16 sps:$4 sm:$0xff]   ;;  %v5194_v31 = vld [vmem:[%s7108_s3 + $0x24c] ss:$16 sps:$4 sm:$0xff]  }
 0x178   :  { %3003 = vmatprep.subr.bf16.mxu0 %v5140_v33  ;;  %2886 = vmatprep.subr.bf16.mxu1 %v5158_v37  ;;  %v5197_v33 = vld [vmem:[%s7108_s3 + $0x56c] ss:$16 sps:$4 sm:$0xff]   ;;  %v5195_v37 = vld [vmem:[%s7108_s3 + $0x568] ss:$16 sps:$4 sm:$0xff]  }
 0x179   :  { %2904 = vmatprep.mubr.bf16.mxu1 %v5429_v3  ;;  %v5218_v50 = vld [vmem:[%s7108_s3 + $0x3cc] ss:$16 sps:$4 sm:$0xff]  }
 0x17a   :  { %2887 = vmatpush1.bf16.msra.mxu1 %v5156_v42  ;;  %v5201_v42 = vld [vmem:[%s7108_s3 + $0x548] ss:$16 sps:$4 sm:$0xff]  }
 0x17b   :  { %3004 = vmatpush1.bf16.msra.mxu0 %v5138_v40  ;;  %2958 = vmatprep.subr.bf16.mxu1 %v5164_v27  ;;  %v5203_v40 = vld [vmem:[%s7108_s3 + $0x54c] ss:$16 sps:$4 sm:$0xff]  }
 0x17c   :  { %3005 = vmatprep.subr.bf16.mxu0 %v5143_v41  ;;  %v5198_v41 = vld [vmem:[%s7108_s3 + $0x228] ss:$16 sps:$4 sm:$0xff]   ;;  %v5206_v27 = vld [vmem:[%s7108_s3 + $0x20c] ss:$16 sps:$4 sm:$0xff]  }
 0x17f   :  { %3006 = vmatpush1.bf16.msra.mxu0 %v5141_v44  ;;  %v5204_v44 = vld [vmem:[%s7108_s3 + $0x208] ss:$16 sps:$4 sm:$0xff]  }
 0x180   :  { %3007 = vmatprep.subr.bf16.mxu0 %v5146_v45  ;;  %v5207_v45 = vld [vmem:[%s7108_s3 + $0x528] ss:$16 sps:$4 sm:$0xff]  }
 0x183   :  { %3008 = vmatpush1.bf16.msra.mxu0 %v5144_v47  ;;  %v5215_v47 = vld [vmem:[%s7108_s3 + $0x50c] ss:$16 sps:$4 sm:$0xff]  }
 0x184   :  { %3009 = vmatprep.subr.bf16.mxu0 %v5149_v49  ;;  %v5213_v49 = vld [vmem:[%s7108_s3 + $0x508] ss:$16 sps:$4 sm:$0xff]  }
 0x185   :  { %v1489_v57 = vpop.f32.mrf.mxu0 }
 0x186   :  { %v1490_v2 = vadd.f32 %v1489_v57, %v1449_v58  ;;  %v5227_v57 = vld [vmem:[%s7108_s3 + $0x36c] ss:$16 sps:$4 sm:$0xff]  }
 0x187   :  { %3010 = vmatpush1.bf16.msra.mxu0 %v5147_v53  ;;  %v4660_v61 = vpop.f32.mrf.mxu0  ;;  %v5221_v53 = vld [vmem:[%s7108_s3 + $0x3ac] ss:$16 sps:$4 sm:$0xff]  }
 0x188   :  { %3011 = vmatprep.subr.bf16.mxu0 %v5155_v56  ;;  %v1502_v10 = vmax.f32 %v1490_v2, 0.0  ;;  %v5224_v56 = vld [vmem:[%s7108_s3 + $0x38c] ss:$16 sps:$4 sm:$0xff]  }
 0x189   :  { %v1492_v4 = vpop.f32.mrf.mxu0  ;;  %v5230_v58 = vld [vmem:[%s7108_s3 + $0x34c] ss:$16 sps:$4 sm:$0xff]  }
 0x18a   :  { %v1493_v5 = vadd.f32 %v1492_v4, %v1452_v0  ;;  %v5233_v61 = vld [vmem:[%s7108_s3 + $0x32c] ss:$16 sps:$4 sm:$0xff]   ;;  %v5234_v0 = vld [vmem:[%s7108_s3 + $0x308] ss:$16 sps:$4 sm:$0xff]  }
 0x18b   :  { %3012 = vmatpush1.bf16.msra.mxu0 %v5153_v59  ;;  %v4661_v7 = vpop.f32.mrf.mxu0  ;;  %v5228_v59 = vld [vmem:[%s7108_s3 + $0x348] ss:$16 sps:$4 sm:$0xff]   ;;  %v5236_v2 = vld [vmem:[%s7108_s3 + $0x30c] ss:$16 sps:$4 sm:$0xff]  }
 0x18c   :  { %3013 = vmatprep.subr.bf16.mxu0 %v5161_v62  ;;  %v1509_v12 = vmax.f32 %v1493_v5, 0.0  ;;  %v5231_v62 = vld [vmem:[%s7108_s3 + $0x328] ss:$16 sps:$4 sm:$0xff]   ;;  %v5239_v4 = vld [vmem:[%s7108_s3 + $0x62c] ss:$16 sps:$4 sm:$0xff]  }
 0x18d   :  { %v5237_v5 = vld [vmem:[%s7108_s3 + $0x628] ss:$16 sps:$4 sm:$0xff]  }
 0x18e   :  { %v6570_v15 = vpack.c.bf16 %v1509_v12, %v1502_v10  ;;  %v5240_v7 = vld [vmem:[%s7108_s3 + $0x608] ss:$16 sps:$4 sm:$0xff]   ;;  %v5251_v12 = vld [vmem:[%s7110_s5 + $0x54] ss:$8 sps:$4 sm:$0xff]  }
 0x18f   :  { %3014 = vmatpush1.bf16.msra.mxu0 %v5159_v6  ;;  %v5242_v6 = vld [vmem:[%s7108_s3 + $0x60c] ss:$16 sps:$4 sm:$0xff]   ;;  %v5243_v10 = vld [vmem:[%s7110_s5 + $0x70] ss:$8 sps:$4 sm:$0xff]  }
 0x190   :  { %3015 = vmatprep.subr.bf16.mxu0 %v5167_v8  ;;  %4479 = vmatmul.mubr.msk.bf16.vlgmr.msra.gmra.mxu1 %vm2739_vm1, %v6570_v15  ;;  %v5245_v8 = vld [vmem:[%s7110_s5 + $0x74] ss:$8 sps:$4 sm:$0xff]  }
 0x191   :  { %2959 = vmatpush1.bf16.msra.mxu1 %v5162_v14  ;;  %2990 = vmatprep.mubr.bf16.mxu1 %v6351_v9  ;;  %v5174_v9 = vld [vmem:[%s7108_s3 + $0x2a8] ss:$16 sps:$4 sm:$0xff]  }
 0x192   :  { %2960 = vmatprep.subr.bf16.mxu1 %v5170_v17  ;;  %v5249_v14 = vld [vmem:[%s7110_s5 + $0x50] ss:$8 sps:$4 sm:$0xff]   ;;  %v5293_v17 = vld [vmem:[%s7110_s5 + $0x174] ss:$8 sps:$4 sm:$0xff]  }
 0x193   :  { %3016 = vmatpush1.bf16.msra.mxu0 %v5165_v16  ;;  %v5291_v16 = vld [vmem:[%s7110_s5 + $0x170] ss:$8 sps:$4 sm:$0xff]  }
 0x194   :  { %3017 = vmatprep.subr.bf16.mxu0 %v5173_v18  ;;  %v5296_v18 = vld [vmem:[%s7110_s5 + $0x164] ss:$8 sps:$4 sm:$0xff]  }
 0x195   :  { %2961 = vmatpush1.bf16.msra.mxu1 %v5168_v19  ;;  %v5252_v19 = vld [vmem:[%s7110_s5 + $0x40] ss:$8 sps:$4 sm:$0xff]  }
 0x196   :  { %2962 = vmatprep.subr.bf16.mxu1 %v5176_v39  ;;  %v5257_v39 = vld [vmem:[%s7110_s5 + $0x34] ss:$8 sps:$4 sm:$0xff]  }
 0x197   :  { %3018 = vmatpush2.bf16.msra.mxu0 %v5171_v20  ;;  %v5294_v20 = vld [vmem:[%s7110_s5 + $0x160] ss:$8 sps:$4 sm:$0xff]  }
 0x198   :  { %3019 = vmatprep.subr.bf16.mxu0 %v5179_v21  ;;  %v5299_v21 = vld [vmem:[%s7110_s5 + $0x154] ss:$8 sps:$4 sm:$0xff]  }
 0x199   :  { %2963 = vmatpush1.bf16.msra.mxu1 %v5174_v9  ;;  %v5255_v9 = vld [vmem:[%s7110_s5 + $0x30] ss:$8 sps:$4 sm:$0xff]  }
 0x19a   :  { %2964 = vmatprep.subr.bf16.mxu1 %v5182_v23  ;;  %v5260_v23 = vld [vmem:[%s7110_s5 + $0x24] ss:$8 sps:$4 sm:$0xff]  }
 0x19b   :  { %3020 = vmatpush2.bf16.msra.mxu0 %v5177_v22  ;;  %v5297_v22 = vld [vmem:[%s7110_s5 + $0x150] ss:$8 sps:$4 sm:$0xff]  }
 0x19c   :  { %3021 = vmatprep.subr.bf16.mxu0 %v5185_v24  ;;  %v5302_v24 = vld [vmem:[%s7110_s5 + $0x144] ss:$8 sps:$4 sm:$0xff]  }
 0x19d   :  { %2965 = vmatpush1.bf16.msra.mxu1 %v5180_v25  ;;  %v5258_v25 = vld [vmem:[%s7110_s5 + $0x20] ss:$8 sps:$4 sm:$0xff]  }
 0x19e   :  { %2966 = vmatprep.subr.bf16.mxu1 %v5188_v28  ;;  %v5263_v28 = vld [vmem:[%s7110_s5 + $0x14] ss:$8 sps:$4 sm:$0xff]  }
 0x19f   :  { %3022 = vmatpush2.bf16.msra.mxu0 %v5183_v26  ;;  %v5300_v26 = vld [vmem:[%s7110_s5 + $0x140] ss:$8 sps:$4 sm:$0xff]  }
 0x1a0   :  { %3023 = vmatprep.subr.bf16.mxu0 %v5191_v55  ;;  %v5261_v55 = vld [vmem:[%s7110_s5 + $0x10] ss:$8 sps:$4 sm:$0xff]  }
 0x1a1   :  { %2967 = vmatpush1.bf16.msra.mxu1 %v5186_v29  ;;  %v5266_v29 = vld [vmem:[%s7110_s5 + $0x4] ss:$8 sps:$4 sm:$0xff]  }
 0x1a2   :  { %2968 = vmatprep.subr.bf16.mxu1 %v5194_v31  ;;  %v5269_v31 = vld [vmem:[%s7110_s5 + $0xf4] ss:$8 sps:$4 sm:$0xff]  }
 0x1a3   :  { %3024 = vmatpush2.bf16.msra.mxu0 %v5189_v30  ;;  %v5264_v30 = vld [vmem:[%s7110_s5] ss:$8 sps:$4 sm:$0xff]  }
 0x1a4   :  { %3025 = vmatprep.subr.bf16.mxu0 %v5197_v33  ;;  %v5305_v33 = vld [vmem:[%s7110_s5 + $0x134] ss:$8 sps:$4 sm:$0xff]  }
 0x1a5   :  { %2969 = vmatpush1.bf16.msra.mxu1 %v5192_v36  ;;  %v5267_v36 = vld [vmem:[%s7110_s5 + $0xf0] ss:$8 sps:$4 sm:$0xff]  }
 0x1a6   :  { %2970 = vmatprep.subr.bf16.mxu1 %v5200_v38  ;;  %v5272_v38 = vld [vmem:[%s7110_s5 + $0xe4] ss:$8 sps:$4 sm:$0xff]  }
 0x1a7   :  { %3026 = vmatpush2.bf16.msra.mxu0 %v5195_v37  ;;  %v5303_v37 = vld [vmem:[%s7110_s5 + $0x130] ss:$8 sps:$4 sm:$0xff]  }
 0x1a8   :  { %3027 = vmatprep.subr.bf16.mxu0 %v5203_v40  ;;  %v5308_v40 = vld [vmem:[%s7110_s5 + $0x124] ss:$8 sps:$4 sm:$0xff]  }
 0x1a9   :  { %2971 = vmatpush1.bf16.msra.mxu1 %v5198_v41  ;;  %v5270_v41 = vld [vmem:[%s7110_s5 + $0xe0] ss:$8 sps:$4 sm:$0xff]  }
 0x1aa   :  { %2972 = vmatprep.subr.bf16.mxu1 %v5206_v27  ;;  %v5275_v27 = vld [vmem:[%s7110_s5 + $0xd4] ss:$8 sps:$4 sm:$0xff]  }
 0x1ab   :  { %3028 = vmatpush2.bf16.msra.mxu0 %v5201_v42  ;;  %v5306_v42 = vld [vmem:[%s7110_s5 + $0x120] ss:$8 sps:$4 sm:$0xff]  }
 0x1ac   :  { %3029 = vmatprep.subr.bf16.mxu0 %v5209_v43  ;;  %v5309_v43 = vld [vmem:[%s7110_s5 + $0x110] ss:$8 sps:$4 sm:$0xff]  }
 0x1ad   :  { %2973 = vmatpush1.bf16.msra.mxu1 %v5204_v44  ;;  %v5311_v44 = vld [vmem:[%s7110_s5 + $0x114] ss:$8 sps:$4 sm:$0xff]  }
 0x1ae   :  { %2974 = vmatprep.subr.bf16.mxu1 %v5212_v46  ;;  %v5273_v46 = vld [vmem:[%s7110_s5 + $0xd0] ss:$8 sps:$4 sm:$0xff]  }
 0x1af   :  { %3030 = vmatpush2.bf16.msra.mxu0 %v5207_v45  ;;  %v5314_v45 = vld [vmem:[%s7110_s5 + $0x104] ss:$8 sps:$4 sm:$0xff]  }
 0x1b0   :  { %3031 = vmatprep.subr.bf16.mxu0 %v5215_v47  ;;  %v5278_v47 = vld [vmem:[%s7110_s5 + $0xc4] ss:$8 sps:$4 sm:$0xff]  }
 0x1b1   :  { %2975 = vmatpush2.bf16.msra.mxu1 %v5210_v48  ;;  %v5312_v48 = vld [vmem:[%s7110_s5 + $0x100] ss:$8 sps:$4 sm:$0xff]  }
 0x1b2   :  { %2976 = vmatprep.subr.bf16.mxu1 %v5218_v50  ;;  %v5276_v50 = vld [vmem:[%s7110_s5 + $0xc0] ss:$8 sps:$4 sm:$0xff]  }
 0x1b3   :  { %3032 = vmatpush2.bf16.msra.mxu0 %v5213_v49  ;;  %v5317_v49 = vld [vmem:[%s7110_s5 + $0x1f4] ss:$8 sps:$4 sm:$0xff]  }
 0x1b4   :  { %3538 = vmatprep.subr.bf16.mxu0 %v5293_v17 }
 0x1b5   :  { %2977 = vmatpush2.bf16.msra.mxu1 %v5216_v51  ;;  %v5281_v51 = vld [vmem:[%s7110_s5 + $0xb4] ss:$8 sps:$4 sm:$0xff]  }
 0x1b6   :  { %3034 = vmatmul.mubr.bf16.vlgmr.msra.gmra.mxu0 %v6509_v32  ;;  %2978 = vmatprep.subr.bf16.mxu1 %v5221_v53  ;;  %v5225_v32 = vld [vmem:[%s7108_s3 + $0x368] ss:$16 sps:$4 sm:$0xff]  }
 0x1b7   :  { %3539 = vmatpush1.bf16.msra.mxu0 %v5291_v16  ;;  %v5315_v53 = vld [vmem:[%s7110_s5 + $0x1f0] ss:$8 sps:$4 sm:$0xff]  }
 0x1b8   :  { %3540 = vmatprep.subr.bf16.mxu0 %v5296_v18 }
 0x1b9   :  { %2979 = vmatpush2.bf16.msra.mxu1 %v5219_v54  ;;  %v5320_v54 = vld [vmem:[%s7110_s5 + $0x1e4] ss:$8 sps:$4 sm:$0xff]  }
 0x1ba   :  { %2980 = vmatprep.subr.bf16.mxu1 %v5224_v56  ;;  %v5279_v56 = vld [vmem:[%s7110_s5 + $0xb0] ss:$8 sps:$4 sm:$0xff]  }
 0x1bb   :  { %3541 = vmatpush1.bf16.msra.mxu0 %v5294_v20 }
 0x1bc   :  { %3542 = vmatprep.subr.bf16.mxu0 %v5299_v21 }
 0x1bd   :  { %2981 = vmatpush2.bf16.msra.mxu1 %v5222_v13  ;;  %v5284_v13 = vld [vmem:[%s7110_s5 + $0xa4] ss:$8 sps:$4 sm:$0xff]  }
 0x1be   :  { %2982 = vmatprep.subr.bf16.mxu1 %v5227_v57  ;;  %v5318_v57 = vld [vmem:[%s7110_s5 + $0x1e0] ss:$8 sps:$4 sm:$0xff]  }
 0x1bf   :  { %3543 = vmatpush1.bf16.msra.mxu0 %v5297_v22 }
 0x1c0   :  { %3544 = vmatprep.subr.bf16.mxu0 %v5302_v24 }
 0x1c1   :  { %2983 = vmatpush2.bf16.msra.mxu1 %v5225_v32  ;;  %v5323_v32 = vld [vmem:[%s7110_s5 + $0x1d4] ss:$8 sps:$4 sm:$0xff]  }
 0x1c2   :  { %2984 = vmatprep.subr.bf16.mxu1 %v5230_v58  ;;  %v5282_v58 = vld [vmem:[%s7110_s5 + $0xa0] ss:$8 sps:$4 sm:$0xff]  }
 0x1c3   :  { %3545 = vmatpush1.bf16.msra.mxu0 %v5300_v26 }
 0x1c4   :  { %3546 = vmatprep.subr.bf16.mxu0 %v5305_v33 }
 0x1c5   :  { %2985 = vmatpush2.bf16.msra.mxu1 %v5228_v59  ;;  %v5287_v59 = vld [vmem:[%s7110_s5 + $0x94] ss:$8 sps:$4 sm:$0xff]  }
 0x1c6   :  { %2986 = vmatprep.subr.bf16.mxu1 %v5233_v61  ;;  %v5321_v61 = vld [vmem:[%s7110_s5 + $0x1d0] ss:$8 sps:$4 sm:$0xff]  }
 0x1c7   :  { %3547 = vmatpush1.bf16.msra.mxu0 %v5303_v37 }
 0x1c8   :  { %3548 = vmatprep.subr.bf16.mxu0 %v5308_v40 }
 0x1c9   :  { %2987 = vmatpush2.bf16.msra.mxu1 %v5231_v62  ;;  %v5285_v62 = vld [vmem:[%s7110_s5 + $0x90] ss:$8 sps:$4 sm:$0xff]  }
 0x1ca   :  { %2988 = vmatprep.subr.bf16.mxu1 %v5236_v2  ;;  %v5290_v2 = vld [vmem:[%s7110_s5 + $0x84] ss:$8 sps:$4 sm:$0xff]  }
 0x1cb   :  { %3549 = vmatpush1.bf16.msra.mxu0 %v5306_v42 }
 0x1cc   :  { %3550 = vmatprep.subr.bf16.mxu0 %v5311_v44 }
 0x1cd   :  { %2989 = vmatpush2.bf16.msra.mxu1 %v5234_v0  ;;  %v5326_v0 = vld [vmem:[%s7110_s5 + $0x1c4] ss:$8 sps:$4 sm:$0xff]  }
 0x1ce   :  { %3056 = vmatprep.subr.bf16.mxu1 %v5239_v4  ;;  %v5288_v4 = vld [vmem:[%s7110_s5 + $0x80] ss:$8 sps:$4 sm:$0xff]  }
 0x1cf   :  { %3551 = vmatpush1.bf16.msra.mxu0 %v5309_v43 }
 0x1d0   :  { %2991 = vmatmul.mubr.bf16.vlgmr.msra.gmra.mxu1 %v6356_v11  ;;  %v5248_v11 = vld [vmem:[%s7110_s5 + $0x64] ss:$8 sps:$4 sm:$0xff]   ;;  %3552 = vmatprep.subr.bf16.mxu0 %v5314_v45 }
 0x1d1   :  { %3057 = vmatpush1.bf16.msra.mxu1 %v5237_v5  ;;  %3076 = vmatprep.mubr.bf16.mxu1 %v5429_v3  ;;  %v5246_v3 = vld [vmem:[%s7110_s5 + $0x60] ss:$8 sps:$4 sm:$0xff]  }
 0x1d2   :  { %3058 = vmatprep.subr.bf16.mxu1 %v5242_v6  ;;  %v5324_v5 = vld [vmem:[%s7110_s5 + $0x1c0] ss:$8 sps:$4 sm:$0xff]   ;;  %v5329_v6 = vld [vmem:[%s7110_s5 + $0x1b4] ss:$8 sps:$4 sm:$0xff]  }
 0x1d3   :  { %3553 = vmatpush1.bf16.msra.mxu0 %v5312_v48 }
 0x1d4   :  { %3554 = vmatprep.subr.bf16.mxu0 %v5317_v49 }
 0x1d5   :  { %3059 = vmatpush1.bf16.msra.mxu1 %v5240_v7  ;;  %v5327_v7 = vld [vmem:[%s7110_s5 + $0x1b0] ss:$8 sps:$4 sm:$0xff]  }
 0x1d6   :  { %3495 = vmatprep.subr.bf16.mxu1 %v5245_v8  ;;  %v5332_v8 = vld [vmem:[%s7110_s5 + $0x1a4] ss:$8 sps:$4 sm:$0xff]  }
 0x1d7   :  { %3555 = vmatpush2.bf16.msra.mxu0 %v5315_v53 }
 0x1d8   :  { %4480 = vmatmul.mubr.msk.bf16.vlgmr.msra.gmra.mxu1 %vm2739_vm1, %v6570_v15  ;;  %v5254_v15 = vld [vmem:[%s7110_s5 + $0x44] ss:$8 sps:$4 sm:$0xff]   ;;  %3556 = vmatprep.subr.bf16.mxu0 %v5320_v54 }
 0x1d9   :  { %3496 = vmatpush1.bf16.msra.mxu1 %v5243_v10  ;;  %v5330_v10 = vld [vmem:[%s7110_s5 + $0x1a0] ss:$8 sps:$4 sm:$0xff]  }
 0x1da   :  { %3497 = vmatprep.subr.bf16.mxu1 %v5248_v11  ;;  %v5335_v11 = vld [vmem:[%s7110_s5 + $0x194] ss:$8 sps:$4 sm:$0xff]  }
 0x1db   :  { %3557 = vmatpush2.bf16.msra.mxu0 %v5318_v57 }
 0x1dc   :  { %3558 = vmatprep.subr.bf16.mxu0 %v5323_v32 }
 0x1dd   :  { %3498 = vmatpush1.bf16.msra.mxu1 %v5246_v3  ;;  %v5333_v3 = vld [vmem:[%s7110_s5 + $0x190] ss:$8 sps:$4 sm:$0xff]  }
 0x1de   :  { %3499 = vmatprep.subr.bf16.mxu1 %v5251_v12  ;;  %v5338_v12 = vld [vmem:[%s7110_s5 + $0x184] ss:$8 sps:$4 sm:$0xff]  }
 0x1df   :  { %3559 = vmatpush2.bf16.msra.mxu0 %v5321_v61 }
 0x1e0   :  { %3560 = vmatprep.subr.bf16.mxu0 %v5326_v0 }
 0x1e1   :  { %3500 = vmatpush1.bf16.msra.mxu1 %v5249_v14  ;;  %v5336_v14 = vld [vmem:[%s7110_s5 + $0x180] ss:$8 sps:$4 sm:$0xff]  }
 0x1e2   :  { %3501 = vmatprep.subr.bf16.mxu1 %v5254_v15  ;;  %v2777_v15 = vpop.f32.mrf.mxu1 }
 0x1e3   :  { %3561 = vmatpush2.bf16.msra.mxu0 %v5324_v5 }
 0x1e4   :  { %3562 = vmatprep.subr.bf16.mxu0 %v5329_v6  ;;  %v2779_v16 = vpop.f32.mrf.mxu1 }
 0x1e5   :  { %3502 = vmatpush1.bf16.msra.mxu1 %v5252_v19 }
 0x1e6   :  { %3503 = vmatprep.subr.bf16.mxu1 %v5257_v39  ;;  %v2781_v17 = vpop.f32.mrf.mxu1 }
 0x1e7   :  { %3563 = vmatpush2.bf16.msra.mxu0 %v5327_v7 }
 0x1e8   :  { %3564 = vmatprep.subr.bf16.mxu0 %v5332_v8  ;;  %v2783_v18 = vpop.f32.mrf.mxu1 }
 0x1e9   :  { %3504 = vmatpush1.bf16.msra.mxu1 %v5255_v9  ;;  %v1717_v9 = vld [vmem:[%s7109_s4] sm:$0xf] }
 0x1ea   :  { %3505 = vmatprep.subr.bf16.mxu1 %v5260_v23  ;;  %v1726_v23 = vrot.slane %v1717_v9, %v6275_v63  ;;  %v1722_v24 = vrot.slane %v1717_v9, %v6278_v1  ;;  %v1734_v0 = vrot.slane %v1717_v9, %v271_v34 }
 0x1eb   :  { %3565 = vmatpush2.bf16.msra.mxu0 %v5330_v10 }
 0x1ec   :  { %3566 = vmatprep.subr.bf16.mxu0 %v5335_v11  ;;  %v2784_v33 = vadd.f32 %v2783_v18, %v1726_v23 }
 0x1ed   :  { %3506 = vmatpush1.bf16.msra.mxu1 %v5258_v25 }
 0x1ee   :  { %3507 = vmatprep.subr.bf16.mxu1 %v5263_v28  ;;  %v2780_v28 = vadd.f32 %v2779_v16, %v1726_v23 }
 0x1ef   :  { %3567 = vmatpush2.bf16.msra.mxu0 %v5333_v3 }
 0x1f0   :  { %3568 = vmatprep.subr.bf16.mxu0 %v5338_v12 }
 0x1f1   :  { %3508 = vmatpush1.bf16.msra.mxu1 %v5261_v55  ;;  %v2782_v55 = vadd.f32 %v2781_v17, %v1722_v24 }
 0x1f2   :  { %3509 = vmatprep.subr.bf16.mxu1 %v5266_v29  ;;  %v2778_v29 = vadd.f32 %v2777_v15, %v1722_v24 }
 0x1f3   :  { %3569 = vmatpush2.bf16.msra.mxu0 %v5336_v14 }
 0x1f4   :  { %4662 = vmatprep.subr.bf16.mxu0 %v5430_v52 }
 0x1f5   :  { %3510 = vmatpush1.bf16.msra.mxu1 %v5264_v30 }
 0x1f6   :  { %3511 = vmatprep.subr.bf16.mxu1 %v5269_v31  ;;  %v2820_v20 = vpop.f32.mrf.mxu0 }
 0x1f8   :  { %v2822_v21 = vpop.f32.mrf.mxu0 }
 0x1f9   :  { %3512 = vmatpush2.bf16.msra.mxu1 %v5267_v36  ;;  %v2823_v36 = vadd.f32 %v2822_v21, %v2780_v28 }
 0x1fa   :  { %3513 = vmatprep.subr.bf16.mxu1 %v5272_v38  ;;  %v2824_v25 = vpop.f32.mrf.mxu0  ;;  %v2821_v38 = vadd.f32 %v2820_v20, %v2778_v29 }
 0x1fb   :  { %v2825_v37 = vadd.f32 %v2824_v25, %v2782_v55 }
 0x1fc   :  { %v2826_v30 = vpop.f32.mrf.mxu0 }
 0x1fd   :  { %3514 = vmatpush2.bf16.msra.mxu1 %v5270_v41  ;;  %v2827_v41 = vadd.f32 %v2826_v30, %v2784_v33 }
 0x1fe   :  { %3515 = vmatprep.subr.bf16.mxu1 %v5275_v27 }
 0x201   :  { %3516 = vmatpush2.bf16.msra.mxu1 %v5273_v46 }
 0x202   :  { %3517 = vmatprep.subr.bf16.mxu1 %v5278_v47 }
 0x205   :  { %3518 = vmatpush2.bf16.msra.mxu1 %v5276_v50 }
 0x206   :  { %3519 = vmatprep.subr.bf16.mxu1 %v5281_v51 }
 0x209   :  { %3520 = vmatpush2.bf16.msra.mxu1 %v5279_v56 }
 0x20a   :  { %3521 = vmatprep.subr.bf16.mxu1 %v5284_v13 }
 0x20d   :  { %3522 = vmatpush2.bf16.msra.mxu1 %v5282_v58 }
 0x20e   :  { %3523 = vmatprep.subr.bf16.mxu1 %v5287_v59 }
 0x211   :  { %3524 = vmatpush2.bf16.msra.mxu1 %v5285_v62 }
 0x212   :  { %3525 = vmatprep.subr.bf16.mxu1 %v5290_v2 }
 0x215   :  { %3526 = vmatpush2.bf16.msra.mxu1 %v5288_v4  ;;  %v1730_v4 = vrot.slane %v1717_v9, %v267_v35 }
 0x235   :  { %v2863_v19 = vpop.f32.mrf.mxu1 }
 0x236   :  { %v2864_v43 = vadd.f32 %v2863_v19, %v2821_v38  ;;  %v2949_v32 = vpop.f32.mrf.mxu0  ;;  %v5344_v38 = vld [vmem:[%s7112_s7 + $0x64] ss:$8 sps:$4 sm:$0xff]  }
 0x237   :  { %v2865_v39 = vpop.f32.mrf.mxu1  ;;  %v2950_v11 = vadd.f32 %v2949_v32, %v1730_v4  ;;  %v5369_v32 = vld [vmem:[%s7112_s7 + $0xd0] ss:$8 sps:$4 sm:$0xff]  }
 0x238   :  { %v2866_v42 = vadd.f32 %v2865_v39, %v2823_v36  ;;  %v2951_v58 = vpop.f32.mrf.mxu0  ;;  %v5339_v36 = vld [vmem:[%s7112_s7 + $0x70] ss:$8 sps:$4 sm:$0xff]  }
 0x239   :  { %v2867_v22 = vpop.f32.mrf.mxu1  ;;  %v2952_v8 = vadd.f32 %v2951_v58, %v1734_v0  ;;  %v5374_v58 = vld [vmem:[%s7112_s7 + $0xc4] ss:$8 sps:$4 sm:$0xff]  }
 0x23a   :  { %v2868_v27 = vadd.f32 %v2867_v22, %v2825_v37  ;;  %v2953_v59 = vpop.f32.mrf.mxu0  ;;  %v5341_v37 = vld [vmem:[%s7112_s7 + $0x74] ss:$8 sps:$4 sm:$0xff]  }
 0x23b   :  { %v2869_v26 = vpop.f32.mrf.mxu1  ;;  %v2954_v10 = vadd.f32 %v2953_v59, %v1730_v4  ;;  %3779 = vmatprep.subr.bf16.mxu1 %v5341_v37  ;;  %v5372_v59 = vld [vmem:[%s7112_s7 + $0xc0] ss:$8 sps:$4 sm:$0xff]   ;;  %v5383_v4 = vld [vmem:[%s7112_s7 + $0x94] ss:$8 sps:$4 sm:$0xff]  }
 0x23c   :  { %v2870_v45 = vadd.f32 %v2869_v26, %v2827_v41  ;;  %v2955_v61 = vpop.f32.mrf.mxu0  ;;  %v5347_v41 = vld [vmem:[%s7112_s7 + $0x54] ss:$8 sps:$4 sm:$0xff]  }
 0x23d   :  { %v2956_v12 = vadd.f32 %v2955_v61, %v1734_v0  ;;  %v5377_v61 = vld [vmem:[%s7112_s7 + $0xb4] ss:$8 sps:$4 sm:$0xff]   ;;  %v5378_v0 = vld [vmem:[%s7112_s7 + $0xa0] ss:$8 sps:$4 sm:$0xff]  }
 0x250   :  { %v2906_v31 = vpop.f32.mrf.mxu1 }
 0x251   :  { %v2907_v48 = vadd.f32 %v2906_v31, %v2864_v43  ;;  %v5348_v43 = vld [vmem:[%s7112_s7 + $0x40] ss:$8 sps:$4 sm:$0xff]  }
 0x252   :  { %v2908_v40 = vpop.f32.mrf.mxu1 }
 0x253   :  { %v2909_v46 = vadd.f32 %v2908_v40, %v2866_v42  ;;  %v3087_v56 = vmax.f32 %v2907_v48, 0.0  ;;  %v5342_v40 = vld [vmem:[%s7112_s7 + $0x60] ss:$8 sps:$4 sm:$0xff]   ;;  %v5345_v42 = vld [vmem:[%s7112_s7 + $0x50] ss:$8 sps:$4 sm:$0xff]  }
 0x254   :  { %v2910_v44 = vpop.f32.mrf.mxu1  ;;  %v5359_v48 = vld [vmem:[%s7112_s7 + $0x14] ss:$8 sps:$4 sm:$0xff]  }
 0x255   :  { %v2911_v47 = vadd.f32 %v2910_v44, %v2868_v27  ;;  %v3088_v53 = vmax.f32 %v2909_v46, 0.0  ;;  %v5350_v27 = vld [vmem:[%s7112_s7 + $0x44] ss:$8 sps:$4 sm:$0xff]   ;;  %v5353_v44 = vld [vmem:[%s7112_s7 + $0x34] ss:$8 sps:$4 sm:$0xff]  }
 0x256   :  { %v2912_v49 = vpop.f32.mrf.mxu1  ;;  %v5356_v46 = vld [vmem:[%s7112_s7 + $0x24] ss:$8 sps:$4 sm:$0xff]  }
 0x257   :  { %v2913_v50 = vadd.f32 %v2912_v49, %v2870_v45  ;;  %v3091_v51 = vmax.f32 %v2911_v47, 0.0  ;;  %v5351_v45 = vld [vmem:[%s7112_s7 + $0x30] ss:$8 sps:$4 sm:$0xff]   ;;  %v5354_v47 = vld [vmem:[%s7112_s7 + $0x20] ss:$8 sps:$4 sm:$0xff]  }
 0x258   :  { %v5357_v49 = vld [vmem:[%s7112_s7 + $0x10] ss:$8 sps:$4 sm:$0xff]  }
 0x259   :  { %v3092_v54 = vmax.f32 %v2913_v50, 0.0  ;;  %v3095_v57 = vpack.c.bf16 %v3091_v51, %v3087_v56  ;;  %v5362_v50 = vld [vmem:[%s7112_s7 + $0x4] ss:$8 sps:$4 sm:$0xff]   ;;  %v5360_v51 = vld [vmem:[%s7112_s7] ss:$8 sps:$4 sm:$0xff]  }
 0x25a   :  { %v5368_v56 = vld [vmem:[%s7112_s7 + $0xe4] ss:$8 sps:$4 sm:$0xff]  }
 0x25b   :  { %v3096_v13 = vpack.c.bf16 %v3092_v54, %v3088_v53  ;;  %v5365_v53 = vld [vmem:[%s7112_s7 + $0xf4] ss:$8 sps:$4 sm:$0xff]   ;;  %v5363_v54 = vld [vmem:[%s7112_s7 + $0xf0] ss:$8 sps:$4 sm:$0xff]  }
 0x25d   :  { %3527 = vmatprep.mubr.bf16.mxu1 %v3096_v13  ;;  %v5366_v13 = vld [vmem:[%s7112_s7 + $0xe0] ss:$8 sps:$4 sm:$0xff]  }
 0x25e   :  { %3528 = vmatmul.mubr.bf16.vlgmr.msra.gmra.mxu1 %v3095_v57  ;;  %v5371_v57 = vld [vmem:[%s7112_s7 + $0xd4] ss:$8 sps:$4 sm:$0xff]  }
 0x25f   :  { %3780 = vmatpush1.bf16.msra.mxu1 %v5339_v36 }
 0x260   :  { %3781 = vmatprep.subr.bf16.mxu1 %v5344_v38 }
 0x263   :  { %3782 = vmatpush1.bf16.msra.mxu1 %v5342_v40 }
 0x264   :  { %3783 = vmatprep.subr.bf16.mxu1 %v5347_v41 }
 0x267   :  { %3784 = vmatpush1.bf16.msra.mxu1 %v5345_v42 }
 0x268   :  { %3785 = vmatprep.subr.bf16.mxu1 %v5350_v27  ;;  %v4577_v27 = vld [vmem:[%s7113_s8] ss:$0 sm:$0xff] }
 0x26b   :  { %3786 = vmatpush1.bf16.msra.mxu1 %v5348_v43 }
 0x26c   :  { %3787 = vmatprep.subr.bf16.mxu1 %v5353_v44 }
 0x26f   :  { %3788 = vmatpush1.bf16.msra.mxu1 %v5351_v45 }
 0x270   :  { %3789 = vmatprep.subr.bf16.mxu1 %v5356_v46 }
 0x273   :  { %3790 = vmatpush1.bf16.msra.mxu1 %v5354_v47 }
 0x274   :  { %3791 = vmatprep.subr.bf16.mxu1 %v5359_v48 }
 0x276   :  { %v3035_v62 = vpop.f32.mrf.mxu0 }
 0x277   :  { %3792 = vmatpush1.bf16.msra.mxu1 %v5357_v49  ;;  %v5391_v49 = vld [vmem:[%s7116_s11 + $0x38] sm:$0xff]  }
 0x278   :  { %v3037_v6 = vpop.f32.mrf.mxu0  ;;  %3793 = vmatprep.subr.bf16.mxu1 %v5362_v50 }
 0x27a   :  { %v3039_v16 = vpop.f32.mrf.mxu0 }
 0x27b   :  { %3794 = vmatpush1.bf16.msra.mxu1 %v5360_v51  ;;  %v5392_v51 = vld [vmem:[%s7116_s11 + $0x30] sm:$0xff]  }
 0x27c   :  { %v3041_v21 = vpop.f32.mrf.mxu0  ;;  %3795 = vmatprep.subr.bf16.mxu1 %v5365_v53  ;;  %v5393_v53 = vld [vmem:[%s7116_s11 + $0x28] sm:$0xff]  }
 0x27f   :  { %3796 = vmatpush2.bf16.msra.mxu1 %v5363_v54  ;;  %v5394_v54 = vld [vmem:[%s7116_s11 + $0x20] sm:$0xff]  }
 0x280   :  { %3797 = vmatprep.subr.bf16.mxu1 %v5368_v56  ;;  %v5395_v56 = vld [vmem:[%s7116_s11 + $0x18] sm:$0xff]  }
 0x283   :  { %3798 = vmatpush2.bf16.msra.mxu1 %v5366_v13  ;;  %v5396_v13 = vld [vmem:[%s7116_s11 + $0x10] sm:$0xff]  }
 0x284   :  { %3799 = vmatprep.subr.bf16.mxu1 %v5371_v57  ;;  %v5397_v57 = vld [vmem:[%s7116_s11 + $0x8] sm:$0xff]  }
 0x287   :  { %3800 = vmatpush2.bf16.msra.mxu1 %v5369_v32  ;;  %v5398_v32 = vld [vmem:[%s7116_s11] sm:$0xff]  }
 0x288   :  { %3801 = vmatprep.subr.bf16.mxu1 %v5374_v58  ;;  %v4578_v58 = vld [vmem:[%s7115_s10] ss:$0 sm:$0xff]  ;;  %s5433_s10 = smov [#allocation3]  }
 0x28b   :  { %3802 = vmatpush2.bf16.msra.mxu1 %v5372_v59 }
 0x28c   :  { %3803 = vmatprep.subr.bf16.mxu1 %v5377_v61 }
 0x290   :  { %v2992_v2 = vpop.f32.mrf.mxu1 }
 0x291   :  { %v2993_v17 = vadd.f32 %v2992_v2, %v2950_v11  ;;  %v5380_v2 = vld [vmem:[%s7112_s7 + $0xa4] ss:$8 sps:$4 sm:$0xff]   ;;  %v3163_v11 = vld [vmem:[%s7111_s6] sm:$0x3] }
 0x292   :  { %v2994_v5 = vpop.f32.mrf.mxu1 }
 0x293   :  { %v2995_v14 = vadd.f32 %v2994_v5, %v2952_v8  ;;  %v3036_v60 = vadd.f32 %v3035_v62, %v2993_v17  ;;  %v5375_v62 = vld [vmem:[%s7112_s7 + $0xb0] ss:$8 sps:$4 sm:$0xff]  }
 0x294   :  { %v2996_v7 = vpop.f32.mrf.mxu1  ;;  %3804 = vmatpush2.bf16.msra.mxu1 %v5375_v62  ;;  %v5381_v5 = vld [vmem:[%s7112_s7 + $0x90] ss:$8 sps:$4 sm:$0xff]  }
 0x295   :  { %v2997_v15 = vadd.f32 %v2996_v7, %v2954_v10  ;;  %v3038_v39 = vadd.f32 %v3037_v6, %v2995_v14  ;;  %3805 = vmatprep.subr.bf16.mxu1 %v5380_v2  ;;  %v5386_v6 = vld [vmem:[%s7112_s7 + $0x84] ss:$8 sps:$4 sm:$0xff]   ;;  %v5384_v7 = vld [vmem:[%s7112_s7 + $0x80] ss:$8 sps:$4 sm:$0xff]   ;;  %v3168_v14 = vrot.slane %v3163_v11, %v6278_v1  ;;  %v5387_v1 = vld [vmem:[%s7114_s9 + $0x18] sm:$0xff]  }
 0x296   :  { %v2998_v3 = vpop.f32.mrf.mxu1 }
 0x297   :  { %v2999_v19 = vadd.f32 %v2998_v3, %v2956_v12  ;;  %v3040_v34 = vadd.f32 %v3039_v16, %v2997_v15  ;;  %v3172_v12 = vrot.slane %v3163_v11, %v6275_v63 }
 0x298   :  { %v3078_v18 = vpop.f32.mrf.mxu1  ;;  %3806 = vmatpush2.bf16.msra.mxu1 %v5378_v0 }
 0x299   :  { %v3042_v23 = vadd.f32 %v3041_v21, %v2999_v19  ;;  %v3079_v24 = vadd.f32 %v3078_v18, %v3036_v60  ;;  %3807 = vmatprep.subr.bf16.mxu1 %v5383_v4 }
 0x29a   :  { %v3080_v20 = vpop.f32.mrf.mxu1 }
 0x29b   :  { %v3081_v9 = vadd.f32 %v3080_v20, %v3038_v39  ;;  %v3089_v30 = vmax.f32 %v3079_v24, 0.0 }
 0x29c   :  { %v3082_v35 = vpop.f32.mrf.mxu1  ;;  %3808 = vmatpush2.bf16.msra.mxu1 %v5381_v5 }
 0x29d   :  { %v3083_v22 = vadd.f32 %v3082_v35, %v3040_v34  ;;  %v3090_v55 = vmax.f32 %v3081_v9, 0.0  ;;  %3809 = vmatprep.subr.bf16.mxu1 %v5386_v6 }
 0x29e   :  { %v3084_v25 = vpop.f32.mrf.mxu1 }
 0x29f   :  { %v3085_v26 = vadd.f32 %v3084_v25, %v3042_v23  ;;  %v3093_v28 = vmax.f32 %v3083_v22, 0.0 }
 0x2a0   :  { %3810 = vmatpush2.bf16.msra.mxu1 %v5384_v7 }
 0x2a1   :  { %v3094_v29 = vmax.f32 %v3085_v26, 0.0  ;;  %v3097_v33 = vpack.c.bf16 %v3093_v28, %v3089_v30  ;;  %v5390_v30 = vld [vmem:[%s7114_s9] sm:$0xff]  }
 0x2a3   :  { %v3098_v31 = vpack.c.bf16 %v3094_v29, %v3090_v55  ;;  %v5388_v55 = vld [vmem:[%s7114_s9 + $0x10] sm:$0xff]   ;;  %v5389_v29 = vld [vmem:[%s7114_s9 + $0x8] sm:$0xff]  }
 0x2a5   :  { %3570 = vmatprep.mubr.bf16.mxu0 %v3098_v31 }
 0x2a6   :  { %3571 = vmatmul.mubr.bf16.vlgmr.msra.gmra.mxu0 %v3097_v33 }
 0x2a7   :  { %4670 = vmatprep.mubr.msk.bf16.mxu0 %vm5431_vm0, %v5430_v52  ;;  %4663 = vmatpush3.bf16.msra.mxu0 %v5387_v1 }
 0x2a8   :  { %4664 = vmatprep.subr.bf16.mxu0 %v5430_v52 }
 0x2ab   :  { %4665 = vmatpush3.bf16.msra.mxu0 %v5388_v55 }
 0x2ac   :  { %4666 = vmatprep.subr.bf16.mxu0 %v5430_v52 }
 0x2af   :  { %4667 = vmatpush3.bf16.msra.mxu0 %v5389_v29 }
 0x2b0   :  { %4668 = vmatprep.subr.bf16.mxu0 %v5430_v52 }
 0x2b3   :  { %4669 = vmatpush3.bf16.msra.mxu0 %v5390_v30 }
 0x2b4   :  { %4674 = vmatprep.subr.bf16.mxu0 %v5430_v52 }
 0x31e   :  { %v3529_v8 = vpop.f32.mrf.mxu1 }
 0x31f   :  { %v3530_v20 = vadd.f32 %v3529_v8, %v3168_v14 }
 0x320   :  { %v3531_v10 = vpop.f32.mrf.mxu1 }
 0x321   :  { %v3532_v18 = vadd.f32 %v3531_v10, %v3172_v12 }
 0x322   :  { %v3533_v3 = vpop.f32.mrf.mxu1 }
 0x323   :  { %v3534_v19 = vadd.f32 %v3533_v3, %v3168_v14  ;;  %v4593_v3 = vld [vmem:[%s7118_s13] ss:$0 sm:$0xff] }
 0x324   :  { %v3535_v16 = vpop.f32.mrf.mxu1 }
 0x325   :  { %v3536_v34 = vadd.f32 %v3535_v16, %v3172_v12 }
 0x366   :  { %v3572_v15 = vpop.f32.mrf.mxu0 }
 0x367   :  { %v3573_v35 = vadd.f32 %v3572_v15, %v3530_v20 }
 0x368   :  { %v3574_v17 = vpop.f32.mrf.mxu0 }
 0x369   :  { %v3575_v21 = vadd.f32 %v3574_v17, %v3532_v18  ;;  %v3581_v26 = vmax.f32 %v3573_v35, 0.0 }
 0x36a   :  { %v3576_v39 = vpop.f32.mrf.mxu0 }
 0x36b   :  { %v3577_v60 = vadd.f32 %v3576_v39, %v3534_v19  ;;  %v3582_v24 = vmax.f32 %v3575_v21, 0.0 }
 0x36c   :  { %v3578_v9 = vpop.f32.mrf.mxu0 }
 0x36d   :  { %v3579_v22 = vadd.f32 %v3578_v9, %v3536_v34  ;;  %v3583_v23 = vmax.f32 %v3577_v60, 0.0  ;;  %v4594_v34 = vld [vmem:[#allocation2] ss:$0 sm:$0xff] }
 0x36f   :  { %v3584_v25 = vmax.f32 %v3579_v22, 0.0  ;;  %v3585_v28 = vpack.c.bf16 %v3583_v23, %v3581_v26 }
 0x371   :  { %v3586_v63 = vpack.c.bf16 %v3584_v25, %v3582_v24 }
 0x373   :  { %3811 = vmatprep.mubr.bf16.mxu1 %v3586_v63 }
 0x374   :  { %3812 = vmatmul.mubr.bf16.vlgmr.msra.gmra.mxu1 %v3585_v28 }
 0x434   :  { %v3813_v31 = vpop.f32.mrf.mxu1 }
 0x436   :  { %v3815_v33 = vpop.f32.mrf.mxu1 }
 0x437   :  { %v3822_v36 = vmax.f32 %v3813_v31, %v3815_v33 }
 0x438   :  { %v3817_v37 = vpop.f32.mrf.mxu1 }
 0x439   :  { %3826 = vrot.lane.b32.xlu0 %v3822_v36, %s5432_s24 }
 0x43a   :  { %v3819_v38 = vpop.f32.mrf.mxu1 }
 0x43b   :  { %v3823_v40 = vmax.f32 %v3817_v37, %v3819_v38 }
 0x43d   :  { %3828 = vrot.lane.b32.xlu0 %v3823_v40, %s5432_s24 }
 0x4ab   :  { %v3827_v41 = vpop.permute.xlu0 %3826 }
 0x4ac   :  { %v3832_v42 = vmax.f32 %v3822_v36, %v3827_v41 }
 0x4ae   :  { %v3841_v44 = vadd.f32 %v4577_v27, %v3832_v42 }
 0x4af   :  { %v3829_v43 = vpop.permute.xlu0 %3828 }
 0x4b0   :  { %v3833_v45 = vmax.f32 %v3823_v40, %v3829_v43  ;;  %v3843_v47 = vmax.f32 %v3841_v44, 0.0 }
 0x4b2   :  { %v3842_v46 = vadd.f32 %v4577_v27, %v3833_v45 }
 0x4b4   :  { %v3844_v48 = vmax.f32 %v3842_v46, 0.0 }
 0x4b6   :  { %v3845_v50 = vpack.c.bf16 %v3844_v48, %v3843_v47 }
 0x4b8   :  { %4671 = vmatmul.mubr.msk.bf16.vlgmr.msra.gmra.mxu0 %vm3885_vm2, %v3845_v50 }
 0x4b9   :  { %4675 = vmatpush3.bf16.msra.mxu0 %v5391_v49  ;;  %4690 = vmatprep.mubr.msk.bf16.mxu0 %vm5431_vm0, %v5430_v52 }
 0x4ba   :  { %4676 = vmatprep.subr.bf16.mxu0 %v5430_v52 }
 0x4bd   :  { %4677 = vmatpush3.bf16.msra.mxu0 %v5392_v51 }
 0x4be   :  { %4678 = vmatprep.subr.bf16.mxu0 %v5430_v52 }
 0x4c1   :  { %4679 = vmatpush3.bf16.msra.mxu0 %v5393_v53 }
 0x4c2   :  { %4680 = vmatprep.subr.bf16.mxu0 %v5430_v52 }
 0x4c5   :  { %4681 = vmatpush3.bf16.msra.mxu0 %v5394_v54 }
 0x4c6   :  { %4682 = vmatprep.subr.bf16.mxu0 %v5430_v52 }
 0x4c9   :  { %4683 = vmatpush3.bf16.msra.mxu0 %v5395_v56 }
 0x4ca   :  { %4684 = vmatprep.subr.bf16.mxu0 %v5430_v52 }
 0x4cd   :  { %4685 = vmatpush3.bf16.msra.mxu0 %v5396_v13 }
 0x4ce   :  { %4686 = vmatprep.subr.bf16.mxu0 %v5430_v52 }
 0x4d1   :  { %4687 = vmatpush3.bf16.msra.mxu0 %v5397_v57 }
 0x4d2   :  { %4688 = vmatprep.subr.bf16.mxu0 %v5430_v52  ;;  %v4584_v52 = vld [vmem:[%s7117_s12] ss:$0 sm:$0xff]  ;;  %s4100_s12 = sshll.u32 %s5433_s10, 4  ;;  %s4101_s12 = int_to_ptr.vmem [resolvable:$true] %s4100_s12 }
 0x4d3   :  { %s5407_s13 = scalar_lea.vmem %s4101_s12, 256  ;;  %p5412_p1 = scmp.lt.s32.totalorder %s4101_s12, %s4101_s12 }
 0x4d4   :  { %p5408_p0 = scmp.ne.s32.totalorder %s4101_s12, %s5407_s13  ;;  %p5413_p2 = scmp.lt.s32.totalorder %s5407_s13, %s5407_s13 }
 0x4d5   :  { %4689 = vmatpush3.bf16.msra.mxu0 %v5398_v32 }
 0x4d6   :  { %p5414_p3 = por %p5413_p2, %p5412_p1 }
 0x4d8   :  { %p5415_p4 = pnand %p5414_p3, %p5408_p0 }
 0x578   :  { %v3923_v59 = vpop.f32.mrf.mxu0 }
 0x579   :  { %v3924_v62 = vadd.f32 %v4578_v58, %v3923_v59 }
 0x57a   :  { %v4672_v61 = vpop.f32.mrf.mxu0 }
 0x57b   :  { %v3930_v5 = vmax.f32 %v3924_v62, 0.0 }
 0x57c   :  { %v3926_v2 = vpop.f32.mrf.mxu0 }
 0x57d   :  { %v3927_v0 = vadd.f32 %v4578_v58, %v3926_v2 }
 0x57e   :  { %v4673_v4 = vpop.f32.mrf.mxu0 }
 0x57f   :  { %v3931_v6 = vmax.f32 %v3927_v0, 0.0 }
 0x581   :  { %v3932_v7 = vpack.c.bf16 %v3931_v6, %v3930_v5 }
 0x583   :  { %4691 = vmatmul.mubr.bf16.vlgmr.msra.gmra.mxu0 %v3932_v7 }
 0x643   :  { %v4038_v8 = vpop.f32.mrf.mxu0 }
 0x644   :  { %v4039_v10 = vadd.f32 %v4584_v52, %v4038_v8 }
 0x645   :  { %v4692_v11 = vpop.f32.mrf.mxu0 }
 0x646   :  { %v4045_v12 = vmax.f32 %v4039_v10, 0.0 }
 0x647   :  { %v4041_v14 = vpop.f32.mrf.mxu0 }
 0x648   :  { %v4042_v15 = vadd.f32 %v4584_v52, %v4041_v14  ;;  %v4054_v16 = vmul.f32 %v4593_v3, %v4045_v12 }
 0x649   :  { %v4693_v17 = vpop.f32.mrf.mxu0 }
 0x64a   :  { %v4046_v18 = vmax.f32 %v4042_v15, 0.0  ;;  %v4056_v19 = vsel %vm3885_vm2, %v4054_v16, 0.0 }
 0x64b   :  { %4057 = vadd.xlane.f32.xlu1 %v4056_v19 }
 0x64c   :  { %v4055_v20 = vmul.f32 %v4593_v3, %v4046_v18 }
 0x64e   :  { %v4059_v39 = vsel %vm3885_vm2, %v4055_v20, 0.0 }
 0x64f   :  { %4060 = vadd.xlane.f32.xlu1 %v4059_v39 }
 0x6d4   :  { %v4058_v21 = vpop.xlane.xlu1 %4057 }
 0x6d5   :  { %v4069_v60 = vadd.f32 %v4594_v34, %v4058_v21 }
 0x6d7   :  { %v4595_v35 = vmul.f32 -1.442695, %v4069_v60 }
 0x6d8   :  { %v4061_v9 = vpop.xlane.xlu1 %4060 }
 0x6d9   :  { %5399 = vpow2.f32 %v4595_v35  ;;  %v4070_v22 = vadd.f32 %v4594_v34, %v4061_v9 }
 0x6db   :  { %v4596_v23 = vmul.f32 -1.442695, %v4070_v22 }
 0x6dd   :  { %5401 = vpow2.f32 %v4596_v23 }
 0x6e6   :  { %v5400_v24 = vpop.eup %5399 }
 0x6e7   :  { %v4077_v25 = vadd.f32 1.0, %v5400_v24 }
 0x6e9   :  { %5403 = vrcp.f32 %v4077_v25 }
 0x6ea   :  { %v5402_v26 = vpop.eup %5401 }
 0x6eb   :  { %v4078_v63 = vadd.f32 1.0, %v5402_v26 }
 0x6ed   :  { %5405 = vrcp.f32 %v4078_v63 }
 0x6f6   :  { %v5404_v28 = vpop.eup %5403 }
 0x6f7   :  { %4085 = vperm.xlu0 %4701, %v5404_v28  }
 0x6fa   :  { %v5406_v1 = vpop.eup %5405 }
 0x6fb   :  { %4090 = vperm.xlu1 %4702, %v5406_v1  }
 0x772   :  { %v4086_v55 = vpop.permute.xlu0 %4085 }
 0x773   :  { %4093 = vst [vmem:[#allocation3] sm:$0xff] %v4086_v55 }
 0x776   :  { %v4091_v29 = vpop.permute.xlu1 %4090 }
 0x777   :  { %4094 = vst [vmem:[#allocation3 + $0x8] sm:$0xff] %v4091_v29 }
 0x778   :  { %5418 = shalt.err (!%p5415_p4)
}
 0x779   :  { %s5434_s1 = smov 128   ;;  %s5435_s23 = smov 8  }
 0x77a   :  { %4106 = dma.vmem_to_hbm [thread:$0]  %s4101_s12, 256, %s7120_s15, [#allocation4], %s5434_s1, %s5434_s1, %s5435_s23  }
 0x77b   :  { %5427 = dma.done.wait [#allocation4], 256  }
 0x77c   :  { %5428 = vsyncadd [#allocation4], 4294967040 }
 0x77d   :  { %4110 = vsyncpa [#allocation4], 1 }

// kernel: tpu_custom_call.1
= control target key start
LH: loop header
LB: loop body
LE: loop exit
PB: predicated region body
PF: predicated region fallthrough
CT: control target
= control target key end

     0   :  { %s7105_s0 = inlined_call_operand.vmem [shape: f32[16,384], index: 0, kind: input, shape index: {}]   ;;  %s7106_s1 = inlined_call_operand.vmem [shape: bf16[384,800], index: 1, kind: input, shape index: {}]   ;;  %s7107_s2 = inlined_call_operand.vmem [shape: f32[1,800], index: 2, kind: input, shape index: {}]   ;;  %s7108_s3 = inlined_call_operand.vmem [shape: bf16[800,512], index: 3, kind: input, shape index: {}]   ;;  %s7109_s4 = inlined_call_operand.vmem [shape: f32[1,512], index: 4, kind: input, shape index: {}]   ;;  %s7110_s5 = inlined_call_operand.vmem [shape: bf16[512,256], index: 5, kind: input, shape index: {}]   ;;  %s7111_s6 = inlined_call_operand.vmem [shape: f32[1,256], index: 6, kind: input, shape index: {}]   ;;  %s7112_s7 = inlined_call_operand.vmem [shape: bf16[256,256], index: 7, kind: input, shape index: {}]   ;;  %s7113_s8 = inlined_call_operand.vmem [shape: f32[1,64], index: 8, kind: input, shape index: {}]   ;;  %s7114_s9 = inlined_call_operand.vmem [shape: bf16[64,128], index: 9, kind: input, shape index: {}]   ;;  %s7115_s10 = inlined_call_operand.vmem [shape: f32[1,128], index: 10, kind: input, shape index: {}]   ;;  %s7116_s11 = inlined_call_operand.vmem [shape: bf16[128,64], index: 11, kind: input, shape index: {}]   ;;  %s7117_s12 = inlined_call_operand.vmem [shape: f32[1,64], index: 12, kind: input, shape index: {}]   ;;  %s7118_s13 = inlined_call_operand.vmem [shape: f32[1,64], index: 13, kind: input, shape index: {}]   ;;  %s7119_s14 = inlined_call_operand.<no memory space> [shape: f32[1,1], index: 14, kind: input, shape index: {}]   ;;  %s7120_s15 = inlined_call_operand.hbm [shape: f32[16,128], index: 15, kind: output, shape index: {}]  }
   0x1   :  { %v20_v0 = vstv %s7119_s14 }
   0x2   :  { %21 = vst [vmem:[#allocation2] sm:$0x1] %v20_v0 }
   0x3   :  { %v4703_v1 = vld [vmem:[%s7106_s1 + $0x18c] ss:$28 sps:$4 sm:$0xff]   ;;  %v5429_v3 = vmov 0   ;;  %v4709_v6 = vld [vmem:[%s7106_s1 + $0x154] ss:$28 sps:$4 sm:$0xff]   ;;  %v58_v52 = vld [vmem:[%s7105_s0 + $0x20] sm:$0xff] }
   0x4   :  { %v4705_v2 = vld [vmem:[%s7106_s1 + $0x50c] ss:$28 sps:$4 sm:$0xff]   ;;  %1231 = vmatprep.mubr.bf16.mxu1 %v5429_v3  ;;  %4701 = vset.pattern.permute.xlu0 %v5429_v3  ;;  %v4711_v7 = vld [vmem:[%s7106_s1 + $0x4d4] ss:$28 sps:$4 sm:$0xff]   ;;  %v4715_v10 = vld [vmem:[%s7106_s1 + $0x11c] ss:$28 sps:$4 sm:$0xff]  }
   0x5   :  { %1156 = vmatprep.subr.bf16.mxu0 %v4703_v1  ;;  %v4707_v4 = vld [vmem:[%s7106_s1 + $0x188] ss:$28 sps:$4 sm:$0xff]   ;;  %4702 = vset.pattern.permute.xlu1 %v5429_v3  ;;  %v4713_v8 = vld [vmem:[%s7106_s1 + $0x150] ss:$28 sps:$4 sm:$0xff]   ;;  %v4717_v11 = vld [vmem:[%s7106_s1 + $0x49c] ss:$28 sps:$4 sm:$0xff]  }
   0x6   :  { %v4708_v5 = vld [vmem:[%s7106_s1 + $0x508] ss:$28 sps:$4 sm:$0xff]   ;;  %1199 = vmatprep.subr.bf16.mxu1 %v4705_v2  ;;  %1157 = vmatpush1.bf16.msra.mxu0 %v4707_v4  ;;  %v4714_v9 = vld [vmem:[%s7106_s1 + $0x4d0] ss:$28 sps:$4 sm:$0xff]   ;;  %v4719_v12 = vld [vmem:[%s7106_s1 + $0x118] ss:$28 sps:$4 sm:$0xff]  }
   0x7   :  { %1200 = vmatpush1.bf16.msra.mxu1 %v4708_v5  ;;  %1158 = vmatprep.subr.bf16.mxu0 %v4709_v6  ;;  %v4720_v13 = vld [vmem:[%s7106_s1 + $0x498] ss:$28 sps:$4 sm:$0xff]   ;;  %v4721_v14 = vld [vmem:[%s7106_s1 + $0xe4] ss:$28 sps:$4 sm:$0xff]   ;;  %v4727_v18 = vld [vmem:[%s7106_s1 + $0xac] ss:$28 sps:$4 sm:$0xff]  }
   0x8   :  { %1201 = vmatprep.subr.bf16.mxu1 %v4711_v7  ;;  %v4723_v15 = vld [vmem:[%s7106_s1 + $0x464] ss:$28 sps:$4 sm:$0xff]   ;;  %v4729_v19 = vld [vmem:[%s7106_s1 + $0x42c] ss:$28 sps:$4 sm:$0xff]   ;;  %v4733_v22 = vld [vmem:[%s7106_s1 + $0x74] ss:$28 sps:$4 sm:$0xff]  }
   0x9   :  { %v4725_v16 = vld [vmem:[%s7106_s1 + $0xe0] ss:$28 sps:$4 sm:$0xff]   ;;  %v4731_v20 = vld [vmem:[%s7106_s1 + $0xa8] ss:$28 sps:$4 sm:$0xff]   ;;  %v4735_v23 = vld [vmem:[%s7106_s1 + $0x3f4] ss:$28 sps:$4 sm:$0xff]  }
   0xa   :  { %1159 = vmatpush1.bf16.msra.mxu0 %v4713_v8  ;;  %v4726_v17 = vld [vmem:[%s7106_s1 + $0x460] ss:$28 sps:$4 sm:$0xff]   ;;  %v4732_v21 = vld [vmem:[%s7106_s1 + $0x428] ss:$28 sps:$4 sm:$0xff]   ;;  %v4737_v24 = vld [vmem:[%s7106_s1 + $0x70] ss:$28 sps:$4 sm:$0xff]  }
   0xb   :  { %1202 = vmatpush1.bf16.msra.mxu1 %v4714_v9  ;;  %1160 = vmatprep.subr.bf16.mxu0 %v4715_v10  ;;  %v4738_v25 = vld [vmem:[%s7106_s1 + $0x3f0] ss:$28 sps:$4 sm:$0xff]   ;;  %v4739_v26 = vld [vmem:[%s7106_s1 + $0x3c] ss:$28 sps:$4 sm:$0xff]   ;;  %v4745_v30 = vld [vmem:[%s7106_s1 + $0x4] ss:$28 sps:$4 sm:$0xff]  }
   0xc   :  { %1203 = vmatprep.subr.bf16.mxu1 %v4717_v11  ;;  %v4741_v27 = vld [vmem:[%s7106_s1 + $0x3bc] ss:$28 sps:$4 sm:$0xff]   ;;  %v4747_v31 = vld [vmem:[%s7106_s1 + $0x384] ss:$28 sps:$4 sm:$0xff]   ;;  %v56_v34 = vld [vmem:[%s7105_s0 + $0x10] sm:$0xff]  ;;  %vm5431_vm0 = vmmov 0  }
   0xd   :  { %v4743_v28 = vld [vmem:[%s7106_s1 + $0x38] ss:$28 sps:$4 sm:$0xff]   ;;  %v4749_v32 = vld [vmem:[%s7106_s1] ss:$28 sps:$4 sm:$0xff]   ;;  %v59_v35 = vld [vmem:[%s7105_s0 + $0x28] sm:$0xff] }
   0xe   :  { %1161 = vmatpush1.bf16.msra.mxu0 %v4719_v12  ;;  %v4744_v29 = vld [vmem:[%s7106_s1 + $0x3b8] ss:$28 sps:$4 sm:$0xff]   ;;  %v4750_v33 = vld [vmem:[%s7106_s1 + $0x380] ss:$28 sps:$4 sm:$0xff]   ;;  %v4751_v36 = vld [vmem:[%s7106_s1 + $0x34c] ss:$28 sps:$4 sm:$0xff]   ;;  %v5633_v39 = vpack.c.bf16 %v59_v35, %v56_v34 }
   0xf   :  { %1204 = vmatpush1.bf16.msra.mxu1 %v4720_v13  ;;  %1162 = vmatprep.subr.bf16.mxu0 %v4721_v14  ;;  %v4755_v37 = vld [vmem:[%s7106_s1 + $0x194] ss:$28 sps:$4 sm:$0xff]   ;;  %v4756_v40 = vld [vmem:[%s7106_s1 + $0x348] ss:$28 sps:$4 sm:$0xff]   ;;  %v4761_v42 = vld [vmem:[%s7106_s1 + $0x15c] ss:$28 sps:$4 sm:$0xff]  }
  0x10   :  { %1205 = vmatprep.subr.bf16.mxu1 %v4723_v15  ;;  %v4753_v38 = vld [vmem:[%s7106_s1 + $0x190] ss:$28 sps:$4 sm:$0xff]   ;;  %v4759_v43 = vld [vmem:[%s7106_s1 + $0x158] ss:$28 sps:$4 sm:$0xff]   ;;  %v4767_v46 = vld [vmem:[%s7106_s1 + $0x124] ss:$28 sps:$4 sm:$0xff]  }
  0x11   :  { %v4757_v41 = vld [vmem:[%s7106_s1 + $0x314] ss:$28 sps:$4 sm:$0xff]   ;;  %v4763_v45 = vld [vmem:[%s7106_s1 + $0x2dc] ss:$28 sps:$4 sm:$0xff]   ;;  %v4769_v49 = vld [vmem:[%s7106_s1 + $0x2a4] ss:$28 sps:$4 sm:$0xff]  }
  0x12   :  { %1163 = vmatpush1.bf16.msra.mxu0 %v4725_v16  ;;  %v4762_v44 = vld [vmem:[%s7106_s1 + $0x310] ss:$28 sps:$4 sm:$0xff]   ;;  %v4765_v47 = vld [vmem:[%s7106_s1 + $0x120] ss:$28 sps:$4 sm:$0xff]   ;;  %v4768_v48 = vld [vmem:[%s7106_s1 + $0x2d8] ss:$28 sps:$4 sm:$0xff]  }
  0x13   :  { %1206 = vmatpush1.bf16.msra.mxu1 %v4726_v17  ;;  %1164 = vmatprep.subr.bf16.mxu0 %v4727_v18  ;;  %v4773_v50 = vld [vmem:[%s7106_s1 + $0xec] ss:$28 sps:$4 sm:$0xff]   ;;  %v4774_v54 = vld [vmem:[%s7106_s1 + $0x2a0] ss:$28 sps:$4 sm:$0xff]   ;;  %v4779_v57 = vld [vmem:[%s7106_s1 + $0xb4] ss:$28 sps:$4 sm:$0xff]  }
  0x14   :  { %1207 = vmatprep.subr.bf16.mxu1 %v4729_v19  ;;  %v55_v51 = vld [vmem:[%s7105_s0 + $0x8] sm:$0xff]  ;;  %v4781_v60 = vld [vmem:[%s7106_s1 + $0x234] ss:$28 sps:$4 sm:$0xff]   ;;  %v4785_v61 = vld [vmem:[%s7106_s1 + $0x7c] ss:$28 sps:$4 sm:$0xff]  }
  0x15   :  { %v4771_v53 = vld [vmem:[%s7106_s1 + $0xe8] ss:$28 sps:$4 sm:$0xff]   ;;  %v5681_v55 = vpack.c.bf16 %v58_v52, %v55_v51  ;;  %v4777_v58 = vld [vmem:[%s7106_s1 + $0xb0] ss:$28 sps:$4 sm:$0xff]   ;;  %v4783_v62 = vld [vmem:[%s7106_s1 + $0x78] ss:$28 sps:$4 sm:$0xff]  }
  0x16   :  { %1165 = vmatpush1.bf16.msra.mxu0 %v4731_v20  ;;  %v4775_v56 = vld [vmem:[%s7106_s1 + $0x26c] ss:$28 sps:$4 sm:$0xff]   ;;  %v4787_v0 = vld [vmem:[%s7106_s1 + $0x1fc] ss:$28 sps:$4 sm:$0xff]   ;;  %v4791_v1 = vld [vmem:[%s7106_s1 + $0x44] ss:$28 sps:$4 sm:$0xff]  }
  0x17   :  { %1208 = vmatpush1.bf16.msra.mxu1 %v4732_v21  ;;  %1166 = vmatprep.subr.bf16.mxu0 %v4733_v22  ;;  %v4780_v59 = vld [vmem:[%s7106_s1 + $0x268] ss:$28 sps:$4 sm:$0xff]   ;;  %v4786_v63 = vld [vmem:[%s7106_s1 + $0x230] ss:$28 sps:$4 sm:$0xff]   ;;  %v4789_v2 = vld [vmem:[%s7106_s1 + $0x40] ss:$28 sps:$4 sm:$0xff]  }
  0x18   :  { %1209 = vmatprep.subr.bf16.mxu1 %v4735_v23  ;;  %1188 = vmatprep.mubr.bf16.mxu0 %v5681_v55  ;;  %v4792_v4 = vld [vmem:[%s7106_s1 + $0x1f8] ss:$28 sps:$4 sm:$0xff]   ;;  %v4793_v5 = vld [vmem:[%s7106_s1 + $0x1c4] ss:$28 sps:$4 sm:$0xff]   ;;  %v4797_v6 = vld [vmem:[%s7106_s1 + $0xc] ss:$28 sps:$4 sm:$0xff]  }
  0x19   :  { %v4795_v7 = vld [vmem:[%s7106_s1 + $0x8] ss:$28 sps:$4 sm:$0xff]   ;;  %v4798_v8 = vld [vmem:[%s7106_s1 + $0x1c0] ss:$28 sps:$4 sm:$0xff]   ;;  %v4801_v11 = vld [vmem:[%s7106_s1 + $0x354] ss:$28 sps:$4 sm:$0xff]  }
  0x1a   :  { %1167 = vmatpush1.bf16.msra.mxu0 %v4737_v24  ;;  %v54_v9 = vld [vmem:[%s7105_s0] sm:$0xff]  ;;  %v57_v10 = vld [vmem:[%s7105_s0 + $0x18] sm:$0xff]  ;;  %v4804_v12 = vld [vmem:[%s7106_s1 + $0x514] ss:$28 sps:$4 sm:$0xff]  }
  0x1b   :  { %1210 = vmatpush1.bf16.msra.mxu1 %v4738_v25  ;;  %1168 = vmatprep.subr.bf16.mxu0 %v4739_v26  ;;  %v5745_v13 = vpack.c.bf16 %v57_v10, %v54_v9  ;;  %v4799_v14 = vld [vmem:[%s7106_s1 + $0x350] ss:$28 sps:$4 sm:$0xff]   ;;  %v4807_v16 = vld [vmem:[%s7106_s1 + $0x31c] ss:$28 sps:$4 sm:$0xff]   ;;  %v4813_v20 = vld [vmem:[%s7106_s1 + $0x2e4] ss:$28 sps:$4 sm:$0xff]  }
  0x1c   :  { %1211 = vmatprep.subr.bf16.mxu1 %v4741_v27  ;;  %v4802_v15 = vld [vmem:[%s7106_s1 + $0x510] ss:$28 sps:$4 sm:$0xff]   ;;  %v4810_v17 = vld [vmem:[%s7106_s1 + $0x4dc] ss:$28 sps:$4 sm:$0xff]   ;;  %v4816_v21 = vld [vmem:[%s7106_s1 + $0x4a4] ss:$28 sps:$4 sm:$0xff]  }
  0x1d   :  { %v4805_v18 = vld [vmem:[%s7106_s1 + $0x318] ss:$28 sps:$4 sm:$0xff]   ;;  %v4811_v22 = vld [vmem:[%s7106_s1 + $0x2e0] ss:$28 sps:$4 sm:$0xff]   ;;  %v4819_v24 = vld [vmem:[%s7106_s1 + $0x2ac] ss:$28 sps:$4 sm:$0xff]  }
  0x1e   :  { %1169 = vmatpush1.bf16.msra.mxu0 %v4743_v28  ;;  %v4808_v19 = vld [vmem:[%s7106_s1 + $0x4d8] ss:$28 sps:$4 sm:$0xff]   ;;  %v4814_v23 = vld [vmem:[%s7106_s1 + $0x4a0] ss:$28 sps:$4 sm:$0xff]   ;;  %v4822_v25 = vld [vmem:[%s7106_s1 + $0x46c] ss:$28 sps:$4 sm:$0xff]  }
  0x1f   :  { %1212 = vmatpush1.bf16.msra.mxu1 %v4744_v29  ;;  %1170 = vmatprep.subr.bf16.mxu0 %v4745_v30  ;;  %v4817_v26 = vld [vmem:[%s7106_s1 + $0x2a8] ss:$28 sps:$4 sm:$0xff]   ;;  %v4825_v28 = vld [vmem:[%s7106_s1 + $0x274] ss:$28 sps:$4 sm:$0xff]   ;;  %v4850_v51 = vld [vmem:[%s7106_s1 + $0x160] ss:$28 sps:$4 sm:$0xff]  }
  0x20   :  { %1213 = vmatprep.subr.bf16.mxu1 %v4747_v31  ;;  %v4820_v27 = vld [vmem:[%s7106_s1 + $0x468] ss:$28 sps:$4 sm:$0xff]   ;;  %v4828_v29 = vld [vmem:[%s7106_s1 + $0x434] ss:$28 sps:$4 sm:$0xff]   ;;  %v4871_v52 = vld [vmem:[%s7106_s1 + $0x4e0] ss:$28 sps:$4 sm:$0xff]  }
  0x21   :  { %v4823_v30 = vld [vmem:[%s7106_s1 + $0x270] ss:$28 sps:$4 sm:$0xff]   ;;  %v4829_v34 = vld [vmem:[%s7106_s1 + $0x238] ss:$28 sps:$4 sm:$0xff]   ;;  %v4868_v9 = vld [vmem:[%s7106_s1 + $0x48] ss:$28 sps:$4 sm:$0xff]  }
  0x22   :  { %1171 = vmatpush1.bf16.msra.mxu0 %v4749_v32  ;;  %v4826_v31 = vld [vmem:[%s7106_s1 + $0x430] ss:$28 sps:$4 sm:$0xff]   ;;  %v4831_v32 = vld [vmem:[%s7106_s1 + $0x23c] ss:$28 sps:$4 sm:$0xff]  }
  0x23   :  { %1214 = vmatpush1.bf16.msra.mxu1 %v4750_v33  ;;  %1172 = vmatprep.subr.bf16.mxu0 %v4751_v36  ;;  %v4834_v33 = vld [vmem:[%s7106_s1 + $0x3fc] ss:$28 sps:$4 sm:$0xff]   ;;  %v4837_v36 = vld [vmem:[%s7106_s1 + $0x204] ss:$28 sps:$4 sm:$0xff]   ;;  %v4876_v10 = vld [vmem:[%s7106_s1 + $0x14] ss:$28 sps:$4 sm:$0xff]  }
  0x24   :  { %1242 = vmatprep.subr.bf16.mxu1 %v4755_v37  ;;  %v4832_v35 = vld [vmem:[%s7106_s1 + $0x3f8] ss:$28 sps:$4 sm:$0xff]   ;;  %v4840_v37 = vld [vmem:[%s7106_s1 + $0x3c4] ss:$28 sps:$4 sm:$0xff]  }
  0x26   :  { %1232 = vmatmul.mubr.bf16.vlgmr.msra.gmra.mxu1 %v5633_v39  ;;  %1173 = vmatpush2.bf16.msra.mxu0 %v4756_v40  ;;  %v4838_v40 = vld [vmem:[%s7106_s1 + $0x3c0] ss:$28 sps:$4 sm:$0xff]  }
  0x27   :  { %1243 = vmatpush1.bf16.msra.mxu1 %v4753_v38  ;;  %1174 = vmatprep.subr.bf16.mxu0 %v4757_v41  ;;  %v4835_v38 = vld [vmem:[%s7106_s1 + $0x200] ss:$28 sps:$4 sm:$0xff]   ;;  %v4843_v41 = vld [vmem:[%s7106_s1 + $0x1cc] ss:$28 sps:$4 sm:$0xff]  }
  0x28   :  { %1244 = vmatprep.subr.bf16.mxu1 %v4761_v42  ;;  %1274 = vmatprep.mubr.bf16.mxu1 %v5681_v55  ;;  %v4846_v42 = vld [vmem:[%s7106_s1 + $0x38c] ss:$28 sps:$4 sm:$0xff]  }
  0x2a   :  { %1175 = vmatpush2.bf16.msra.mxu0 %v4762_v44  ;;  %v4844_v44 = vld [vmem:[%s7106_s1 + $0x388] ss:$28 sps:$4 sm:$0xff]  }
  0x2b   :  { %1245 = vmatpush1.bf16.msra.mxu1 %v4759_v43  ;;  %1176 = vmatprep.subr.bf16.mxu0 %v4763_v45  ;;  %v4841_v43 = vld [vmem:[%s7106_s1 + $0x1c8] ss:$28 sps:$4 sm:$0xff]   ;;  %v4849_v45 = vld [vmem:[%s7106_s1 + $0x19c] ss:$28 sps:$4 sm:$0xff]  }
  0x2c   :  { %1246 = vmatprep.subr.bf16.mxu1 %v4767_v46  ;;  %v4867_v46 = vld [vmem:[%s7106_s1 + $0x51c] ss:$28 sps:$4 sm:$0xff]  }
  0x2e   :  { %1177 = vmatpush2.bf16.msra.mxu0 %v4768_v48  ;;  %v4852_v48 = vld [vmem:[%s7106_s1 + $0x164] ss:$28 sps:$4 sm:$0xff]  }
  0x2f   :  { %1247 = vmatpush1.bf16.msra.mxu1 %v4765_v47  ;;  %1178 = vmatprep.subr.bf16.mxu0 %v4769_v49  ;;  %v4847_v47 = vld [vmem:[%s7106_s1 + $0x198] ss:$28 sps:$4 sm:$0xff]  }
  0x30   :  { %1248 = vmatprep.subr.bf16.mxu1 %v4773_v50  ;;  %v4865_v49 = vld [vmem:[%s7106_s1 + $0x518] ss:$28 sps:$4 sm:$0xff]   ;;  %v4873_v50 = vld [vmem:[%s7106_s1 + $0x4e4] ss:$28 sps:$4 sm:$0xff]  }
  0x32   :  { %1179 = vmatpush2.bf16.msra.mxu0 %v4774_v54  ;;  %v4879_v54 = vld [vmem:[%s7106_s1 + $0x4ac] ss:$28 sps:$4 sm:$0xff]  }
  0x33   :  { %1249 = vmatpush1.bf16.msra.mxu1 %v4771_v53  ;;  %1180 = vmatprep.subr.bf16.mxu0 %v4775_v56  ;;  %v4855_v53 = vld [vmem:[%s7106_s1 + $0x12c] ss:$28 sps:$4 sm:$0xff]  }
  0x34   :  { %1250 = vmatprep.subr.bf16.mxu1 %v4779_v57  ;;  %v4853_v56 = vld [vmem:[%s7106_s1 + $0x128] ss:$28 sps:$4 sm:$0xff]   ;;  %v4858_v57 = vld [vmem:[%s7106_s1 + $0xf4] ss:$28 sps:$4 sm:$0xff]  }
  0x36   :  { %1181 = vmatpush2.bf16.msra.mxu0 %v4780_v59  ;;  %v4885_v59 = vld [vmem:[%s7106_s1 + $0x474] ss:$28 sps:$4 sm:$0xff]  }
  0x37   :  { %1251 = vmatpush1.bf16.msra.mxu1 %v4777_v58  ;;  %1182 = vmatprep.subr.bf16.mxu0 %v4781_v60  ;;  %v4877_v58 = vld [vmem:[%s7106_s1 + $0x4a8] ss:$28 sps:$4 sm:$0xff]   ;;  %v4856_v60 = vld [vmem:[%s7106_s1 + $0xf0] ss:$28 sps:$4 sm:$0xff]  }
  0x38   :  { %1252 = vmatprep.subr.bf16.mxu1 %v4785_v61  ;;  %v4861_v61 = vld [vmem:[%s7106_s1 + $0xbc] ss:$28 sps:$4 sm:$0xff]  }
  0x3a   :  { %1183 = vmatpush2.bf16.msra.mxu0 %v4786_v63  ;;  %v4891_v63 = vld [vmem:[%s7106_s1 + $0x43c] ss:$28 sps:$4 sm:$0xff]  }
  0x3b   :  { %1253 = vmatpush1.bf16.msra.mxu1 %v4783_v62  ;;  %1184 = vmatprep.subr.bf16.mxu0 %v4787_v0  ;;  %v4883_v62 = vld [vmem:[%s7106_s1 + $0x470] ss:$28 sps:$4 sm:$0xff]   ;;  %v4859_v0 = vld [vmem:[%s7106_s1 + $0xb8] ss:$28 sps:$4 sm:$0xff]  }
  0x3c   :  { %1254 = vmatprep.subr.bf16.mxu1 %v4791_v1  ;;  %v4864_v1 = vld [vmem:[%s7106_s1 + $0x84] ss:$28 sps:$4 sm:$0xff]  }
  0x3e   :  { %1185 = vmatpush2.bf16.msra.mxu0 %v4792_v4  ;;  %v4897_v4 = vld [vmem:[%s7106_s1 + $0x404] ss:$28 sps:$4 sm:$0xff]  }
  0x3f   :  { %1255 = vmatpush1.bf16.msra.mxu1 %v4789_v2  ;;  %1186 = vmatprep.subr.bf16.mxu0 %v4793_v5  ;;  %v4889_v2 = vld [vmem:[%s7106_s1 + $0x438] ss:$28 sps:$4 sm:$0xff]   ;;  %v4862_v5 = vld [vmem:[%s7106_s1 + $0x80] ss:$28 sps:$4 sm:$0xff]  }
  0x40   :  { %1256 = vmatprep.subr.bf16.mxu1 %v4797_v6  ;;  %v4870_v6 = vld [vmem:[%s7106_s1 + $0x4c] ss:$28 sps:$4 sm:$0xff]  }
  0x42   :  { %1187 = vmatpush2.bf16.msra.mxu0 %v4798_v8  ;;  %v4903_v8 = vld [vmem:[%s7106_s1 + $0x3cc] ss:$28 sps:$4 sm:$0xff]  }
  0x43   :  { %1257 = vmatpush1.bf16.msra.mxu1 %v4795_v7  ;;  %1285 = vmatprep.subr.bf16.mxu0 %v4804_v12  ;;  %v4895_v7 = vld [vmem:[%s7106_s1 + $0x400] ss:$28 sps:$4 sm:$0xff]   ;;  %v4909_v12 = vld [vmem:[%s7106_s1 + $0x394] ss:$28 sps:$4 sm:$0xff]  }
  0x44   :  { %1258 = vmatprep.subr.bf16.mxu1 %v4801_v11  ;;  %v4901_v11 = vld [vmem:[%s7106_s1 + $0x3c8] ss:$28 sps:$4 sm:$0xff]  }
  0x45   :  { %1189 = vmatmul.mubr.bf16.vlgmr.msra.gmra.mxu0 %v5745_v13 }
  0x46   :  { %1286 = vmatpush1.bf16.msra.mxu0 %v4802_v15  ;;  %1317 = vmatprep.mubr.bf16.mxu0 %v5429_v3  ;;  %v4907_v15 = vld [vmem:[%s7106_s1 + $0x390] ss:$28 sps:$4 sm:$0xff]  }
  0x47   :  { %1259 = vmatpush2.bf16.msra.mxu1 %v4799_v14  ;;  %1287 = vmatprep.subr.bf16.mxu0 %v4810_v17  ;;  %v4874_v14 = vld [vmem:[%s7106_s1 + $0x10] ss:$28 sps:$4 sm:$0xff]   ;;  %v4913_v17 = vld [vmem:[%s7106_s1 + $0x360] ss:$28 sps:$4 sm:$0xff]  }
  0x48   :  { %1260 = vmatprep.subr.bf16.mxu1 %v4807_v16  ;;  %v4882_v16 = vld [vmem:[%s7106_s1 + $0x35c] ss:$28 sps:$4 sm:$0xff]  }
  0x4a   :  { %1288 = vmatpush1.bf16.msra.mxu0 %v4808_v19  ;;  %v4914_v19 = vld [vmem:[%s7106_s1 + $0x1a0] ss:$28 sps:$4 sm:$0xff]  }
  0x4b   :  { %1261 = vmatpush2.bf16.msra.mxu1 %v4805_v18  ;;  %1289 = vmatprep.subr.bf16.mxu0 %v4816_v21  ;;  %v4880_v18 = vld [vmem:[%s7106_s1 + $0x358] ss:$28 sps:$4 sm:$0xff]   ;;  %v4918_v21 = vld [vmem:[%s7106_s1 + $0x328] ss:$28 sps:$4 sm:$0xff]  }
  0x4c   :  { %1262 = vmatprep.subr.bf16.mxu1 %v4813_v20  ;;  %v4888_v20 = vld [vmem:[%s7106_s1 + $0x324] ss:$28 sps:$4 sm:$0xff]  }
  0x4e   :  { %1290 = vmatpush1.bf16.msra.mxu0 %v4814_v23  ;;  %v4919_v23 = vld [vmem:[%s7106_s1 + $0x168] ss:$28 sps:$4 sm:$0xff]  }
  0x4f   :  { %1263 = vmatpush2.bf16.msra.mxu1 %v4811_v22  ;;  %1291 = vmatprep.subr.bf16.mxu0 %v4822_v25  ;;  %v4886_v22 = vld [vmem:[%s7106_s1 + $0x320] ss:$28 sps:$4 sm:$0xff]   ;;  %v4923_v25 = vld [vmem:[%s7106_s1 + $0x2f0] ss:$28 sps:$4 sm:$0xff]  }
  0x50   :  { %1264 = vmatprep.subr.bf16.mxu1 %v4819_v24  ;;  %v4894_v24 = vld [vmem:[%s7106_s1 + $0x2ec] ss:$28 sps:$4 sm:$0xff]  }
  0x52   :  { %1292 = vmatpush1.bf16.msra.mxu0 %v4820_v27  ;;  %v4924_v27 = vld [vmem:[%s7106_s1 + $0x130] ss:$28 sps:$4 sm:$0xff]  }
  0x53   :  { %1265 = vmatpush2.bf16.msra.mxu1 %v4817_v26  ;;  %1293 = vmatprep.subr.bf16.mxu0 %v4828_v29  ;;  %v4892_v26 = vld [vmem:[%s7106_s1 + $0x2e8] ss:$28 sps:$4 sm:$0xff]   ;;  %v4898_v29 = vld [vmem:[%s7106_s1 + $0x2b0] ss:$28 sps:$4 sm:$0xff]  }
  0x54   :  { %1266 = vmatprep.subr.bf16.mxu1 %v4825_v28  ;;  %v4900_v28 = vld [vmem:[%s7106_s1 + $0x2b4] ss:$28 sps:$4 sm:$0xff]  }
  0x56   :  { %1294 = vmatpush1.bf16.msra.mxu0 %v4826_v31  ;;  %v4906_v31 = vld [vmem:[%s7106_s1 + $0x27c] ss:$28 sps:$4 sm:$0xff]  }
  0x57   :  { %1267 = vmatpush2.bf16.msra.mxu1 %v4823_v30  ;;  %1295 = vmatprep.subr.bf16.mxu0 %v4834_v33  ;;  %v4926_v30 = vld [vmem:[%s7106_s1 + $0xf8] ss:$28 sps:$4 sm:$0xff]  }
  0x58   :  { %1268 = vmatprep.subr.bf16.mxu1 %v4831_v32  ;;  %v4928_v32 = vld [vmem:[%s7106_s1 + $0x280] ss:$28 sps:$4 sm:$0xff]   ;;  %v4904_v33 = vld [vmem:[%s7106_s1 + $0x278] ss:$28 sps:$4 sm:$0xff]  }
  0x5a   :  { %1296 = vmatpush1.bf16.msra.mxu0 %v4832_v35  ;;  %v4929_v35 = vld [vmem:[%s7106_s1 + $0xc0] ss:$28 sps:$4 sm:$0xff]  }
  0x5b   :  { %1269 = vmatpush2.bf16.msra.mxu1 %v4829_v34  ;;  %1297 = vmatprep.subr.bf16.mxu0 %v4840_v37  ;;  %v4912_v34 = vld [vmem:[%s7106_s1 + $0x244] ss:$28 sps:$4 sm:$0xff]  }
  0x5c   :  { %1270 = vmatprep.subr.bf16.mxu1 %v4837_v36  ;;  %v4931_v36 = vld [vmem:[%s7106_s1 + $0x248] ss:$28 sps:$4 sm:$0xff]   ;;  %v4910_v37 = vld [vmem:[%s7106_s1 + $0x240] ss:$28 sps:$4 sm:$0xff]  }
  0x5e   :  { %1298 = vmatpush1.bf16.msra.mxu0 %v4838_v40  ;;  %v4932_v40 = vld [vmem:[%s7106_s1 + $0x88] ss:$28 sps:$4 sm:$0xff]  }
  0x5f   :  { %1271 = vmatpush2.bf16.msra.mxu1 %v4835_v38  ;;  %1299 = vmatprep.subr.bf16.mxu0 %v4846_v42  ;;  %v4917_v38 = vld [vmem:[%s7106_s1 + $0x20c] ss:$28 sps:$4 sm:$0xff]  }
  0x60   :  { %1272 = vmatprep.subr.bf16.mxu1 %v4843_v41  ;;  %v4934_v41 = vld [vmem:[%s7106_s1 + $0x210] ss:$28 sps:$4 sm:$0xff]   ;;  %v4915_v42 = vld [vmem:[%s7106_s1 + $0x208] ss:$28 sps:$4 sm:$0xff]  }
  0x62   :  { %1300 = vmatpush1.bf16.msra.mxu0 %v4844_v44  ;;  %v4935_v44 = vld [vmem:[%s7106_s1 + $0x50] ss:$28 sps:$4 sm:$0xff]  }
  0x63   :  { %1273 = vmatpush2.bf16.msra.mxu1 %v4841_v43  ;;  %1328 = vmatprep.subr.bf16.mxu0 %v4849_v45  ;;  %v4922_v43 = vld [vmem:[%s7106_s1 + $0x1d4] ss:$28 sps:$4 sm:$0xff]  }
  0x64   :  { %1371 = vmatprep.subr.bf16.mxu1 %v4867_v46  ;;  %v4937_v45 = vld [vmem:[%s7106_s1 + $0x1d8] ss:$28 sps:$4 sm:$0xff]   ;;  %v4920_v46 = vld [vmem:[%s7106_s1 + $0x1d0] ss:$28 sps:$4 sm:$0xff]  }
  0x65   :  { %1318 = vmatmul.mubr.bf16.vlgmr.msra.gmra.mxu0 %v5633_v39 }
  0x66   :  { %1275 = vmatmul.mubr.bf16.vlgmr.msra.gmra.mxu1 %v5745_v13  ;;  %1329 = vmatpush1.bf16.msra.mxu0 %v4847_v47  ;;  %v4938_v47 = vld [vmem:[%s7106_s1 + $0x18] ss:$28 sps:$4 sm:$0xff]  }
  0x67   :  { %1372 = vmatpush1.bf16.msra.mxu1 %v4865_v49  ;;  %1330 = vmatprep.subr.bf16.mxu0 %v4852_v48  ;;  %v4945_v48 = vld [vmem:[%s7108_s3 + $0xe4] ss:$16 sps:$4 sm:$0xff]   ;;  %v4927_v49 = vld [vmem:[%s7106_s1 + $0x520] ss:$28 sps:$4 sm:$0xff]  }
  0x68   :  { %1373 = vmatprep.subr.bf16.mxu1 %v4873_v50  ;;  %1403 = vmatprep.mubr.bf16.mxu1 %v5429_v3  ;;  %v4943_v50 = vld [vmem:[%s7108_s3 + $0xe0] ss:$16 sps:$4 sm:$0xff]  }
  0x69   :  { %1360 = vmatprep.mubr.bf16.mxu0 %v5681_v55 }
  0x6a   :  { %1331 = vmatpush1.bf16.msra.mxu0 %v4850_v51  ;;  %v4948_v51 = vld [vmem:[%s7108_s3 + $0xc4] ss:$16 sps:$4 sm:$0xff]  }
  0x6b   :  { %1374 = vmatpush1.bf16.msra.mxu1 %v4871_v52  ;;  %1332 = vmatprep.subr.bf16.mxu0 %v4855_v53  ;;  %v5430_v52 = vmov 0.0   ;;  %v4930_v53 = vld [vmem:[%s7106_s1 + $0x4e8] ss:$28 sps:$4 sm:$0xff]  }
  0x6c   :  { %1375 = vmatprep.subr.bf16.mxu1 %v4879_v54  ;;  %v4946_v54 = vld [vmem:[%s7108_s3 + $0xc0] ss:$16 sps:$4 sm:$0xff]  }
  0x6e   :  { %1333 = vmatpush1.bf16.msra.mxu0 %v4853_v56  ;;  %v4951_v56 = vld [vmem:[%s7108_s3 + $0xa4] ss:$16 sps:$4 sm:$0xff]  }
  0x6f   :  { %1376 = vmatpush1.bf16.msra.mxu1 %v4877_v58  ;;  %1334 = vmatprep.subr.bf16.mxu0 %v4858_v57  ;;  %v4949_v57 = vld [vmem:[%s7108_s3 + $0xa0] ss:$16 sps:$4 sm:$0xff]   ;;  %v4954_v58 = vld [vmem:[%s7108_s3 + $0x84] ss:$16 sps:$4 sm:$0xff]  }
  0x70   :  { %1377 = vmatprep.subr.bf16.mxu1 %v4885_v59  ;;  %v4936_v59 = vld [vmem:[%s7106_s1 + $0x478] ss:$28 sps:$4 sm:$0xff]  }
  0x72   :  { %1335 = vmatpush1.bf16.msra.mxu0 %v4856_v60  ;;  %v4952_v60 = vld [vmem:[%s7108_s3 + $0x80] ss:$16 sps:$4 sm:$0xff]  }
  0x73   :  { %1378 = vmatpush1.bf16.msra.mxu1 %v4883_v62  ;;  %1336 = vmatprep.subr.bf16.mxu0 %v4861_v61  ;;  %v4957_v61 = vld [vmem:[%s7108_s3 + $0x64] ss:$16 sps:$4 sm:$0xff]   ;;  %v4939_v62 = vld [vmem:[%s7106_s1 + $0x440] ss:$28 sps:$4 sm:$0xff]  }
  0x74   :  { %1379 = vmatprep.subr.bf16.mxu1 %v4891_v63  ;;  %v4955_v63 = vld [vmem:[%s7108_s3 + $0x60] ss:$16 sps:$4 sm:$0xff]  }
  0x76   :  { %1337 = vmatpush1.bf16.msra.mxu0 %v4859_v0  ;;  %v4960_v0 = vld [vmem:[%s7108_s3 + $0x44] ss:$16 sps:$4 sm:$0xff]  }
  0x77   :  { %1380 = vmatpush1.bf16.msra.mxu1 %v4889_v2  ;;  %1338 = vmatprep.subr.bf16.mxu0 %v4864_v1  ;;  %v4940_v1 = vld [vmem:[%s7106_s1 + $0x408] ss:$28 sps:$4 sm:$0xff]   ;;  %v4958_v2 = vld [vmem:[%s7108_s3 + $0x40] ss:$16 sps:$4 sm:$0xff]  }
  0x78   :  { %1381 = vmatprep.subr.bf16.mxu1 %v4897_v4  ;;  %v4963_v4 = vld [vmem:[%s7108_s3 + $0x24] ss:$16 sps:$4 sm:$0xff]  }
  0x7a   :  { %1339 = vmatpush1.bf16.msra.mxu0 %v4862_v5  ;;  %v4941_v5 = vld [vmem:[%s7106_s1 + $0x3d0] ss:$28 sps:$4 sm:$0xff]  }
  0x7b   :  { %1382 = vmatpush1.bf16.msra.mxu1 %v4895_v7  ;;  %1340 = vmatprep.subr.bf16.mxu0 %v4870_v6  ;;  %v4961_v6 = vld [vmem:[%s7108_s3 + $0x20] ss:$16 sps:$4 sm:$0xff]   ;;  %v4966_v7 = vld [vmem:[%s7108_s3 + $0x4] ss:$16 sps:$4 sm:$0xff]  }
  0x7c   :  { %1383 = vmatprep.subr.bf16.mxu1 %v4903_v8  ;;  %v4942_v8 = vld [vmem:[%s7106_s1 + $0x398] ss:$28 sps:$4 sm:$0xff]  }
  0x7e   :  { %1341 = vmatpush1.bf16.msra.mxu0 %v4868_v9  ;;  %v4964_v9 = vld [vmem:[%s7108_s3] ss:$16 sps:$4 sm:$0xff]  }
  0x7f   :  { %1384 = vmatpush1.bf16.msra.mxu1 %v4901_v11  ;;  %1342 = vmatprep.subr.bf16.mxu0 %v4876_v10  ;;  %v4969_v10 = vld [vmem:[%s7108_s3 + $0x2e4] ss:$16 sps:$4 sm:$0xff]  }
  0x80   :  { %1385 = vmatprep.subr.bf16.mxu1 %v4909_v12  ;;  %v4972_v11 = vld [vmem:[%s7108_s3 + $0x1e4] ss:$16 sps:$4 sm:$0xff]   ;;  %v4967_v12 = vld [vmem:[%s7108_s3 + $0x2e0] ss:$16 sps:$4 sm:$0xff]  }
  0x82   :  { %1343 = vmatpush1.bf16.msra.mxu0 %v4874_v14  ;;  %v4970_v14 = vld [vmem:[%s7108_s3 + $0x1e0] ss:$16 sps:$4 sm:$0xff]  }
  0x83   :  { %1386 = vmatpush1.bf16.msra.mxu1 %v4907_v15  ;;  %1344 = vmatprep.subr.bf16.mxu0 %v4882_v16  ;;  %v4975_v15 = vld [vmem:[%s7108_s3 + $0x2c4] ss:$16 sps:$4 sm:$0xff]  }
  0x84   :  { %4597 = vmatprep.subr.bf16.mxu1 %v4913_v17  ;;  %v4978_v16 = vld [vmem:[%s7108_s3 + $0x1c4] ss:$16 sps:$4 sm:$0xff]   ;;  %v4973_v17 = vld [vmem:[%s7108_s3 + $0x2c0] ss:$16 sps:$4 sm:$0xff]  }
  0x86   :  { %1404 = vmatmul.mubr.bf16.vlgmr.msra.gmra.mxu1 %v5633_v39  ;;  %1345 = vmatpush2.bf16.msra.mxu0 %v4880_v18  ;;  %v4976_v18 = vld [vmem:[%s7108_s3 + $0x1c0] ss:$16 sps:$4 sm:$0xff]  }
  0x87   :  { %4598 = vmatpush3.bf16.msra.mxu1 %v4914_v19  ;;  %1346 = vmatprep.subr.bf16.mxu0 %v4888_v20  ;;  %v4981_v19 = vld [vmem:[%s7108_s3 + $0x2a4] ss:$16 sps:$4 sm:$0xff]  }
  0x88   :  { %4599 = vmatprep.subr.bf16.mxu1 %v4918_v21  ;;  %1446 = vmatprep.mubr.bf16.mxu1 %v5681_v55  ;;  %v4925_v55 = vld [vmem:[%s7106_s1 + $0x2b8] ss:$28 sps:$4 sm:$0xff]   ;;  %v4982_v21 = vld [vmem:[%s7108_s3 + $0x1a0] ss:$16 sps:$4 sm:$0xff]  }
  0x89   :  { %v4984_v20 = vld [vmem:[%s7108_s3 + $0x1a4] ss:$16 sps:$4 sm:$0xff]  }
  0x8a   :  { %1347 = vmatpush2.bf16.msra.mxu0 %v4886_v22  ;;  %v4987_v22 = vld [vmem:[%s7108_s3 + $0x284] ss:$16 sps:$4 sm:$0xff]  }
  0x8b   :  { %4600 = vmatpush3.bf16.msra.mxu1 %v4919_v23  ;;  %1348 = vmatprep.subr.bf16.mxu0 %v4894_v24  ;;  %v4990_v23 = vld [vmem:[%s7108_s3 + $0x184] ss:$16 sps:$4 sm:$0xff]   ;;  %v4985_v24 = vld [vmem:[%s7108_s3 + $0x280] ss:$16 sps:$4 sm:$0xff]  }
  0x8c   :  { %4601 = vmatprep.subr.bf16.mxu1 %v4923_v25  ;;  %v4988_v25 = vld [vmem:[%s7108_s3 + $0x180] ss:$16 sps:$4 sm:$0xff]  }
  0x8e   :  { %1349 = vmatpush2.bf16.msra.mxu0 %v4892_v26  ;;  %v4993_v26 = vld [vmem:[%s7108_s3 + $0x264] ss:$16 sps:$4 sm:$0xff]  }
  0x8f   :  { %4602 = vmatpush3.bf16.msra.mxu1 %v4924_v27  ;;  %1350 = vmatprep.subr.bf16.mxu0 %v4900_v28  ;;  %v4996_v27 = vld [vmem:[%s7108_s3 + $0x164] ss:$16 sps:$4 sm:$0xff]   ;;  %v4991_v28 = vld [vmem:[%s7108_s3 + $0x260] ss:$16 sps:$4 sm:$0xff]  }
  0x90   :  { %4603 = vmatprep.subr.bf16.mxu1 %v4925_v55  ;;  %v4994_v55 = vld [vmem:[%s7108_s3 + $0x160] ss:$16 sps:$4 sm:$0xff]  }
  0x92   :  { %1351 = vmatpush2.bf16.msra.mxu0 %v4898_v29  ;;  %v4999_v29 = vld [vmem:[%s7108_s3 + $0x244] ss:$16 sps:$4 sm:$0xff]  }
  0x93   :  { %4604 = vmatpush3.bf16.msra.mxu1 %v4926_v30  ;;  %1352 = vmatprep.subr.bf16.mxu0 %v4906_v31  ;;  %v5002_v30 = vld [vmem:[%s7108_s3 + $0x144] ss:$16 sps:$4 sm:$0xff]   ;;  %v4997_v31 = vld [vmem:[%s7108_s3 + $0x240] ss:$16 sps:$4 sm:$0xff]  }
  0x94   :  { %4605 = vmatprep.subr.bf16.mxu1 %v4928_v32  ;;  %v5000_v32 = vld [vmem:[%s7108_s3 + $0x140] ss:$16 sps:$4 sm:$0xff]  }
  0x96   :  { %1353 = vmatpush2.bf16.msra.mxu0 %v4904_v33  ;;  %v5005_v33 = vld [vmem:[%s7108_s3 + $0x224] ss:$16 sps:$4 sm:$0xff]  }
  0x97   :  { %4606 = vmatpush3.bf16.msra.mxu1 %v4929_v35  ;;  %1354 = vmatprep.subr.bf16.mxu0 %v4912_v34  ;;  %v5008_v34 = vld [vmem:[%s7108_s3 + $0x124] ss:$16 sps:$4 sm:$0xff]   ;;  %v5003_v35 = vld [vmem:[%s7108_s3 + $0x220] ss:$16 sps:$4 sm:$0xff]  }
  0x98   :  { %4607 = vmatprep.subr.bf16.mxu1 %v4931_v36  ;;  %v5006_v36 = vld [vmem:[%s7108_s3 + $0x120] ss:$16 sps:$4 sm:$0xff]  }
  0x9a   :  { %1355 = vmatpush2.bf16.msra.mxu0 %v4910_v37  ;;  %v5011_v37 = vld [vmem:[%s7108_s3 + $0x204] ss:$16 sps:$4 sm:$0xff]  }
  0x9b   :  { %4608 = vmatpush3.bf16.msra.mxu1 %v4932_v40  ;;  %1356 = vmatprep.subr.bf16.mxu0 %v4917_v38  ;;  %v5014_v38 = vld [vmem:[%s7108_s3 + $0x104] ss:$16 sps:$4 sm:$0xff]   ;;  %v5009_v40 = vld [vmem:[%s7108_s3 + $0x200] ss:$16 sps:$4 sm:$0xff]  }
  0x9c   :  { %4609 = vmatprep.subr.bf16.mxu1 %v4934_v41  ;;  %v5012_v41 = vld [vmem:[%s7108_s3 + $0x100] ss:$16 sps:$4 sm:$0xff]  }
  0x9e   :  { %1357 = vmatpush2.bf16.msra.mxu0 %v4915_v42  ;;  %v5017_v42 = vld [vmem:[%s7108_s3 + $0x3e4] ss:$16 sps:$4 sm:$0xff]  }
  0x9f   :  { %4610 = vmatpush3.bf16.msra.mxu1 %v4935_v44  ;;  %1358 = vmatprep.subr.bf16.mxu0 %v4922_v43  ;;  %v5044_v43 = vld [vmem:[%s7108_s3 + $0x4e4] ss:$16 sps:$4 sm:$0xff]   ;;  %v5015_v44 = vld [vmem:[%s7108_s3 + $0x3e0] ss:$16 sps:$4 sm:$0xff]  }
  0xa0   :  { %4611 = vmatprep.subr.bf16.mxu1 %v4937_v45  ;;  %v5020_v45 = vld [vmem:[%s7108_s3 + $0x3c4] ss:$16 sps:$4 sm:$0xff]  }
  0xa2   :  { %1359 = vmatpush2.bf16.msra.mxu0 %v4920_v46  ;;  %v5018_v46 = vld [vmem:[%s7108_s3 + $0x3c0] ss:$16 sps:$4 sm:$0xff]  }
  0xa3   :  { %4612 = vmatpush3.bf16.msra.mxu1 %v4938_v47  ;;  %4642 = vmatprep.subr.bf16.mxu0 %v5430_v52  ;;  %v5023_v47 = vld [vmem:[%s7108_s3 + $0x3a4] ss:$16 sps:$4 sm:$0xff]  }
  0xa4   :  { %2743 = vmatprep.subr.bf16.mxu1 %v4945_v48  ;;  %v5021_v48 = vld [vmem:[%s7108_s3 + $0x3a0] ss:$16 sps:$4 sm:$0xff]  }
  0xa5   :  { %1361 = vmatmul.mubr.bf16.vlgmr.msra.gmra.mxu0 %v5745_v13 }
  0xa6   :  { %1447 = vmatmul.mubr.bf16.vlgmr.msra.gmra.mxu1 %v5745_v13  ;;  %4643 = vmatpush3.bf16.msra.mxu0 %v4927_v49  ;;  %v4933_v13 = vld [vmem:[%s7106_s1 + $0x4b0] ss:$28 sps:$4 sm:$0xff]   ;;  %v5026_v49 = vld [vmem:[%s7108_s3 + $0x384] ss:$16 sps:$4 sm:$0xff]  }
  0xa7   :  { %4658 = vmatprep.mubr.msk.bf16.mxu0 %vm5431_vm0, %v5430_v52  ;;  %4644 = vmatprep.subr.bf16.mxu0 %v5430_v52 }
  0xa8   :  { %2744 = vmatpush1.bf16.msra.mxu1 %v4943_v50  ;;  %v5024_v50 = vld [vmem:[%s7108_s3 + $0x380] ss:$16 sps:$4 sm:$0xff]  }
  0xa9   :  { %2745 = vmatprep.subr.bf16.mxu1 %v4948_v51  ;;  %v5029_v51 = vld [vmem:[%s7108_s3 + $0x364] ss:$16 sps:$4 sm:$0xff]  }
  0xaa   :  { %4645 = vmatpush3.bf16.msra.mxu0 %v4930_v53  ;;  %v5027_v53 = vld [vmem:[%s7108_s3 + $0x360] ss:$16 sps:$4 sm:$0xff]  }
  0xab   :  { %4646 = vmatprep.subr.bf16.mxu0 %v5430_v52 }
  0xac   :  { %2746 = vmatpush1.bf16.msra.mxu1 %v4946_v54  ;;  %v5032_v54 = vld [vmem:[%s7108_s3 + $0x344] ss:$16 sps:$4 sm:$0xff]  }
  0xad   :  { %2747 = vmatprep.subr.bf16.mxu1 %v4951_v56  ;;  %v5030_v56 = vld [vmem:[%s7108_s3 + $0x340] ss:$16 sps:$4 sm:$0xff]  }
  0xae   :  { %4647 = vmatpush3.bf16.msra.mxu0 %v4933_v13  ;;  %v5035_v13 = vld [vmem:[%s7108_s3 + $0x324] ss:$16 sps:$4 sm:$0xff]  }
  0xaf   :  { %4648 = vmatprep.subr.bf16.mxu0 %v5430_v52 }
  0xb0   :  { %2748 = vmatpush1.bf16.msra.mxu1 %v4949_v57  ;;  %v257_v57 = vlaneseq }
  0xb1   :  { %2749 = vmatprep.subr.bf16.mxu1 %v4954_v58  ;;  %v5033_v58 = vld [vmem:[%s7108_s3 + $0x320] ss:$16 sps:$4 sm:$0xff]  }
  0xb2   :  { %4649 = vmatpush3.bf16.msra.mxu0 %v4936_v59  ;;  %v5038_v59 = vld [vmem:[%s7108_s3 + $0x304] ss:$16 sps:$4 sm:$0xff]  }
  0xb3   :  { %4650 = vmatprep.subr.bf16.mxu0 %v5430_v52 }
  0xb4   :  { %2750 = vmatpush1.bf16.msra.mxu1 %v4952_v60  ;;  %v6266_v60 = vshrl.u32 %v257_v57, 7 }
  0xb5   :  { %2751 = vmatprep.subr.bf16.mxu1 %v4957_v61  ;;  %v5036_v61 = vld [vmem:[%s7108_s3 + $0x300] ss:$16 sps:$4 sm:$0xff]  }
  0xb6   :  { %4651 = vmatpush3.bf16.msra.mxu0 %v4939_v62  ;;  %v5041_v62 = vld [vmem:[%s7108_s3 + $0xec] ss:$16 sps:$4 sm:$0xff]  }
  0xb7   :  { %4652 = vmatprep.subr.bf16.mxu0 %v5430_v52 }
  0xb8   :  { %2752 = vmatpush1.bf16.msra.mxu1 %v4955_v63  ;;  %v6275_v63 = vsub.s32 1, %v6266_v60 }
  0xb9   :  { %2753 = vmatprep.subr.bf16.mxu1 %v4960_v0 }
  0xba   :  { %4653 = vmatpush3.bf16.msra.mxu0 %v4940_v1  ;;  %v6278_v1 = vsub.s32 0, %v6266_v60 }
  0xbb   :  { %4654 = vmatprep.subr.bf16.mxu0 %v5430_v52 }
  0xbc   :  { %2754 = vmatpush1.bf16.msra.mxu1 %v4958_v2  ;;  %v6283_v2 = vld [vmem:[%s7107_s2] sm:$0x7f] }
  0xbd   :  { %2755 = vmatprep.subr.bf16.mxu1 %v4963_v4  ;;  %v264_v4 = vrot.slane %v6283_v2, %v6275_v63 }
  0xbe   :  { %4655 = vmatpush3.bf16.msra.mxu0 %v4941_v5 }
  0xbf   :  { %4656 = vmatprep.subr.bf16.mxu0 %v5430_v52 }
  0xc0   :  { %2756 = vmatpush1.bf16.msra.mxu1 %v4961_v6  ;;  %v260_v6 = vrot.slane %v6283_v2, %v6278_v1 }
  0xc1   :  { %2757 = vmatprep.subr.bf16.mxu1 %v4966_v7 }
  0xc2   :  { %4657 = vmatpush3.bf16.msra.mxu0 %v4942_v8 }
  0xc3   :  { %2786 = vmatprep.subr.bf16.mxu0 %v4969_v10 }
  0xc4   :  { %2758 = vmatpush1.bf16.msra.mxu1 %v4964_v9 }
  0xc5   :  { %2759 = vmatprep.subr.bf16.mxu1 %v4972_v11  ;;  %4659 = vmatmul.mubr.bf16.vlgmr.msra.gmra.mxu0 %v5633_v39  ;;  %v4979_v39 = vld [vmem:[%s7108_s3 + $0x2a0] ss:$16 sps:$4 sm:$0xff]  }
  0xc6   :  { %2787 = vmatpush1.bf16.msra.mxu0 %v4967_v12 }
  0xc7   :  { %2788 = vmatprep.subr.bf16.mxu0 %v4975_v15 }
  0xc8   :  { %2760 = vmatpush2.bf16.msra.mxu1 %v4970_v14 }
  0xc9   :  { %2761 = vmatprep.subr.bf16.mxu1 %v4978_v16 }
  0xca   :  { %2789 = vmatpush1.bf16.msra.mxu0 %v4973_v17 }
  0xcb   :  { %2790 = vmatprep.subr.bf16.mxu0 %v4981_v19 }
  0xcc   :  { %2762 = vmatpush2.bf16.msra.mxu1 %v4976_v18 }
  0xcd   :  { %2763 = vmatprep.subr.bf16.mxu1 %v4984_v20 }
  0xce   :  { %2791 = vmatpush1.bf16.msra.mxu0 %v4979_v39 }
  0xcf   :  { %2792 = vmatprep.subr.bf16.mxu0 %v4987_v22 }
  0xd0   :  { %2764 = vmatpush2.bf16.msra.mxu1 %v4982_v21 }
  0xd1   :  { %2765 = vmatprep.subr.bf16.mxu1 %v4990_v23 }
  0xd2   :  { %2793 = vmatpush1.bf16.msra.mxu0 %v4985_v24 }
  0xd3   :  { %2794 = vmatprep.subr.bf16.mxu0 %v4993_v26  ;;  %v5042_v26 = vld [vmem:[%s7108_s3 + $0x4e0] ss:$16 sps:$4 sm:$0xff]  }
  0xd4   :  { %2766 = vmatpush2.bf16.msra.mxu1 %v4988_v25 }
  0xd5   :  { %2767 = vmatprep.subr.bf16.mxu1 %v4996_v27 }
  0xd6   :  { %2795 = vmatpush1.bf16.msra.mxu0 %v4991_v28  ;;  %v5050_v28 = vld [vmem:[%s7108_s3 + $0x4c4] ss:$16 sps:$4 sm:$0xff]  }
  0xd7   :  { %2796 = vmatprep.subr.bf16.mxu0 %v4999_v29  ;;  %v5056_v29 = vld [vmem:[%s7108_s3 + $0x4a4] ss:$16 sps:$4 sm:$0xff]  }
  0xd8   :  { %2768 = vmatpush2.bf16.msra.mxu1 %v4994_v55  ;;  %v5048_v55 = vld [vmem:[%s7108_s3 + $0x4c0] ss:$16 sps:$4 sm:$0xff]  }
  0xd9   :  { %2769 = vmatprep.subr.bf16.mxu1 %v5002_v30  ;;  %v5054_v30 = vld [vmem:[%s7108_s3 + $0x4a0] ss:$16 sps:$4 sm:$0xff]  }
  0xda   :  { %2797 = vmatpush1.bf16.msra.mxu0 %v4997_v31  ;;  %v5062_v31 = vld [vmem:[%s7108_s3 + $0x484] ss:$16 sps:$4 sm:$0xff]  }
  0xdb   :  { %2798 = vmatprep.subr.bf16.mxu0 %v5005_v33 }
  0xdc   :  { %2770 = vmatpush2.bf16.msra.mxu1 %v5000_v32 }
  0xdd   :  { %2771 = vmatprep.subr.bf16.mxu1 %v5008_v34 }
  0xde   :  { %2799 = vmatpush1.bf16.msra.mxu0 %v5003_v35 }
  0xdf   :  { %2800 = vmatprep.subr.bf16.mxu0 %v5011_v37 }
  0xe0   :  { %2772 = vmatpush2.bf16.msra.mxu1 %v5006_v36 }
  0xe1   :  { %2773 = vmatprep.subr.bf16.mxu1 %v5014_v38 }
  0xe2   :  { %2801 = vmatpush1.bf16.msra.mxu0 %v5009_v40 }
  0xe3   :  { %2802 = vmatprep.subr.bf16.mxu0 %v5017_v42 }
  0xe4   :  { %2774 = vmatpush2.bf16.msra.mxu1 %v5012_v41 }
  0xe5   :  { %2829 = vmatprep.subr.bf16.mxu1 %v5044_v43 }
  0xe6   :  { %2803 = vmatpush2.bf16.msra.mxu0 %v5015_v44  ;;  %v1233_v0 = vpop.f32.mrf.mxu1 }
  0xe7   :  { %2804 = vmatprep.subr.bf16.mxu0 %v5020_v45 }
  0xe8   :  { %v1235_v5 = vpop.f32.mrf.mxu1 }
  0xea   :  { %2805 = vmatpush2.bf16.msra.mxu0 %v5018_v46  ;;  %v1237_v10 = vpop.f32.mrf.mxu1 }
  0xeb   :  { %2806 = vmatprep.subr.bf16.mxu0 %v5023_v47 }
  0xec   :  { %v1239_v19 = vpop.f32.mrf.mxu1 }
  0xee   :  { %2807 = vmatpush2.bf16.msra.mxu0 %v5021_v48 }
  0xef   :  { %2808 = vmatprep.subr.bf16.mxu0 %v5026_v49 }
  0xf2   :  { %2809 = vmatpush2.bf16.msra.mxu0 %v5024_v50 }
  0xf3   :  { %2810 = vmatprep.subr.bf16.mxu0 %v5029_v51 }
  0xf6   :  { %2811 = vmatpush2.bf16.msra.mxu0 %v5027_v53 }
  0xf7   :  { %2812 = vmatprep.subr.bf16.mxu0 %v5032_v54 }
  0xfa   :  { %2813 = vmatpush2.bf16.msra.mxu0 %v5030_v56 }
  0xfb   :  { %2814 = vmatprep.subr.bf16.mxu0 %v5035_v13 }
  0xfe   :  { %2815 = vmatpush2.bf16.msra.mxu0 %v5033_v58 }
  0xff   :  { %2816 = vmatprep.subr.bf16.mxu0 %v5038_v59 }
 0x102   :  { %2817 = vmatpush2.bf16.msra.mxu0 %v5036_v61 }
 0x103   :  { %2915 = vmatprep.subr.bf16.mxu0 %v5041_v62 }
 0x105   :  { %v1190_v7 = vpop.f32.mrf.mxu0 }
 0x106   :  { %v1191_v11 = vadd.f32 %v1190_v7, %v260_v6 }
 0x107   :  { %v1192_v8 = vpop.f32.mrf.mxu0 }
 0x108   :  { %v1193_v9 = vadd.f32 %v1192_v8, %v264_v4  ;;  %v1234_v20 = vadd.f32 %v1233_v0, %v1191_v11 }
 0x109   :  { %v1194_v12 = vpop.f32.mrf.mxu0 }
 0x10a   :  { %v1195_v14 = vadd.f32 %v1194_v12, %v260_v6  ;;  %v1236_v16 = vadd.f32 %v1235_v5, %v1193_v9  ;;  %v1496_v24 = vmax.f32 %v1234_v20, 0.0 }
 0x10b   :  { %v1196_v15 = vpop.f32.mrf.mxu0 }
 0x10c   :  { %v1238_v17 = vadd.f32 %v1237_v10, %v1195_v14  ;;  %v1197_v18 = vadd.f32 %v1196_v15, %v264_v4  ;;  %v1497_v22 = vmax.f32 %v1236_v16, 0.0 }
 0x10e   :  { %v1240_v39 = vadd.f32 %v1239_v19, %v1197_v18  ;;  %v1503_v21 = vmax.f32 %v1238_v17, 0.0 }
 0x110   :  { %v1504_v23 = vmax.f32 %v1240_v39, 0.0  ;;  %v6294_v27 = vpack.c.bf16 %v1503_v21, %v1496_v24 }
 0x112   :  { %v6289_v25 = vpack.c.bf16 %v1504_v23, %v1497_v22 }
 0x114   :  { %2775 = vmatprep.mubr.bf16.mxu1 %v6289_v25 }
 0x115   :  { %2776 = vmatmul.mubr.bf16.vlgmr.msra.gmra.mxu1 %v6294_v27 }
 0x116   :  { %2830 = vmatpush1.bf16.msra.mxu1 %v5042_v26 }
 0x117   :  { %2831 = vmatprep.subr.bf16.mxu1 %v5050_v28 }
 0x11a   :  { %2832 = vmatpush1.bf16.msra.mxu1 %v5048_v55 }
 0x11b   :  { %2833 = vmatprep.subr.bf16.mxu1 %v5056_v29 }
 0x11c   :  { %22 = vsyncpa [#allocation4], 0  ;;  %v5060_v32 = vld [vmem:[%s7108_s3 + $0x480] ss:$16 sps:$4 sm:$0xff]   ;;  %v5068_v33 = vld [vmem:[%s7108_s3 + $0x464] ss:$16 sps:$4 sm:$0xff]  }
 0x11d   :  { %v271_v34 = vsub.s32 3, %v6266_v60  ;;  %v267_v35 = vsub.s32 2, %v6266_v60  ;;  %v5066_v36 = vld [vmem:[%s7108_s3 + $0x460] ss:$16 sps:$4 sm:$0xff]   ;;  %v5074_v37 = vld [vmem:[%s7108_s3 + $0x444] ss:$16 sps:$4 sm:$0xff]  }
 0x11e   :  { %2834 = vmatpush1.bf16.msra.mxu1 %v5054_v30  ;;  %v5072_v43 = vld [vmem:[%s7108_s3 + $0x440] ss:$16 sps:$4 sm:$0xff]   ;;  %v5080_v46 = vld [vmem:[%s7108_s3 + $0x424] ss:$16 sps:$4 sm:$0xff]   ;;  %v5039_v10 = vld [vmem:[%s7108_s3 + $0xe8] ss:$16 sps:$4 sm:$0xff]  }
 0x11f   :  { %2835 = vmatprep.subr.bf16.mxu1 %v5062_v31  ;;  %v272_v38 = vrot.slane %v6283_v2, %v271_v34  ;;  %v268_v40 = vrot.slane %v6283_v2, %v267_v35  ;;  %v5078_v53 = vld [vmem:[%s7108_s3 + $0x420] ss:$16 sps:$4 sm:$0xff]   ;;  %v5086_v56 = vld [vmem:[%s7108_s3 + $0x404] ss:$16 sps:$4 sm:$0xff]   ;;  %v5047_v12 = vld [vmem:[%s7108_s3 + $0xcc] ss:$16 sps:$4 sm:$0xff]  }
 0x120   :  { %v5084_v0 = vld [vmem:[%s7108_s3 + $0x400] ss:$16 sps:$4 sm:$0xff]   ;;  %v5092_v5 = vld [vmem:[%s7108_s3 + $0x5e4] ss:$16 sps:$4 sm:$0xff]   ;;  %v5045_v16 = vld [vmem:[%s7108_s3 + $0xc8] ss:$16 sps:$4 sm:$0xff]  }
 0x121   :  { %v5090_v14 = vld [vmem:[%s7108_s3 + $0x5e0] ss:$16 sps:$4 sm:$0xff]   ;;  %v5098_v15 = vld [vmem:[%s7108_s3 + $0x5c4] ss:$16 sps:$4 sm:$0xff]   ;;  %v5053_v17 = vld [vmem:[%s7108_s3 + $0xac] ss:$16 sps:$4 sm:$0xff]  }
 0x122   :  { %2836 = vmatpush1.bf16.msra.mxu1 %v5060_v32  ;;  %v5096_v18 = vld [vmem:[%s7108_s3 + $0x5c0] ss:$16 sps:$4 sm:$0xff]   ;;  %v5104_v19 = vld [vmem:[%s7108_s3 + $0x5a4] ss:$16 sps:$4 sm:$0xff]   ;;  %v5051_v20 = vld [vmem:[%s7108_s3 + $0xa8] ss:$16 sps:$4 sm:$0xff]  }
 0x123   :  { %2837 = vmatprep.subr.bf16.mxu1 %v5068_v33  ;;  %v5059_v39 = vld [vmem:[%s7108_s3 + $0x8c] ss:$16 sps:$4 sm:$0xff]   ;;  %v5102_v21 = vld [vmem:[%s7108_s3 + $0x5a0] ss:$16 sps:$4 sm:$0xff]   ;;  %v5110_v22 = vld [vmem:[%s7108_s3 + $0x584] ss:$16 sps:$4 sm:$0xff]  }
 0x124   :  { %v5057_v23 = vld [vmem:[%s7108_s3 + $0x88] ss:$16 sps:$4 sm:$0xff]   ;;  %v5065_v24 = vld [vmem:[%s7108_s3 + $0x6c] ss:$16 sps:$4 sm:$0xff]   ;;  %v5116_v26 = vld [vmem:[%s7108_s3 + $0x564] ss:$16 sps:$4 sm:$0xff]  }
 0x125   :  { %v1319_v42 = vpop.f32.mrf.mxu0  ;;  %v5063_v28 = vld [vmem:[%s7108_s3 + $0x68] ss:$16 sps:$4 sm:$0xff]   ;;  %v5071_v55 = vld [vmem:[%s7108_s3 + $0x4c] ss:$16 sps:$4 sm:$0xff]   ;;  %v5114_v29 = vld [vmem:[%s7108_s3 + $0x560] ss:$16 sps:$4 sm:$0xff]  }
 0x126   :  { %v1276_v41 = vpop.f32.mrf.mxu1  ;;  %2838 = vmatpush1.bf16.msra.mxu1 %v5066_v36  ;;  %v5122_v30 = vld [vmem:[%s7108_s3 + $0x544] ss:$16 sps:$4 sm:$0xff]   ;;  %v5069_v31 = vld [vmem:[%s7108_s3 + $0x48] ss:$16 sps:$4 sm:$0xff]   ;;  %v5077_v32 = vld [vmem:[%s7108_s3 + $0x2c] ss:$16 sps:$4 sm:$0xff]  }
 0x127   :  { %v1321_v45 = vpop.f32.mrf.mxu0  ;;  %2839 = vmatprep.subr.bf16.mxu1 %v5074_v37  ;;  %v1277_v48 = vadd.f32 %v1276_v41, %v268_v40  ;;  %v5120_v33 = vld [vmem:[%s7108_s3 + $0x540] ss:$16 sps:$4 sm:$0xff]   ;;  %v5128_v36 = vld [vmem:[%s7108_s3 + $0x524] ss:$16 sps:$4 sm:$0xff]   ;;  %v5075_v37 = vld [vmem:[%s7108_s3 + $0x28] ss:$16 sps:$4 sm:$0xff]  }
 0x128   :  { %v1278_v44 = vpop.f32.mrf.mxu1  ;;  %v5134_v41 = vld [vmem:[%s7108_s3 + $0x504] ss:$16 sps:$4 sm:$0xff]   ;;  %vm2739_vm1 = vcmask 261120   ;;  %s5432_s24 = smov 64   ;;  %vm3885_vm2 = vcmask 523264  }
 0x129   :  { %v1279_v47 = vadd.f32 %v1278_v44, %v272_v38  ;;  %v1323_v50 = vpop.f32.mrf.mxu0  ;;  %v1320_v59 = vadd.f32 %v1319_v42, %v1277_v48  ;;  %v5081_v42 = vld [vmem:[%s7108_s3 + $0x8] ss:$16 sps:$4 sm:$0xff]   ;;  %v5132_v44 = vld [vmem:[%s7108_s3 + $0x500] ss:$16 sps:$4 sm:$0xff]  }
 0x12a   :  { %v1280_v49 = vpop.f32.mrf.mxu1  ;;  %2840 = vmatpush1.bf16.msra.mxu1 %v5072_v43  ;;  %v5089_v43 = vld [vmem:[%s7108_s3 + $0x1ec] ss:$16 sps:$4 sm:$0xff]   ;;  %v5093_v48 = vld [vmem:[%s7108_s3 + $0x1c8] ss:$16 sps:$4 sm:$0xff]  }
 0x12b   :  { %v1281_v51 = vadd.f32 %v1280_v49, %v268_v40  ;;  %2841 = vmatprep.subr.bf16.mxu1 %v5080_v46  ;;  %v1322_v13 = vadd.f32 %v1321_v45, %v1279_v47  ;;  %v1325_v61 = vpop.f32.mrf.mxu0  ;;  %v1498_v8 = vmax.f32 %v1320_v59, 0.0  ;;  %v5126_v40 = vld [vmem:[%s7108_s3 + $0x520] ss:$16 sps:$4 sm:$0xff]   ;;  %v5152_v45 = vld [vmem:[%s7108_s3 + $0x624] ss:$16 sps:$4 sm:$0xff]  }
 0x12c   :  { %v1282_v54 = vpop.f32.mrf.mxu1  ;;  %v5087_v46 = vld [vmem:[%s7108_s3 + $0x1e8] ss:$16 sps:$4 sm:$0xff]   ;;  %v5095_v47 = vld [vmem:[%s7108_s3 + $0x1cc] ss:$16 sps:$4 sm:$0xff]  }
 0x12d   :  { %v1324_v57 = vadd.f32 %v1323_v50, %v1281_v51  ;;  %v1283_v58 = vadd.f32 %v1282_v54, %v272_v38  ;;  %v1499_v6 = vmax.f32 %v1322_v13, 0.0  ;;  %v5083_v38 = vld [vmem:[%s7108_s3 + $0xc] ss:$16 sps:$4 sm:$0xff]   ;;  %v5099_v50 = vld [vmem:[%s7108_s3 + $0x1a8] ss:$16 sps:$4 sm:$0xff]  }
 0x12e   :  { %2842 = vmatpush1.bf16.msra.mxu1 %v5078_v53  ;;  %v5101_v49 = vld [vmem:[%s7108_s3 + $0x1ac] ss:$16 sps:$4 sm:$0xff]   ;;  %v5105_v53 = vld [vmem:[%s7108_s3 + $0x188] ss:$16 sps:$4 sm:$0xff]  }
 0x12f   :  { %v1326_v62 = vadd.f32 %v1325_v61, %v1283_v58  ;;  %v1505_v4 = vmax.f32 %v1324_v57, 0.0  ;;  %2843 = vmatprep.subr.bf16.mxu1 %v5086_v56  ;;  %v5107_v51 = vld [vmem:[%s7108_s3 + $0x18c] ss:$16 sps:$4 sm:$0xff]   ;;  %v279_v56 = vsub.s32 5, %v6266_v60  ;;  %v275_v57 = vsub.s32 4, %v6266_v60 }
 0x130   :  { %v5113_v54 = vld [vmem:[%s7108_s3 + $0x16c] ss:$16 sps:$4 sm:$0xff]   ;;  %v5111_v58 = vld [vmem:[%s7108_s3 + $0x168] ss:$16 sps:$4 sm:$0xff]  }
 0x131   :  { %v1506_v7 = vmax.f32 %v1326_v62, 0.0  ;;  %v6356_v11 = vpack.c.bf16 %v1505_v4, %v1498_v8  ;;  %v5119_v59 = vld [vmem:[%s7108_s3 + $0x14c] ss:$16 sps:$4 sm:$0xff]   ;;  %v280_v61 = vrot.slane %v6283_v2, %v279_v56 }
 0x132   :  { %2844 = vmatpush1.bf16.msra.mxu1 %v5084_v0  ;;  %v276_v0 = vrot.slane %v6283_v2, %v275_v57  ;;  %v5155_v56 = vld [vmem:[%s7108_s3 + $0x44c] ss:$16 sps:$4 sm:$0xff]  }
 0x133   :  { %v6351_v9 = vpack.c.bf16 %v1506_v7, %v1499_v6  ;;  %2845 = vmatprep.subr.bf16.mxu1 %v5092_v5  ;;  %v5117_v5 = vld [vmem:[%s7108_s3 + $0x148] ss:$16 sps:$4 sm:$0xff]   ;;  %v5125_v7 = vld [vmem:[%s7108_s3 + $0x12c] ss:$16 sps:$4 sm:$0xff]  }
 0x135   :  { %2818 = vmatprep.mubr.bf16.mxu0 %v6351_v9 }
 0x136   :  { %2819 = vmatmul.mubr.bf16.vlgmr.msra.gmra.mxu0 %v6356_v11  ;;  %2846 = vmatpush2.bf16.msra.mxu1 %v5090_v14 }
 0x137   :  { %2916 = vmatpush1.bf16.msra.mxu0 %v5039_v10  ;;  %2947 = vmatprep.mubr.bf16.mxu0 %v6289_v25  ;;  %v5108_v25 = vld [vmem:[%s7108_s3 + $0x580] ss:$16 sps:$4 sm:$0xff]  }
 0x138   :  { %2917 = vmatprep.subr.bf16.mxu0 %v5047_v12  ;;  %2847 = vmatprep.subr.bf16.mxu1 %v5098_v15 }
 0x13a   :  { %2848 = vmatpush2.bf16.msra.mxu1 %v5096_v18  ;;  %v5131_v18 = vld [vmem:[%s7108_s3 + $0x10c] ss:$16 sps:$4 sm:$0xff]  }
 0x13b   :  { %2918 = vmatpush1.bf16.msra.mxu0 %v5045_v16  ;;  %2849 = vmatprep.subr.bf16.mxu1 %v5104_v19  ;;  %v5123_v16 = vld [vmem:[%s7108_s3 + $0x128] ss:$16 sps:$4 sm:$0xff]  }
 0x13c   :  { %2919 = vmatprep.subr.bf16.mxu0 %v5053_v17 }
 0x13e   :  { %2850 = vmatpush2.bf16.msra.mxu1 %v5102_v21 }
 0x13f   :  { %2920 = vmatpush1.bf16.msra.mxu0 %v5051_v20  ;;  %2851 = vmatprep.subr.bf16.mxu1 %v5110_v22 }
 0x140   :  { %2921 = vmatprep.subr.bf16.mxu0 %v5059_v39 }
 0x142   :  { %2852 = vmatpush2.bf16.msra.mxu1 %v5108_v25 }
 0x143   :  { %2922 = vmatpush1.bf16.msra.mxu0 %v5057_v23  ;;  %2853 = vmatprep.subr.bf16.mxu1 %v5116_v26  ;;  %v5137_v26 = vld [vmem:[%s7108_s3 + $0x4ec] ss:$16 sps:$4 sm:$0xff]  }
 0x144   :  { %2923 = vmatprep.subr.bf16.mxu0 %v5065_v24  ;;  %v5129_v24 = vld [vmem:[%s7108_s3 + $0x108] ss:$16 sps:$4 sm:$0xff]  }
 0x146   :  { %2854 = vmatpush2.bf16.msra.mxu1 %v5114_v29  ;;  %v1405_v13 = vpop.f32.mrf.mxu1 }
 0x147   :  { %2924 = vmatpush1.bf16.msra.mxu0 %v5063_v28  ;;  %2855 = vmatprep.subr.bf16.mxu1 %v5122_v30 }
 0x148   :  { %2925 = vmatprep.subr.bf16.mxu0 %v5071_v55  ;;  %v1407_v62 = vpop.f32.mrf.mxu1 }
 0x14a   :  { %2856 = vmatpush2.bf16.msra.mxu1 %v5120_v33  ;;  %v1409_v10 = vpop.f32.mrf.mxu1  ;;  %v5140_v33 = vld [vmem:[%s7108_s3 + $0x4cc] ss:$16 sps:$4 sm:$0xff]  }
 0x14b   :  { %2926 = vmatpush1.bf16.msra.mxu0 %v5069_v31  ;;  %2857 = vmatprep.subr.bf16.mxu1 %v5128_v36  ;;  %v5135_v31 = vld [vmem:[%s7108_s3 + $0x4e8] ss:$16 sps:$4 sm:$0xff]   ;;  %v5150_v36 = vld [vmem:[%s7108_s3 + $0x620] ss:$16 sps:$4 sm:$0xff]  }
 0x14c   :  { %2927 = vmatprep.subr.bf16.mxu0 %v5077_v32  ;;  %v1411_v21 = vpop.f32.mrf.mxu1 }
 0x14e   :  { %2858 = vmatpush2.bf16.msra.mxu1 %v5126_v40  ;;  %v5138_v40 = vld [vmem:[%s7108_s3 + $0x4c8] ss:$16 sps:$4 sm:$0xff]  }
 0x14f   :  { %2928 = vmatpush1.bf16.msra.mxu0 %v5075_v37  ;;  %2859 = vmatprep.subr.bf16.mxu1 %v5134_v41  ;;  %v5158_v37 = vld [vmem:[%s7108_s3 + $0x604] ss:$16 sps:$4 sm:$0xff]   ;;  %v5143_v41 = vld [vmem:[%s7108_s3 + $0x4ac] ss:$16 sps:$4 sm:$0xff]  }
 0x150   :  { %2929 = vmatprep.subr.bf16.mxu0 %v5083_v38 }
 0x152   :  { %2860 = vmatpush2.bf16.msra.mxu1 %v5132_v44  ;;  %v5141_v44 = vld [vmem:[%s7108_s3 + $0x4a8] ss:$16 sps:$4 sm:$0xff]  }
 0x153   :  { %2930 = vmatpush1.bf16.msra.mxu0 %v5081_v42  ;;  %2884 = vmatprep.subr.bf16.mxu1 %v5152_v45  ;;  %v5156_v42 = vld [vmem:[%s7108_s3 + $0x600] ss:$16 sps:$4 sm:$0xff]   ;;  %v5146_v45 = vld [vmem:[%s7108_s3 + $0x48c] ss:$16 sps:$4 sm:$0xff]  }
 0x154   :  { %2931 = vmatprep.subr.bf16.mxu0 %v5089_v43 }
 0x157   :  { %2932 = vmatpush2.bf16.msra.mxu0 %v5087_v46 }
 0x158   :  { %2933 = vmatprep.subr.bf16.mxu0 %v5095_v47  ;;  %v5144_v47 = vld [vmem:[%s7108_s3 + $0x488] ss:$16 sps:$4 sm:$0xff]  }
 0x15b   :  { %2934 = vmatpush2.bf16.msra.mxu0 %v5093_v48  ;;  %v283_v48 = vsub.s32 6, %v6266_v60 }
 0x15c   :  { %2935 = vmatprep.subr.bf16.mxu0 %v5101_v49  ;;  %v5149_v49 = vld [vmem:[%s7108_s3 + $0x46c] ss:$16 sps:$4 sm:$0xff]  }
 0x15f   :  { %2936 = vmatpush2.bf16.msra.mxu0 %v5099_v50 }
 0x160   :  { %2937 = vmatprep.subr.bf16.mxu0 %v5107_v51 }
 0x163   :  { %2938 = vmatpush2.bf16.msra.mxu0 %v5105_v53  ;;  %v5147_v53 = vld [vmem:[%s7108_s3 + $0x468] ss:$16 sps:$4 sm:$0xff]  }
 0x164   :  { %2939 = vmatprep.subr.bf16.mxu0 %v5113_v54  ;;  %v284_v54 = vrot.slane %v6283_v2, %v283_v48  ;;  %v5210_v48 = vld [vmem:[%s7108_s3 + $0x3e8] ss:$16 sps:$4 sm:$0xff]  }
 0x165   :  { %v1362_v4 = vpop.f32.mrf.mxu0 }
 0x166   :  { %v1363_v12 = vadd.f32 %v1362_v4, %v276_v0  ;;  %v4613_v38 = vpop.f32.mrf.mxu1 }
 0x167   :  { %2940 = vmatpush2.bf16.msra.mxu0 %v5111_v58  ;;  %v1364_v6 = vpop.f32.mrf.mxu0 }
 0x168   :  { %2941 = vmatprep.subr.bf16.mxu0 %v5119_v59  ;;  %v1365_v8 = vadd.f32 %v1364_v6, %v280_v61  ;;  %v1406_v22 = vadd.f32 %v1405_v13, %v1363_v12  ;;  %v4614_v43 = vpop.f32.mrf.mxu1  ;;  %v5153_v59 = vld [vmem:[%s7108_s3 + $0x448] ss:$16 sps:$4 sm:$0xff]  }
 0x169   :  { %v1366_v14 = vpop.f32.mrf.mxu0  ;;  %v4615_v51 = vadd.f32 %v4614_v43, %v4613_v38  ;;  %v5159_v6 = vld [vmem:[%s7108_s3 + $0x428] ss:$16 sps:$4 sm:$0xff]   ;;  %v5200_v38 = vld [vmem:[%s7108_s3 + $0x22c] ss:$16 sps:$4 sm:$0xff]  }
 0x16a   :  { %v1367_v15 = vadd.f32 %v1366_v14, %v276_v0  ;;  %v1408_v19 = vadd.f32 %v1407_v62, %v1365_v8  ;;  %v1500_v29 = vmax.f32 %v1406_v22, 0.0  ;;  %v4616_v46 = vpop.f32.mrf.mxu1  ;;  %v5161_v62 = vld [vmem:[%s7108_s3 + $0x42c] ss:$16 sps:$4 sm:$0xff]   ;;  %v5162_v14 = vld [vmem:[%s7108_s3 + $0x2e8] ss:$16 sps:$4 sm:$0xff]  }
 0x16b   :  { %2942 = vmatpush2.bf16.msra.mxu0 %v5117_v5  ;;  %v1368_v17 = vpop.f32.mrf.mxu0  ;;  %v1449_v58 = vadd.f32 %v4615_v51, %v284_v54  ;;  %v5167_v8 = vld [vmem:[%s7108_s3 + $0x40c] ss:$16 sps:$4 sm:$0xff]   ;;  %v5177_v22 = vld [vmem:[%s7108_s3 + $0x5c8] ss:$16 sps:$4 sm:$0xff]  }
 0x16c   :  { %2943 = vmatprep.subr.bf16.mxu0 %v5125_v7  ;;  %v1410_v20 = vadd.f32 %v1409_v10, %v1367_v15  ;;  %v1369_v39 = vadd.f32 %v1368_v17, %v280_v61  ;;  %v1501_v28 = vmax.f32 %v1408_v19, 0.0  ;;  %v4617_v50 = vpop.f32.mrf.mxu1  ;;  %v5170_v17 = vld [vmem:[%s7108_s3 + $0x2cc] ss:$16 sps:$4 sm:$0xff]   ;;  %v5168_v19 = vld [vmem:[%s7108_s3 + $0x2c8] ss:$16 sps:$4 sm:$0xff]  }
 0x16d   :  { %v4618_v13 = vadd.f32 %v4617_v50, %v4616_v46  ;;  %v5209_v43 = vld [vmem:[%s7108_s3 + $0x52c] ss:$16 sps:$4 sm:$0xff]   ;;  %v5216_v51 = vld [vmem:[%s7108_s3 + $0x3c8] ss:$16 sps:$4 sm:$0xff]  }
 0x16e   :  { %v1412_v23 = vadd.f32 %v1411_v21, %v1369_v39  ;;  %v1507_v25 = vmax.f32 %v1410_v20, 0.0  ;;  %v5171_v20 = vld [vmem:[%s7108_s3 + $0x5e8] ss:$16 sps:$4 sm:$0xff]   ;;  %v5176_v39 = vld [vmem:[%s7108_s3 + $0x2ac] ss:$16 sps:$4 sm:$0xff]  }
 0x16f   :  { %2944 = vmatpush2.bf16.msra.mxu0 %v5123_v16  ;;  %v1452_v0 = vadd.f32 %v4618_v13, %v284_v54  ;;  %v5165_v16 = vld [vmem:[%s7108_s3 + $0x408] ss:$16 sps:$4 sm:$0xff]   ;;  %v5179_v21 = vld [vmem:[%s7108_s3 + $0x5cc] ss:$16 sps:$4 sm:$0xff]  }
 0x170   :  { %2945 = vmatprep.subr.bf16.mxu0 %v5131_v18  ;;  %v1508_v55 = vmax.f32 %v1412_v23, 0.0  ;;  %v6509_v32 = vpack.c.bf16 %v1507_v25, %v1500_v29  ;;  %v5173_v18 = vld [vmem:[%s7108_s3 + $0x5ec] ss:$16 sps:$4 sm:$0xff]   ;;  %v5180_v25 = vld [vmem:[%s7108_s3 + $0x288] ss:$16 sps:$4 sm:$0xff]  }
 0x171   :  { %v5182_v23 = vld [vmem:[%s7108_s3 + $0x28c] ss:$16 sps:$4 sm:$0xff]   ;;  %v5186_v29 = vld [vmem:[%s7108_s3 + $0x268] ss:$16 sps:$4 sm:$0xff]  }
 0x172   :  { %v1515_v30 = vpack.c.bf16 %v1508_v55, %v1501_v28  ;;  %v5188_v28 = vld [vmem:[%s7108_s3 + $0x26c] ss:$16 sps:$4 sm:$0xff]   ;;  %v5219_v54 = vld [vmem:[%s7108_s3 + $0x3a8] ss:$16 sps:$4 sm:$0xff]  }
 0x173   :  { %2946 = vmatpush2.bf16.msra.mxu0 %v5129_v24  ;;  %v5185_v24 = vld [vmem:[%s7108_s3 + $0x5ac] ss:$16 sps:$4 sm:$0xff]   ;;  %v5222_v13 = vld [vmem:[%s7108_s3 + $0x388] ss:$16 sps:$4 sm:$0xff]  }
 0x174   :  { %3001 = vmatprep.subr.bf16.mxu0 %v5137_v26  ;;  %2861 = vmatprep.mubr.bf16.mxu1 %v1515_v30  ;;  %v5183_v26 = vld [vmem:[%s7108_s3 + $0x5a8] ss:$16 sps:$4 sm:$0xff]   ;;  %v5191_v55 = vld [vmem:[%s7108_s3 + $0x58c] ss:$16 sps:$4 sm:$0xff]  }
 0x175   :  { %2862 = vmatmul.mubr.bf16.vlgmr.msra.gmra.mxu1 %v6509_v32  ;;  %v5212_v46 = vld [vmem:[%s7108_s3 + $0x3ec] ss:$16 sps:$4 sm:$0xff]  }
 0x176   :  { %2948 = vmatmul.mubr.bf16.vlgmr.msra.gmra.mxu0 %v6294_v27  ;;  %2885 = vmatpush1.bf16.msra.mxu1 %v5150_v36  ;;  %v5164_v27 = vld [vmem:[%s7108_s3 + $0x2ec] ss:$16 sps:$4 sm:$0xff]   ;;  %v5192_v36 = vld [vmem:[%s7108_s3 + $0x248] ss:$16 sps:$4 sm:$0xff]  }
 0x177   :  { %3002 = vmatpush1.bf16.msra.mxu0 %v5135_v31  ;;  %3033 = vmatprep.mubr.bf16.mxu0 %v1515_v30  ;;  %v5189_v30 = vld [vmem:[%s7108_s3 + $0x588] ss:$16 sps:$4 sm:$0xff]   ;;  %v5194_v31 = vld [vmem:[%s7108_s3 + $0x24c] ss:$16 sps:$4 sm:$0xff]  }
 0x178   :  { %3003 = vmatprep.subr.bf16.mxu0 %v5140_v33  ;;  %2886 = vmatprep.subr.bf16.mxu1 %v5158_v37  ;;  %v5197_v33 = vld [vmem:[%s7108_s3 + $0x56c] ss:$16 sps:$4 sm:$0xff]   ;;  %v5195_v37 = vld [vmem:[%s7108_s3 + $0x568] ss:$16 sps:$4 sm:$0xff]  }
 0x179   :  { %2904 = vmatprep.mubr.bf16.mxu1 %v5429_v3  ;;  %v5218_v50 = vld [vmem:[%s7108_s3 + $0x3cc] ss:$16 sps:$4 sm:$0xff]  }
 0x17a   :  { %2887 = vmatpush1.bf16.msra.mxu1 %v5156_v42  ;;  %v5201_v42 = vld [vmem:[%s7108_s3 + $0x548] ss:$16 sps:$4 sm:$0xff]  }
 0x17b   :  { %3004 = vmatpush1.bf16.msra.mxu0 %v5138_v40  ;;  %2958 = vmatprep.subr.bf16.mxu1 %v5164_v27  ;;  %v5203_v40 = vld [vmem:[%s7108_s3 + $0x54c] ss:$16 sps:$4 sm:$0xff]  }
 0x17c   :  { %3005 = vmatprep.subr.bf16.mxu0 %v5143_v41  ;;  %v5198_v41 = vld [vmem:[%s7108_s3 + $0x228] ss:$16 sps:$4 sm:$0xff]   ;;  %v5206_v27 = vld [vmem:[%s7108_s3 + $0x20c] ss:$16 sps:$4 sm:$0xff]  }
 0x17f   :  { %3006 = vmatpush1.bf16.msra.mxu0 %v5141_v44  ;;  %v5204_v44 = vld [vmem:[%s7108_s3 + $0x208] ss:$16 sps:$4 sm:$0xff]  }
 0x180   :  { %3007 = vmatprep.subr.bf16.mxu0 %v5146_v45  ;;  %v5207_v45 = vld [vmem:[%s7108_s3 + $0x528] ss:$16 sps:$4 sm:$0xff]  }
 0x183   :  { %3008 = vmatpush1.bf16.msra.mxu0 %v5144_v47  ;;  %v5215_v47 = vld [vmem:[%s7108_s3 + $0x50c] ss:$16 sps:$4 sm:$0xff]  }
 0x184   :  { %3009 = vmatprep.subr.bf16.mxu0 %v5149_v49  ;;  %v5213_v49 = vld [vmem:[%s7108_s3 + $0x508] ss:$16 sps:$4 sm:$0xff]  }
 0x185   :  { %v1489_v57 = vpop.f32.mrf.mxu0 }
 0x186   :  { %v1490_v2 = vadd.f32 %v1489_v57, %v1449_v58  ;;  %v5227_v57 = vld [vmem:[%s7108_s3 + $0x36c] ss:$16 sps:$4 sm:$0xff]  }
 0x187   :  { %3010 = vmatpush1.bf16.msra.mxu0 %v5147_v53  ;;  %v4660_v61 = vpop.f32.mrf.mxu0  ;;  %v5221_v53 = vld [vmem:[%s7108_s3 + $0x3ac] ss:$16 sps:$4 sm:$0xff]  }
 0x188   :  { %3011 = vmatprep.subr.bf16.mxu0 %v5155_v56  ;;  %v1502_v10 = vmax.f32 %v1490_v2, 0.0  ;;  %v5224_v56 = vld [vmem:[%s7108_s3 + $0x38c] ss:$16 sps:$4 sm:$0xff]  }
 0x189   :  { %v1492_v4 = vpop.f32.mrf.mxu0  ;;  %v5230_v58 = vld [vmem:[%s7108_s3 + $0x34c] ss:$16 sps:$4 sm:$0xff]  }
 0x18a   :  { %v1493_v5 = vadd.f32 %v1492_v4, %v1452_v0  ;;  %v5233_v61 = vld [vmem:[%s7108_s3 + $0x32c] ss:$16 sps:$4 sm:$0xff]   ;;  %v5234_v0 = vld [vmem:[%s7108_s3 + $0x308] ss:$16 sps:$4 sm:$0xff]  }
 0x18b   :  { %3012 = vmatpush1.bf16.msra.mxu0 %v5153_v59  ;;  %v4661_v7 = vpop.f32.mrf.mxu0  ;;  %v5228_v59 = vld [vmem:[%s7108_s3 + $0x348] ss:$16 sps:$4 sm:$0xff]   ;;  %v5236_v2 = vld [vmem:[%s7108_s3 + $0x30c] ss:$16 sps:$4 sm:$0xff]  }
 0x18c   :  { %3013 = vmatprep.subr.bf16.mxu0 %v5161_v62  ;;  %v1509_v12 = vmax.f32 %v1493_v5, 0.0  ;;  %v5231_v62 = vld [vmem:[%s7108_s3 + $0x328] ss:$16 sps:$4 sm:$0xff]   ;;  %v5239_v4 = vld [vmem:[%s7108_s3 + $0x62c] ss:$16 sps:$4 sm:$0xff]  }
 0x18d   :  { %v5237_v5 = vld [vmem:[%s7108_s3 + $0x628] ss:$16 sps:$4 sm:$0xff]  }
 0x18e   :  { %v6570_v15 = vpack.c.bf16 %v1509_v12, %v1502_v10  ;;  %v5240_v7 = vld [vmem:[%s7108_s3 + $0x608] ss:$16 sps:$4 sm:$0xff]   ;;  %v5251_v12 = vld [vmem:[%s7110_s5 + $0x54] ss:$8 sps:$4 sm:$0xff]  }
 0x18f   :  { %3014 = vmatpush1.bf16.msra.mxu0 %v5159_v6  ;;  %v5242_v6 = vld [vmem:[%s7108_s3 + $0x60c] ss:$16 sps:$4 sm:$0xff]   ;;  %v5243_v10 = vld [vmem:[%s7110_s5 + $0x70] ss:$8 sps:$4 sm:$0xff]  }
 0x190   :  { %3015 = vmatprep.subr.bf16.mxu0 %v5167_v8  ;;  %4479 = vmatmul.mubr.msk.bf16.vlgmr.msra.gmra.mxu1 %vm2739_vm1, %v6570_v15  ;;  %v5245_v8 = vld [vmem:[%s7110_s5 + $0x74] ss:$8 sps:$4 sm:$0xff]  }
 0x191   :  { %2959 = vmatpush1.bf16.msra.mxu1 %v5162_v14  ;;  %2990 = vmatprep.mubr.bf16.mxu1 %v6351_v9  ;;  %v5174_v9 = vld [vmem:[%s7108_s3 + $0x2a8] ss:$16 sps:$4 sm:$0xff]  }
 0x192   :  { %2960 = vmatprep.subr.bf16.mxu1 %v5170_v17  ;;  %v5249_v14 = vld [vmem:[%s7110_s5 + $0x50] ss:$8 sps:$4 sm:$0xff]   ;;  %v5293_v17 = vld [vmem:[%s7110_s5 + $0x174] ss:$8 sps:$4 sm:$0xff]  }
 0x193   :  { %3016 = vmatpush1.bf16.msra.mxu0 %v5165_v16  ;;  %v5291_v16 = vld [vmem:[%s7110_s5 + $0x170] ss:$8 sps:$4 sm:$0xff]  }
 0x194   :  { %3017 = vmatprep.subr.bf16.mxu0 %v5173_v18  ;;  %v5296_v18 = vld [vmem:[%s7110_s5 + $0x164] ss:$8 sps:$4 sm:$0xff]  }
 0x195   :  { %2961 = vmatpush1.bf16.msra.mxu1 %v5168_v19  ;;  %v5252_v19 = vld [vmem:[%s7110_s5 + $0x40] ss:$8 sps:$4 sm:$0xff]  }
 0x196   :  { %2962 = vmatprep.subr.bf16.mxu1 %v5176_v39  ;;  %v5257_v39 = vld [vmem:[%s7110_s5 + $0x34] ss:$8 sps:$4 sm:$0xff]  }
 0x197   :  { %3018 = vmatpush2.bf16.msra.mxu0 %v5171_v20  ;;  %v5294_v20 = vld [vmem:[%s7110_s5 + $0x160] ss:$8 sps:$4 sm:$0xff]  }
 0x198   :  { %3019 = vmatprep.subr.bf16.mxu0 %v5179_v21  ;;  %v5299_v21 = vld [vmem:[%s7110_s5 + $0x154] ss:$8 sps:$4 sm:$0xff]  }
 0x199   :  { %2963 = vmatpush1.bf16.msra.mxu1 %v5174_v9  ;;  %v5255_v9 = vld [vmem:[%s7110_s5 + $0x30] ss:$8 sps:$4 sm:$0xff]  }
 0x19a   :  { %2964 = vmatprep.subr.bf16.mxu1 %v5182_v23  ;;  %v5260_v23 = vld [vmem:[%s7110_s5 + $0x24] ss:$8 sps:$4 sm:$0xff]  }
 0x19b   :  { %3020 = vmatpush2.bf16.msra.mxu0 %v5177_v22  ;;  %v5297_v22 = vld [vmem:[%s7110_s5 + $0x150] ss:$8 sps:$4 sm:$0xff]  }
 0x19c   :  { %3021 = vmatprep.subr.bf16.mxu0 %v5185_v24  ;;  %v5302_v24 = vld [vmem:[%s7110_s5 + $0x144] ss:$8 sps:$4 sm:$0xff]  }
 0x19d   :  { %2965 = vmatpush1.bf16.msra.mxu1 %v5180_v25  ;;  %v5258_v25 = vld [vmem:[%s7110_s5 + $0x20] ss:$8 sps:$4 sm:$0xff]  }
 0x19e   :  { %2966 = vmatprep.subr.bf16.mxu1 %v5188_v28  ;;  %v5263_v28 = vld [vmem:[%s7110_s5 + $0x14] ss:$8 sps:$4 sm:$0xff]  }
 0x19f   :  { %3022 = vmatpush2.bf16.msra.mxu0 %v5183_v26  ;;  %v5300_v26 = vld [vmem:[%s7110_s5 + $0x140] ss:$8 sps:$4 sm:$0xff]  }
 0x1a0   :  { %3023 = vmatprep.subr.bf16.mxu0 %v5191_v55  ;;  %v5261_v55 = vld [vmem:[%s7110_s5 + $0x10] ss:$8 sps:$4 sm:$0xff]  }
 0x1a1   :  { %2967 = vmatpush1.bf16.msra.mxu1 %v5186_v29  ;;  %v5266_v29 = vld [vmem:[%s7110_s5 + $0x4] ss:$8 sps:$4 sm:$0xff]  }
 0x1a2   :  { %2968 = vmatprep.subr.bf16.mxu1 %v5194_v31  ;;  %v5269_v31 = vld [vmem:[%s7110_s5 + $0xf4] ss:$8 sps:$4 sm:$0xff]  }
 0x1a3   :  { %3024 = vmatpush2.bf16.msra.mxu0 %v5189_v30  ;;  %v5264_v30 = vld [vmem:[%s7110_s5] ss:$8 sps:$4 sm:$0xff]  }
 0x1a4   :  { %3025 = vmatprep.subr.bf16.mxu0 %v5197_v33  ;;  %v5305_v33 = vld [vmem:[%s7110_s5 + $0x134] ss:$8 sps:$4 sm:$0xff]  }
 0x1a5   :  { %2969 = vmatpush1.bf16.msra.mxu1 %v5192_v36  ;;  %v5267_v36 = vld [vmem:[%s7110_s5 + $0xf0] ss:$8 sps:$4 sm:$0xff]  }
 0x1a6   :  { %2970 = vmatprep.subr.bf16.mxu1 %v5200_v38  ;;  %v5272_v38 = vld [vmem:[%s7110_s5 + $0xe4] ss:$8 sps:$4 sm:$0xff]  }
 0x1a7   :  { %3026 = vmatpush2.bf16.msra.mxu0 %v5195_v37  ;;  %v5303_v37 = vld [vmem:[%s7110_s5 + $0x130] ss:$8 sps:$4 sm:$0xff]  }
 0x1a8   :  { %3027 = vmatprep.subr.bf16.mxu0 %v5203_v40  ;;  %v5308_v40 = vld [vmem:[%s7110_s5 + $0x124] ss:$8 sps:$4 sm:$0xff]  }
 0x1a9   :  { %2971 = vmatpush1.bf16.msra.mxu1 %v5198_v41  ;;  %v5270_v41 = vld [vmem:[%s7110_s5 + $0xe0] ss:$8 sps:$4 sm:$0xff]  }
 0x1aa   :  { %2972 = vmatprep.subr.bf16.mxu1 %v5206_v27  ;;  %v5275_v27 = vld [vmem:[%s7110_s5 + $0xd4] ss:$8 sps:$4 sm:$0xff]  }
 0x1ab   :  { %3028 = vmatpush2.bf16.msra.mxu0 %v5201_v42  ;;  %v5306_v42 = vld [vmem:[%s7110_s5 + $0x120] ss:$8 sps:$4 sm:$0xff]  }
 0x1ac   :  { %3029 = vmatprep.subr.bf16.mxu0 %v5209_v43  ;;  %v5309_v43 = vld [vmem:[%s7110_s5 + $0x110] ss:$8 sps:$4 sm:$0xff]  }
 0x1ad   :  { %2973 = vmatpush1.bf16.msra.mxu1 %v5204_v44  ;;  %v5311_v44 = vld [vmem:[%s7110_s5 + $0x114] ss:$8 sps:$4 sm:$0xff]  }
 0x1ae   :  { %2974 = vmatprep.subr.bf16.mxu1 %v5212_v46  ;;  %v5273_v46 = vld [vmem:[%s7110_s5 + $0xd0] ss:$8 sps:$4 sm:$0xff]  }
 0x1af   :  { %3030 = vmatpush2.bf16.msra.mxu0 %v5207_v45  ;;  %v5314_v45 = vld [vmem:[%s7110_s5 + $0x104] ss:$8 sps:$4 sm:$0xff]  }
 0x1b0   :  { %3031 = vmatprep.subr.bf16.mxu0 %v5215_v47  ;;  %v5278_v47 = vld [vmem:[%s7110_s5 + $0xc4] ss:$8 sps:$4 sm:$0xff]  }
 0x1b1   :  { %2975 = vmatpush2.bf16.msra.mxu1 %v5210_v48  ;;  %v5312_v48 = vld [vmem:[%s7110_s5 + $0x100] ss:$8 sps:$4 sm:$0xff]  }
 0x1b2   :  { %2976 = vmatprep.subr.bf16.mxu1 %v5218_v50  ;;  %v5276_v50 = vld [vmem:[%s7110_s5 + $0xc0] ss:$8 sps:$4 sm:$0xff]  }
 0x1b3   :  { %3032 = vmatpush2.bf16.msra.mxu0 %v5213_v49  ;;  %v5317_v49 = vld [vmem:[%s7110_s5 + $0x1f4] ss:$8 sps:$4 sm:$0xff]  }
 0x1b4   :  { %3538 = vmatprep.subr.bf16.mxu0 %v5293_v17 }
 0x1b5   :  { %2977 = vmatpush2.bf16.msra.mxu1 %v5216_v51  ;;  %v5281_v51 = vld [vmem:[%s7110_s5 + $0xb4] ss:$8 sps:$4 sm:$0xff]  }
 0x1b6   :  { %3034 = vmatmul.mubr.bf16.vlgmr.msra.gmra.mxu0 %v6509_v32  ;;  %2978 = vmatprep.subr.bf16.mxu1 %v5221_v53  ;;  %v5225_v32 = vld [vmem:[%s7108_s3 + $0x368] ss:$16 sps:$4 sm:$0xff]  }
 0x1b7   :  { %3539 = vmatpush1.bf16.msra.mxu0 %v5291_v16  ;;  %v5315_v53 = vld [vmem:[%s7110_s5 + $0x1f0] ss:$8 sps:$4 sm:$0xff]  }
 0x1b8   :  { %3540 = vmatprep.subr.bf16.mxu0 %v5296_v18 }
 0x1b9   :  { %2979 = vmatpush2.bf16.msra.mxu1 %v5219_v54  ;;  %v5320_v54 = vld [vmem:[%s7110_s5 + $0x1e4] ss:$8 sps:$4 sm:$0xff]  }
 0x1ba   :  { %2980 = vmatprep.subr.bf16.mxu1 %v5224_v56  ;;  %v5279_v56 = vld [vmem:[%s7110_s5 + $0xb0] ss:$8 sps:$4 sm:$0xff]  }
 0x1bb   :  { %3541 = vmatpush1.bf16.msra.mxu0 %v5294_v20 }
 0x1bc   :  { %3542 = vmatprep.subr.bf16.mxu0 %v5299_v21 }
 0x1bd   :  { %2981 = vmatpush2.bf16.msra.mxu1 %v5222_v13  ;;  %v5284_v13 = vld [vmem:[%s7110_s5 + $0xa4] ss:$8 sps:$4 sm:$0xff]  }
 0x1be   :  { %2982 = vmatprep.subr.bf16.mxu1 %v5227_v57  ;;  %v5318_v57 = vld [vmem:[%s7110_s5 + $0x1e0] ss:$8 sps:$4 sm:$0xff]  }
 0x1bf   :  { %3543 = vmatpush1.bf16.msra.mxu0 %v5297_v22 }
 0x1c0   :  { %3544 = vmatprep.subr.bf16.mxu0 %v5302_v24 }
 0x1c1   :  { %2983 = vmatpush2.bf16.msra.mxu1 %v5225_v32  ;;  %v5323_v32 = vld [vmem:[%s7110_s5 + $0x1d4] ss:$8 sps:$4 sm:$0xff]  }
 0x1c2   :  { %2984 = vmatprep.subr.bf16.mxu1 %v5230_v58  ;;  %v5282_v58 = vld [vmem:[%s7110_s5 + $0xa0] ss:$8 sps:$4 sm:$0xff]  }
 0x1c3   :  { %3545 = vmatpush1.bf16.msra.mxu0 %v5300_v26 }
 0x1c4   :  { %3546 = vmatprep.subr.bf16.mxu0 %v5305_v33 }
 0x1c5   :  { %2985 = vmatpush2.bf16.msra.mxu1 %v5228_v59  ;;  %v5287_v59 = vld [vmem:[%s7110_s5 + $0x94] ss:$8 sps:$4 sm:$0xff]  }
 0x1c6   :  { %2986 = vmatprep.subr.bf16.mxu1 %v5233_v61  ;;  %v5321_v61 = vld [vmem:[%s7110_s5 + $0x1d0] ss:$8 sps:$4 sm:$0xff]  }
 0x1c7   :  { %3547 = vmatpush1.bf16.msra.mxu0 %v5303_v37 }
 0x1c8   :  { %3548 = vmatprep.subr.bf16.mxu0 %v5308_v40 }
 0x1c9   :  { %2987 = vmatpush2.bf16.msra.mxu1 %v5231_v62  ;;  %v5285_v62 = vld [vmem:[%s7110_s5 + $0x90] ss:$8 sps:$4 sm:$0xff]  }
 0x1ca   :  { %2988 = vmatprep.subr.bf16.mxu1 %v5236_v2  ;;  %v5290_v2 = vld [vmem:[%s7110_s5 + $0x84] ss:$8 sps:$4 sm:$0xff]  }
 0x1cb   :  { %3549 = vmatpush1.bf16.msra.mxu0 %v5306_v42 }
 0x1cc   :  { %3550 = vmatprep.subr.bf16.mxu0 %v5311_v44 }
 0x1cd   :  { %2989 = vmatpush2.bf16.msra.mxu1 %v5234_v0  ;;  %v5326_v0 = vld [vmem:[%s7110_s5 + $0x1c4] ss:$8 sps:$4 sm:$0xff]  }
 0x1ce   :  { %3056 = vmatprep.subr.bf16.mxu1 %v5239_v4  ;;  %v5288_v4 = vld [vmem:[%s7110_s5 + $0x80] ss:$8 sps:$4 sm:$0xff]  }
 0x1cf   :  { %3551 = vmatpush1.bf16.msra.mxu0 %v5309_v43 }
 0x1d0   :  { %2991 = vmatmul.mubr.bf16.vlgmr.msra.gmra.mxu1 %v6356_v11  ;;  %v5248_v11 = vld [vmem:[%s7110_s5 + $0x64] ss:$8 sps:$4 sm:$0xff]   ;;  %3552 = vmatprep.subr.bf16.mxu0 %v5314_v45 }
 0x1d1   :  { %3057 = vmatpush1.bf16.msra.mxu1 %v5237_v5  ;;  %3076 = vmatprep.mubr.bf16.mxu1 %v5429_v3  ;;  %v5246_v3 = vld [vmem:[%s7110_s5 + $0x60] ss:$8 sps:$4 sm:$0xff]  }
 0x1d2   :  { %3058 = vmatprep.subr.bf16.mxu1 %v5242_v6  ;;  %v5324_v5 = vld [vmem:[%s7110_s5 + $0x1c0] ss:$8 sps:$4 sm:$0xff]   ;;  %v5329_v6 = vld [vmem:[%s7110_s5 + $0x1b4] ss:$8 sps:$4 sm:$0xff]  }
 0x1d3   :  { %3553 = vmatpush1.bf16.msra.mxu0 %v5312_v48 }
 0x1d4   :  { %3554 = vmatprep.subr.bf16.mxu0 %v5317_v49 }
 0x1d5   :  { %3059 = vmatpush1.bf16.msra.mxu1 %v5240_v7  ;;  %v5327_v7 = vld [vmem:[%s7110_s5 + $0x1b0] ss:$8 sps:$4 sm:$0xff]  }
 0x1d6   :  { %3495 = vmatprep.subr.bf16.mxu1 %v5245_v8  ;;  %v5332_v8 = vld [vmem:[%s7110_s5 + $0x1a4] ss:$8 sps:$4 sm:$0xff]  }
 0x1d7   :  { %3555 = vmatpush2.bf16.msra.mxu0 %v5315_v53 }
 0x1d8   :  { %4480 = vmatmul.mubr.msk.bf16.vlgmr.msra.gmra.mxu1 %vm2739_vm1, %v6570_v15  ;;  %v5254_v15 = vld [vmem:[%s7110_s5 + $0x44] ss:$8 sps:$4 sm:$0xff]   ;;  %3556 = vmatprep.subr.bf16.mxu0 %v5320_v54 }
 0x1d9   :  { %3496 = vmatpush1.bf16.msra.mxu1 %v5243_v10  ;;  %v5330_v10 = vld [vmem:[%s7110_s5 + $0x1a0] ss:$8 sps:$4 sm:$0xff]  }
 0x1da   :  { %3497 = vmatprep.subr.bf16.mxu1 %v5248_v11  ;;  %v5335_v11 = vld [vmem:[%s7110_s5 + $0x194] ss:$8 sps:$4 sm:$0xff]  }
 0x1db   :  { %3557 = vmatpush2.bf16.msra.mxu0 %v5318_v57 }
 0x1dc   :  { %3558 = vmatprep.subr.bf16.mxu0 %v5323_v32 }
 0x1dd   :  { %3498 = vmatpush1.bf16.msra.mxu1 %v5246_v3  ;;  %v5333_v3 = vld [vmem:[%s7110_s5 + $0x190] ss:$8 sps:$4 sm:$0xff]  }
 0x1de   :  { %3499 = vmatprep.subr.bf16.mxu1 %v5251_v12  ;;  %v5338_v12 = vld [vmem:[%s7110_s5 + $0x184] ss:$8 sps:$4 sm:$0xff]  }
 0x1df   :  { %3559 = vmatpush2.bf16.msra.mxu0 %v5321_v61 }
 0x1e0   :  { %3560 = vmatprep.subr.bf16.mxu0 %v5326_v0 }
 0x1e1   :  { %3500 = vmatpush1.bf16.msra.mxu1 %v5249_v14  ;;  %v5336_v14 = vld [vmem:[%s7110_s5 + $0x180] ss:$8 sps:$4 sm:$0xff]  }
 0x1e2   :  { %3501 = vmatprep.subr.bf16.mxu1 %v5254_v15  ;;  %v2777_v15 = vpop.f32.mrf.mxu1 }
 0x1e3   :  { %3561 = vmatpush2.bf16.msra.mxu0 %v5324_v5 }
 0x1e4   :  { %3562 = vmatprep.subr.bf16.mxu0 %v5329_v6  ;;  %v2779_v16 = vpop.f32.mrf.mxu1 }
 0x1e5   :  { %3502 = vmatpush1.bf16.msra.mxu1 %v5252_v19 }
 0x1e6   :  { %3503 = vmatprep.subr.bf16.mxu1 %v5257_v39  ;;  %v2781_v17 = vpop.f32.mrf.mxu1 }
 0x1e7   :  { %3563 = vmatpush2.bf16.msra.mxu0 %v5327_v7 }
 0x1e8   :  { %3564 = vmatprep.subr.bf16.mxu0 %v5332_v8  ;;  %v2783_v18 = vpop.f32.mrf.mxu1 }
 0x1e9   :  { %3504 = vmatpush1.bf16.msra.mxu1 %v5255_v9  ;;  %v1717_v9 = vld [vmem:[%s7109_s4] sm:$0xf] }
 0x1ea   :  { %3505 = vmatprep.subr.bf16.mxu1 %v5260_v23  ;;  %v1726_v23 = vrot.slane %v1717_v9, %v6275_v63  ;;  %v1722_v24 = vrot.slane %v1717_v9, %v6278_v1  ;;  %v1734_v0 = vrot.slane %v1717_v9, %v271_v34 }
 0x1eb   :  { %3565 = vmatpush2.bf16.msra.mxu0 %v5330_v10 }
 0x1ec   :  { %3566 = vmatprep.subr.bf16.mxu0 %v5335_v11  ;;  %v2784_v33 = vadd.f32 %v2783_v18, %v1726_v23 }
 0x1ed   :  { %3506 = vmatpush1.bf16.msra.mxu1 %v5258_v25 }
 0x1ee   :  { %3507 = vmatprep.subr.bf16.mxu1 %v5263_v28  ;;  %v2780_v28 = vadd.f32 %v2779_v16, %v1726_v23 }
 0x1ef   :  { %3567 = vmatpush2.bf16.msra.mxu0 %v5333_v3 }
 0x1f0   :  { %3568 = vmatprep.subr.bf16.mxu0 %v5338_v12 }
 0x1f1   :  { %3508 = vmatpush1.bf16.msra.mxu1 %v5261_v55  ;;  %v2782_v55 = vadd.f32 %v2781_v17, %v1722_v24 }
 0x1f2   :  { %3509 = vmatprep.subr.bf16.mxu1 %v5266_v29  ;;  %v2778_v29 = vadd.f32 %v2777_v15, %v1722_v24 }
 0x1f3   :  { %3569 = vmatpush2.bf16.msra.mxu0 %v5336_v14 }
 0x1f4   :  { %4662 = vmatprep.subr.bf16.mxu0 %v5430_v52 }
 0x1f5   :  { %3510 = vmatpush1.bf16.msra.mxu1 %v5264_v30 }
 0x1f6   :  { %3511 = vmatprep.subr.bf16.mxu1 %v5269_v31  ;;  %v2820_v20 = vpop.f32.mrf.mxu0 }
 0x1f8   :  { %v2822_v21 = vpop.f32.mrf.mxu0 }
 0x1f9   :  { %3512 = vmatpush2.bf16.msra.mxu1 %v5267_v36  ;;  %v2823_v36 = vadd.f32 %v2822_v21, %v2780_v28 }
 0x1fa   :  { %3513 = vmatprep.subr.bf16.mxu1 %v5272_v38  ;;  %v2824_v25 = vpop.f32.mrf.mxu0  ;;  %v2821_v38 = vadd.f32 %v2820_v20, %v2778_v29 }
 0x1fb   :  { %v2825_v37 = vadd.f32 %v2824_v25, %v2782_v55 }
 0x1fc   :  { %v2826_v30 = vpop.f32.mrf.mxu0 }
 0x1fd   :  { %3514 = vmatpush2.bf16.msra.mxu1 %v5270_v41  ;;  %v2827_v41 = vadd.f32 %v2826_v30, %v2784_v33 }
 0x1fe   :  { %3515 = vmatprep.subr.bf16.mxu1 %v5275_v27 }
 0x201   :  { %3516 = vmatpush2.bf16.msra.mxu1 %v5273_v46 }
 0x202   :  { %3517 = vmatprep.subr.bf16.mxu1 %v5278_v47 }
 0x205   :  { %3518 = vmatpush2.bf16.msra.mxu1 %v5276_v50 }
 0x206   :  { %3519 = vmatprep.subr.bf16.mxu1 %v5281_v51 }
 0x209   :  { %3520 = vmatpush2.bf16.msra.mxu1 %v5279_v56 }
 0x20a   :  { %3521 = vmatprep.subr.bf16.mxu1 %v5284_v13 }
 0x20d   :  { %3522 = vmatpush2.bf16.msra.mxu1 %v5282_v58 }
 0x20e   :  { %3523 = vmatprep.subr.bf16.mxu1 %v5287_v59 }
 0x211   :  { %3524 = vmatpush2.bf16.msra.mxu1 %v5285_v62 }
 0x212   :  { %3525 = vmatprep.subr.bf16.mxu1 %v5290_v2 }
 0x215   :  { %3526 = vmatpush2.bf16.msra.mxu1 %v5288_v4  ;;  %v1730_v4 = vrot.slane %v1717_v9, %v267_v35 }
 0x235   :  { %v2863_v19 = vpop.f32.mrf.mxu1 }
 0x236   :  { %v2864_v43 = vadd.f32 %v2863_v19, %v2821_v38  ;;  %v2949_v32 = vpop.f32.mrf.mxu0  ;;  %v5344_v38 = vld [vmem:[%s7112_s7 + $0x64] ss:$8 sps:$4 sm:$0xff]  }
 0x237   :  { %v2865_v39 = vpop.f32.mrf.mxu1  ;;  %v2950_v11 = vadd.f32 %v2949_v32, %v1730_v4  ;;  %v5369_v32 = vld [vmem:[%s7112_s7 + $0xd0] ss:$8 sps:$4 sm:$0xff]  }
 0x238   :  { %v2866_v42 = vadd.f32 %v2865_v39, %v2823_v36  ;;  %v2951_v58 = vpop.f32.mrf.mxu0  ;;  %v5339_v36 = vld [vmem:[%s7112_s7 + $0x70] ss:$8 sps:$4 sm:$0xff]  }
 0x239   :  { %v2867_v22 = vpop.f32.mrf.mxu1  ;;  %v2952_v8 = vadd.f32 %v2951_v58, %v1734_v0  ;;  %v5374_v58 = vld [vmem:[%s7112_s7 + $0xc4] ss:$8 sps:$4 sm:$0xff]  }
 0x23a   :  { %v2868_v27 = vadd.f32 %v2867_v22, %v2825_v37  ;;  %v2953_v59 = vpop.f32.mrf.mxu0  ;;  %v5341_v37 = vld [vmem:[%s7112_s7 + $0x74] ss:$8 sps:$4 sm:$0xff]  }
 0x23b   :  { %v2869_v26 = vpop.f32.mrf.mxu1  ;;  %v2954_v10 = vadd.f32 %v2953_v59, %v1730_v4  ;;  %3779 = vmatprep.subr.bf16.mxu1 %v5341_v37  ;;  %v5372_v59 = vld [vmem:[%s7112_s7 + $0xc0] ss:$8 sps:$4 sm:$0xff]   ;;  %v5383_v4 = vld [vmem:[%s7112_s7 + $0x94] ss:$8 sps:$4 sm:$0xff]  }
 0x23c   :  { %v2870_v45 = vadd.f32 %v2869_v26, %v2827_v41  ;;  %v2955_v61 = vpop.f32.mrf.mxu0  ;;  %v5347_v41 = vld [vmem:[%s7112_s7 + $0x54] ss:$8 sps:$4 sm:$0xff]  }
 0x23d   :  { %v2956_v12 = vadd.f32 %v2955_v61, %v1734_v0  ;;  %v5377_v61 = vld [vmem:[%s7112_s7 + $0xb4] ss:$8 sps:$4 sm:$0xff]   ;;  %v5378_v0 = vld [vmem:[%s7112_s7 + $0xa0] ss:$8 sps:$4 sm:$0xff]  }
 0x250   :  { %v2906_v31 = vpop.f32.mrf.mxu1 }
 0x251   :  { %v2907_v48 = vadd.f32 %v2906_v31, %v2864_v43  ;;  %v5348_v43 = vld [vmem:[%s7112_s7 + $0x40] ss:$8 sps:$4 sm:$0xff]  }
 0x252   :  { %v2908_v40 = vpop.f32.mrf.mxu1 }
 0x253   :  { %v2909_v46 = vadd.f32 %v2908_v40, %v2866_v42  ;;  %v3087_v56 = vmax.f32 %v2907_v48, 0.0  ;;  %v5342_v40 = vld [vmem:[%s7112_s7 + $0x60] ss:$8 sps:$4 sm:$0xff]   ;;  %v5345_v42 = vld [vmem:[%s7112_s7 + $0x50] ss:$8 sps:$4 sm:$0xff]  }
 0x254   :  { %v2910_v44 = vpop.f32.mrf.mxu1  ;;  %v5359_v48 = vld [vmem:[%s7112_s7 + $0x14] ss:$8 sps:$4 sm:$0xff]  }
 0x255   :  { %v2911_v47 = vadd.f32 %v2910_v44, %v2868_v27  ;;  %v3088_v53 = vmax.f32 %v2909_v46, 0.0  ;;  %v5350_v27 = vld [vmem:[%s7112_s7 + $0x44] ss:$8 sps:$4 sm:$0xff]   ;;  %v5353_v44 = vld [vmem:[%s7112_s7 + $0x34] ss:$8 sps:$4 sm:$0xff]  }
 0x256   :  { %v2912_v49 = vpop.f32.mrf.mxu1  ;;  %v5356_v46 = vld [vmem:[%s7112_s7 + $0x24] ss:$8 sps:$4 sm:$0xff]  }
 0x257   :  { %v2913_v50 = vadd.f32 %v2912_v49, %v2870_v45  ;;  %v3091_v51 = vmax.f32 %v2911_v47, 0.0  ;;  %v5351_v45 = vld [vmem:[%s7112_s7 + $0x30] ss:$8 sps:$4 sm:$0xff]   ;;  %v5354_v47 = vld [vmem:[%s7112_s7 + $0x20] ss:$8 sps:$4 sm:$0xff]  }
 0x258   :  { %v5357_v49 = vld [vmem:[%s7112_s7 + $0x10] ss:$8 sps:$4 sm:$0xff]  }
 0x259   :  { %v3092_v54 = vmax.f32 %v2913_v50, 0.0  ;;  %v3095_v57 = vpack.c.bf16 %v3091_v51, %v3087_v56  ;;  %v5362_v50 = vld [vmem:[%s7112_s7 + $0x4] ss:$8 sps:$4 sm:$0xff]   ;;  %v5360_v51 = vld [vmem:[%s7112_s7] ss:$8 sps:$4 sm:$0xff]  }
 0x25a   :  { %v5368_v56 = vld [vmem:[%s7112_s7 + $0xe4] ss:$8 sps:$4 sm:$0xff]  }
 0x25b   :  { %v3096_v13 = vpack.c.bf16 %v3092_v54, %v3088_v53  ;;  %v5365_v53 = vld [vmem:[%s7112_s7 + $0xf4] ss:$8 sps:$4 sm:$0xff]   ;;  %v5363_v54 = vld [vmem:[%s7112_s7 + $0xf0] ss:$8 sps:$4 sm:$0xff]  }
 0x25d   :  { %3527 = vmatprep.mubr.bf16.mxu1 %v3096_v13  ;;  %v5366_v13 = vld [vmem:[%s7112_s7 + $0xe0] ss:$8 sps:$4 sm:$0xff]  }
 0x25e   :  { %3528 = vmatmul.mubr.bf16.vlgmr.msra.gmra.mxu1 %v3095_v57  ;;  %v5371_v57 = vld [vmem:[%s7112_s7 + $0xd4] ss:$8 sps:$4 sm:$0xff]  }
 0x25f   :  { %3780 = vmatpush1.bf16.msra.mxu1 %v5339_v36 }
 0x260   :  { %3781 = vmatprep.subr.bf16.mxu1 %v5344_v38 }
 0x263   :  { %3782 = vmatpush1.bf16.msra.mxu1 %v5342_v40 }
 0x264   :  { %3783 = vmatprep.subr.bf16.mxu1 %v5347_v41 }
 0x267   :  { %3784 = vmatpush1.bf16.msra.mxu1 %v5345_v42 }
 0x268   :  { %3785 = vmatprep.subr.bf16.mxu1 %v5350_v27  ;;  %v4577_v27 = vld [vmem:[%s7113_s8] ss:$0 sm:$0xff] }
 0x26b   :  { %3786 = vmatpush1.bf16.msra.mxu1 %v5348_v43 }
 0x26c   :  { %3787 = vmatprep.subr.bf16.mxu1 %v5353_v44 }
 0x26f   :  { %3788 = vmatpush1.bf16.msra.mxu1 %v5351_v45 }
 0x270   :  { %3789 = vmatprep.subr.bf16.mxu1 %v5356_v46 }
 0x273   :  { %3790 = vmatpush1.bf16.msra.mxu1 %v5354_v47 }
 0x274   :  { %3791 = vmatprep.subr.bf16.mxu1 %v5359_v48 }
 0x276   :  { %v3035_v62 = vpop.f32.mrf.mxu0 }
 0x277   :  { %3792 = vmatpush1.bf16.msra.mxu1 %v5357_v49  ;;  %v5391_v49 = vld [vmem:[%s7116_s11 + $0x38] sm:$0xff]  }
 0x278   :  { %v3037_v6 = vpop.f32.mrf.mxu0  ;;  %3793 = vmatprep.subr.bf16.mxu1 %v5362_v50 }
 0x27a   :  { %v3039_v16 = vpop.f32.mrf.mxu0 }
 0x27b   :  { %3794 = vmatpush1.bf16.msra.mxu1 %v5360_v51  ;;  %v5392_v51 = vld [vmem:[%s7116_s11 + $0x30] sm:$0xff]  }
 0x27c   :  { %v3041_v21 = vpop.f32.mrf.mxu0  ;;  %3795 = vmatprep.subr.bf16.mxu1 %v5365_v53  ;;  %v5393_v53 = vld [vmem:[%s7116_s11 + $0x28] sm:$0xff]  }
 0x27f   :  { %3796 = vmatpush2.bf16.msra.mxu1 %v5363_v54  ;;  %v5394_v54 = vld [vmem:[%s7116_s11 + $0x20] sm:$0xff]  }
 0x280   :  { %3797 = vmatprep.subr.bf16.mxu1 %v5368_v56  ;;  %v5395_v56 = vld [vmem:[%s7116_s11 + $0x18] sm:$0xff]  }
 0x283   :  { %3798 = vmatpush2.bf16.msra.mxu1 %v5366_v13  ;;  %v5396_v13 = vld [vmem:[%s7116_s11 + $0x10] sm:$0xff]  }
 0x284   :  { %3799 = vmatprep.subr.bf16.mxu1 %v5371_v57  ;;  %v5397_v57 = vld [vmem:[%s7116_s11 + $0x8] sm:$0xff]  }
 0x287   :  { %3800 = vmatpush2.bf16.msra.mxu1 %v5369_v32  ;;  %v5398_v32 = vld [vmem:[%s7116_s11] sm:$0xff]  }
 0x288   :  { %3801 = vmatprep.subr.bf16.mxu1 %v5374_v58  ;;  %v4578_v58 = vld [vmem:[%s7115_s10] ss:$0 sm:$0xff]  ;;  %s5433_s10 = smov [#allocation3]  }
 0x28b   :  { %3802 = vmatpush2.bf16.msra.mxu1 %v5372_v59 }
 0x28c   :  { %3803 = vmatprep.subr.bf16.mxu1 %v5377_v61 }
 0x290   :  { %v2992_v2 = vpop.f32.mrf.mxu1 }
 0x291   :  { %v2993_v17 = vadd.f32 %v2992_v2, %v2950_v11  ;;  %v5380_v2 = vld [vmem:[%s7112_s7 + $0xa4] ss:$8 sps:$4 sm:$0xff]   ;;  %v3163_v11 = vld [vmem:[%s7111_s6] sm:$0x3] }
 0x292   :  { %v2994_v5 = vpop.f32.mrf.mxu1 }
 0x293   :  { %v2995_v14 = vadd.f32 %v2994_v5, %v2952_v8  ;;  %v3036_v60 = vadd.f32 %v3035_v62, %v2993_v17  ;;  %v5375_v62 = vld [vmem:[%s7112_s7 + $0xb0] ss:$8 sps:$4 sm:$0xff]  }
 0x294   :  { %v2996_v7 = vpop.f32.mrf.mxu1  ;;  %3804 = vmatpush2.bf16.msra.mxu1 %v5375_v62  ;;  %v5381_v5 = vld [vmem:[%s7112_s7 + $0x90] ss:$8 sps:$4 sm:$0xff]  }
 0x295   :  { %v2997_v15 = vadd.f32 %v2996_v7, %v2954_v10  ;;  %v3038_v39 = vadd.f32 %v3037_v6, %v2995_v14  ;;  %3805 = vmatprep.subr.bf16.mxu1 %v5380_v2  ;;  %v5386_v6 = vld [vmem:[%s7112_s7 + $0x84] ss:$8 sps:$4 sm:$0xff]   ;;  %v5384_v7 = vld [vmem:[%s7112_s7 + $0x80] ss:$8 sps:$4 sm:$0xff]   ;;  %v3168_v14 = vrot.slane %v3163_v11, %v6278_v1  ;;  %v5387_v1 = vld [vmem:[%s7114_s9 + $0x18] sm:$0xff]  }
 0x296   :  { %v2998_v3 = vpop.f32.mrf.mxu1 }
 0x297   :  { %v2999_v19 = vadd.f32 %v2998_v3, %v2956_v12  ;;  %v3040_v34 = vadd.f32 %v3039_v16, %v2997_v15  ;;  %v3172_v12 = vrot.slane %v3163_v11, %v6275_v63 }
 0x298   :  { %v3078_v18 = vpop.f32.mrf.mxu1  ;;  %3806 = vmatpush2.bf16.msra.mxu1 %v5378_v0 }
 0x299   :  { %v3042_v23 = vadd.f32 %v3041_v21, %v2999_v19  ;;  %v3079_v24 = vadd.f32 %v3078_v18, %v3036_v60  ;;  %3807 = vmatprep.subr.bf16.mxu1 %v5383_v4 }
 0x29a   :  { %v3080_v20 = vpop.f32.mrf.mxu1 }
 0x29b   :  { %v3081_v9 = vadd.f32 %v3080_v20, %v3038_v39  ;;  %v3089_v30 = vmax.f32 %v3079_v24, 0.0 }
 0x29c   :  { %v3082_v35 = vpop.f32.mrf.mxu1  ;;  %3808 = vmatpush2.bf16.msra.mxu1 %v5381_v5 }
 0x29d   :  { %v3083_v22 = vadd.f32 %v3082_v35, %v3040_v34  ;;  %v3090_v55 = vmax.f32 %v3081_v9, 0.0  ;;  %3809 = vmatprep.subr.bf16.mxu1 %v5386_v6 }
 0x29e   :  { %v3084_v25 = vpop.f32.mrf.mxu1 }
 0x29f   :  { %v3085_v26 = vadd.f32 %v3084_v25, %v3042_v23  ;;  %v3093_v28 = vmax.f32 %v3083_v22, 0.0 }
 0x2a0   :  { %3810 = vmatpush2.bf16.msra.mxu1 %v5384_v7 }
 0x2a1   :  { %v3094_v29 = vmax.f32 %v3085_v26, 0.0  ;;  %v3097_v33 = vpack.c.bf16 %v3093_v28, %v3089_v30  ;;  %v5390_v30 = vld [vmem:[%s7114_s9] sm:$0xff]  }
 0x2a3   :  { %v3098_v31 = vpack.c.bf16 %v3094_v29, %v3090_v55  ;;  %v5388_v55 = vld [vmem:[%s7114_s9 + $0x10] sm:$0xff]   ;;  %v5389_v29 = vld [vmem:[%s7114_s9 + $0x8] sm:$0xff]  }
 0x2a5   :  { %3570 = vmatprep.mubr.bf16.mxu0 %v3098_v31 }
 0x2a6   :  { %3571 = vmatmul.mubr.bf16.vlgmr.msra.gmra.mxu0 %v3097_v33 }
 0x2a7   :  { %4670 = vmatprep.mubr.msk.bf16.mxu0 %vm5431_vm0, %v5430_v52  ;;  %4663 = vmatpush3.bf16.msra.mxu0 %v5387_v1 }
 0x2a8   :  { %4664 = vmatprep.subr.bf16.mxu0 %v5430_v52 }
 0x2ab   :  { %4665 = vmatpush3.bf16.msra.mxu0 %v5388_v55 }
 0x2ac   :  { %4666 = vmatprep.subr.bf16.mxu0 %v5430_v52 }
 0x2af   :  { %4667 = vmatpush3.bf16.msra.mxu0 %v5389_v29 }
 0x2b0   :  { %4668 = vmatprep.subr.bf16.mxu0 %v5430_v52 }
 0x2b3   :  { %4669 = vmatpush3.bf16.msra.mxu0 %v5390_v30 }
 0x2b4   :  { %4674 = vmatprep.subr.bf16.mxu0 %v5430_v52 }
 0x31e   :  { %v3529_v8 = vpop.f32.mrf.mxu1 }
 0x31f   :  { %v3530_v20 = vadd.f32 %v3529_v8, %v3168_v14 }
 0x320   :  { %v3531_v10 = vpop.f32.mrf.mxu1 }
 0x321   :  { %v3532_v18 = vadd.f32 %v3531_v10, %v3172_v12 }
 0x322   :  { %v3533_v3 = vpop.f32.mrf.mxu1 }
 0x323   :  { %v3534_v19 = vadd.f32 %v3533_v3, %v3168_v14  ;;  %v4593_v3 = vld [vmem:[%s7118_s13] ss:$0 sm:$0xff] }
 0x324   :  { %v3535_v16 = vpop.f32.mrf.mxu1 }
 0x325   :  { %v3536_v34 = vadd.f32 %v3535_v16, %v3172_v12 }
 0x366   :  { %v3572_v15 = vpop.f32.mrf.mxu0 }
 0x367   :  { %v3573_v35 = vadd.f32 %v3572_v15, %v3530_v20 }
 0x368   :  { %v3574_v17 = vpop.f32.mrf.mxu0 }
 0x369   :  { %v3575_v21 = vadd.f32 %v3574_v17, %v3532_v18  ;;  %v3581_v26 = vmax.f32 %v3573_v35, 0.0 }
 0x36a   :  { %v3576_v39 = vpop.f32.mrf.mxu0 }
 0x36b   :  { %v3577_v60 = vadd.f32 %v3576_v39, %v3534_v19  ;;  %v3582_v24 = vmax.f32 %v3575_v21, 0.0 }
 0x36c   :  { %v3578_v9 = vpop.f32.mrf.mxu0 }
 0x36d   :  { %v3579_v22 = vadd.f32 %v3578_v9, %v3536_v34  ;;  %v3583_v23 = vmax.f32 %v3577_v60, 0.0  ;;  %v4594_v34 = vld [vmem:[#allocation2] ss:$0 sm:$0xff] }
 0x36f   :  { %v3584_v25 = vmax.f32 %v3579_v22, 0.0  ;;  %v3585_v28 = vpack.c.bf16 %v3583_v23, %v3581_v26 }
 0x371   :  { %v3586_v63 = vpack.c.bf16 %v3584_v25, %v3582_v24 }
 0x373   :  { %3811 = vmatprep.mubr.bf16.mxu1 %v3586_v63 }
 0x374   :  { %3812 = vmatmul.mubr.bf16.vlgmr.msra.gmra.mxu1 %v3585_v28 }
 0x434   :  { %v3813_v31 = vpop.f32.mrf.mxu1 }
 0x436   :  { %v3815_v33 = vpop.f32.mrf.mxu1 }
 0x437   :  { %v3822_v36 = vmax.f32 %v3813_v31, %v3815_v33 }
 0x438   :  { %v3817_v37 = vpop.f32.mrf.mxu1 }
 0x439   :  { %3826 = vrot.lane.b32.xlu0 %v3822_v36, %s5432_s24 }
 0x43a   :  { %v3819_v38 = vpop.f32.mrf.mxu1 }
 0x43b   :  { %v3823_v40 = vmax.f32 %v3817_v37, %v3819_v38 }
 0x43d   :  { %3828 = vrot.lane.b32.xlu0 %v3823_v40, %s5432_s24 }
 0x4ab   :  { %v3827_v41 = vpop.permute.xlu0 %3826 }
 0x4ac   :  { %v3832_v42 = vmax.f32 %v3822_v36, %v3827_v41 }
 0x4ae   :  { %v3841_v44 = vadd.f32 %v4577_v27, %v3832_v42 }
 0x4af   :  { %v3829_v43 = vpop.permute.xlu0 %3828 }
 0x4b0   :  { %v3833_v45 = vmax.f32 %v3823_v40, %v3829_v43  ;;  %v3843_v47 = vmax.f32 %v3841_v44, 0.0 }
 0x4b2   :  { %v3842_v46 = vadd.f32 %v4577_v27, %v3833_v45 }
 0x4b4   :  { %v3844_v48 = vmax.f32 %v3842_v46, 0.0 }
 0x4b6   :  { %v3845_v50 = vpack.c.bf16 %v3844_v48, %v3843_v47 }
 0x4b8   :  { %4671 = vmatmul.mubr.msk.bf16.vlgmr.msra.gmra.mxu0 %vm3885_vm2, %v3845_v50 }
 0x4b9   :  { %4675 = vmatpush3.bf16.msra.mxu0 %v5391_v49  ;;  %4690 = vmatprep.mubr.msk.bf16.mxu0 %vm5431_vm0, %v5430_v52 }
 0x4ba   :  { %4676 = vmatprep.subr.bf16.mxu0 %v5430_v52 }
 0x4bd   :  { %4677 = vmatpush3.bf16.msra.mxu0 %v5392_v51 }
 0x4be   :  { %4678 = vmatprep.subr.bf16.mxu0 %v5430_v52 }
 0x4c1   :  { %4679 = vmatpush3.bf16.msra.mxu0 %v5393_v53 }
 0x4c2   :  { %4680 = vmatprep.subr.bf16.mxu0 %v5430_v52 }
 0x4c5   :  { %4681 = vmatpush3.bf16.msra.mxu0 %v5394_v54 }
 0x4c6   :  { %4682 = vmatprep.subr.bf16.mxu0 %v5430_v52 }
 0x4c9   :  { %4683 = vmatpush3.bf16.msra.mxu0 %v5395_v56 }
 0x4ca   :  { %4684 = vmatprep.subr.bf16.mxu0 %v5430_v52 }
 0x4cd   :  { %4685 = vmatpush3.bf16.msra.mxu0 %v5396_v13 }
 0x4ce   :  { %4686 = vmatprep.subr.bf16.mxu0 %v5430_v52 }
 0x4d1   :  { %4687 = vmatpush3.bf16.msra.mxu0 %v5397_v57 }
 0x4d2   :  { %4688 = vmatprep.subr.bf16.mxu0 %v5430_v52  ;;  %v4584_v52 = vld [vmem:[%s7117_s12] ss:$0 sm:$0xff]  ;;  %s4100_s12 = sshll.u32 %s5433_s10, 4  ;;  %s4101_s12 = int_to_ptr.vmem [resolvable:$true] %s4100_s12 }
 0x4d3   :  { %s5407_s13 = scalar_lea.vmem %s4101_s12, 256  ;;  %p5412_p1 = scmp.lt.s32.totalorder %s4101_s12, %s4101_s12 }
 0x4d4   :  { %p5408_p0 = scmp.ne.s32.totalorder %s4101_s12, %s5407_s13  ;;  %p5413_p2 = scmp.lt.s32.totalorder %s5407_s13, %s5407_s13 }
 0x4d5   :  { %4689 = vmatpush3.bf16.msra.mxu0 %v5398_v32 }
 0x4d6   :  { %p5414_p3 = por %p5413_p2, %p5412_p1 }
 0x4d8   :  { %p5415_p4 = pnand %p5414_p3, %p5408_p0 }
 0x578   :  { %v3923_v59 = vpop.f32.mrf.mxu0 }
 0x579   :  { %v3924_v62 = vadd.f32 %v4578_v58, %v3923_v59 }
 0x57a   :  { %v4672_v61 = vpop.f32.mrf.mxu0 }
 0x57b   :  { %v3930_v5 = vmax.f32 %v3924_v62, 0.0 }
 0x57c   :  { %v3926_v2 = vpop.f32.mrf.mxu0 }
 0x57d   :  { %v3927_v0 = vadd.f32 %v4578_v58, %v3926_v2 }
 0x57e   :  { %v4673_v4 = vpop.f32.mrf.mxu0 }
 0x57f   :  { %v3931_v6 = vmax.f32 %v3927_v0, 0.0 }
 0x581   :  { %v3932_v7 = vpack.c.bf16 %v3931_v6, %v3930_v5 }
 0x583   :  { %4691 = vmatmul.mubr.bf16.vlgmr.msra.gmra.mxu0 %v3932_v7 }
 0x643   :  { %v4038_v8 = vpop.f32.mrf.mxu0 }
 0x644   :  { %v4039_v10 = vadd.f32 %v4584_v52, %v4038_v8 }
 0x645   :  { %v4692_v11 = vpop.f32.mrf.mxu0 }
 0x646   :  { %v4045_v12 = vmax.f32 %v4039_v10, 0.0 }
 0x647   :  { %v4041_v14 = vpop.f32.mrf.mxu0 }
 0x648   :  { %v4042_v15 = vadd.f32 %v4584_v52, %v4041_v14  ;;  %v4054_v16 = vmul.f32 %v4593_v3, %v4045_v12 }
 0x649   :  { %v4693_v17 = vpop.f32.mrf.mxu0 }
 0x64a   :  { %v4046_v18 = vmax.f32 %v4042_v15, 0.0  ;;  %v4056_v19 = vsel %vm3885_vm2, %v4054_v16, 0.0 }
 0x64b   :  { %4057 = vadd.xlane.f32.xlu1 %v4056_v19 }
 0x64c   :  { %v4055_v20 = vmul.f32 %v4593_v3, %v4046_v18 }
 0x64e   :  { %v4059_v39 = vsel %vm3885_vm2, %v4055_v20, 0.0 }
 0x64f   :  { %4060 = vadd.xlane.f32.xlu1 %v4059_v39 }
 0x6d4   :  { %v4058_v21 = vpop.xlane.xlu1 %4057 }
 0x6d5   :  { %v4069_v60 = vadd.f32 %v4594_v34, %v4058_v21 }
 0x6d7   :  { %v4595_v35 = vmul.f32 -1.442695, %v4069_v60 }
 0x6d8   :  { %v4061_v9 = vpop.xlane.xlu1 %4060 }
 0x6d9   :  { %5399 = vpow2.f32 %v4595_v35  ;;  %v4070_v22 = vadd.f32 %v4594_v34, %v4061_v9 }
 0x6db   :  { %v4596_v23 = vmul.f32 -1.442695, %v4070_v22 }
 0x6dd   :  { %5401 = vpow2.f32 %v4596_v23 }
 0x6e6   :  { %v5400_v24 = vpop.eup %5399 }
 0x6e7   :  { %v4077_v25 = vadd.f32 1.0, %v5400_v24 }
 0x6e9   :  { %5403 = vrcp.f32 %v4077_v25 }
 0x6ea   :  { %v5402_v26 = vpop.eup %5401 }
 0x6eb   :  { %v4078_v63 = vadd.f32 1.0, %v5402_v26 }
 0x6ed   :  { %5405 = vrcp.f32 %v4078_v63 }
 0x6f6   :  { %v5404_v28 = vpop.eup %5403 }
 0x6f7   :  { %4085 = vperm.xlu0 %4701, %v5404_v28  }
 0x6fa   :  { %v5406_v1 = vpop.eup %5405 }
 0x6fb   :  { %4090 = vperm.xlu1 %4702, %v5406_v1  }
 0x772   :  { %v4086_v55 = vpop.permute.xlu0 %4085 }
 0x773   :  { %4093 = vst [vmem:[#allocation3] sm:$0xff] %v4086_v55 }
 0x776   :  { %v4091_v29 = vpop.permute.xlu1 %4090 }
 0x777   :  { %4094 = vst [vmem:[#allocation3 + $0x8] sm:$0xff] %v4091_v29 }
 0x778   :  { %5418 = shalt.err (!%p5415_p4)
}
 0x779   :  { %s5434_s1 = smov 128   ;;  %s5435_s23 = smov 8  }
 0x77a   :  { %4106 = dma.vmem_to_hbm [thread:$0]  %s4101_s12, 256, %s7120_s15, [#allocation4], %s5434_s1, %s5434_s1, %s5435_s23  }
 0x77b   :  { %5427 = dma.done.wait [#allocation4], 256  }
 0x77c   :  { %5428 = vsyncadd [#allocation4], 4294967040 }
 0x77d   :  { %4110 = vsyncpa [#allocation4], 1 }

</bundles_post_ra>
